<compile_context>
chip_gen: v7x
topology: tpu7x:2x2x1
jax: 0.10.0
libtpu: 0.0.40
codegen_flags: <defaults>
</compile_context>

<pallas_src>
import functools

import jax
import jax.numpy as jnp
from jax.experimental import pallas as pl
from jax.experimental.pallas import tpu as pltpu

NEG_SLOPE = 0.01   # nn.LeakyReLU default
LANES = 128
B_MBD, C_MBD = 10, 5


def _leaky(y):
    return jnp.where(y > 0, y, NEG_SLOPE * y)


# ----------------------------------------------------------------------------
# Fused forward kernel
# ----------------------------------------------------------------------------
def _fused_disc_kernel(x1_ref, w1_ref, b1_ref, w2_ref, b2_ref, t_ref,
                       wf1_hbm, bf1_ref, wf2_ref, bf2_ref,
                       o_ref,
                       wf1_vmem, wf1_sem, *, n_batch):
    n = n_batch

    # Prefetch the dominant HBM transfer (fc1 weights, 2 MiB) so it overlaps
    # the entire conv / minibatch-discrimination phase.
    wf1_copy = pltpu.make_async_copy(wf1_hbm, wf1_vmem, wf1_sem)
    wf1_copy.start()

    # ---- conv1 as one im2col matmul; result stays live in vregs (no scratch). ----
    y1 = _leaky(jnp.dot(x1_ref[...], w1_ref[...],
                        preferred_element_type=jnp.float32) + b1_ref[...])
    # y1: (8n, 128); rows = width_pos * n + sample; cols >= 14 are zero.

    # ---- conv2: per width position, ONE (n,512)x(512,128) matmul over all 4 taps.
    # Lane-concat of full 128-lane blocks is free; bias added once per dot. ----
    y2_blocks = []
    for wp in range(3):
        lhs = jnp.concatenate(
            [y1[(2 * wp + kw) * n:(2 * wp + kw + 1) * n, :] for kw in range(4)],
            axis=1)                                               # (n, 512)
        y2_blocks.append(_leaky(
            jnp.dot(lhs, w2_ref[...], preferred_element_type=jnp.float32)
            + b2_ref[...]))                                       # (n, 128); cols>=77 zero
    feats = jnp.concatenate(y2_blocks, axis=1)                    # (n, 384)

    # ---- minibatch discrimination ----
    # Projection m = feats @ T as ONE (n,384)x(384,128) matmul.
    m = jnp.dot(feats, t_ref[...], preferred_element_type=jnp.float32)   # (n, 128)

    # Block-diagonal indicator built in-kernel: E[k, b] = 1 iff b*C <= k < (b+1)*C
    # and b < B.  (Multiply/compare form — avoids integer division.)
    row = jax.lax.broadcasted_iota(jnp.int32, (LANES, LANES), 0)
    col = jax.lax.broadcasted_iota(jnp.int32, (LANES, LANES), 1)
    lo = col * C_MBD
    e_mat = ((row >= lo) & (row < lo + C_MBD) & (col < B_MBD)).astype(jnp.float32)

    rows = []
    for i in range(n):
        diff = jnp.abs(m - m[i:i + 1, :])                                  # (n, 128)
        norms = jnp.dot(diff, e_mat, preferred_element_type=jnp.float32)   # (n, 128)
        rows.append(jnp.sum(jnp.exp(-norms), axis=0, keepdims=True) - 1.0)
    mbd = jnp.concatenate(rows, axis=0)
    # mbd: (n, 128); lanes >= 10 carry (n-1) garbage — masked by the zero rows
    # 394..511 of Wf1p (do NOT repack Wf1p without keeping those rows zero).

    # ---- fc1: block only now on the prefetched weights; ONE K=512 matmul. ----
    wf1_copy.wait()
    lhs_fc1 = jnp.concatenate([feats, mbd], axis=1)               # (n, 512)
    h = _leaky(jnp.dot(lhs_fc1, wf1_vmem[...],
                       preferred_element_type=jnp.float32) + bf1_ref[...])  # (n, 1024)

    # ---- fc2 (1024 -> 1): VPU multiply + lane reduce; no padded weight DMA.
    # Output broadcast to 128 lanes for a lane-dense store; wrapper slices col 0. ----
    s = jnp.sum(h * wf2_ref[...], axis=-1, keepdims=True)          # (n, 1)
    o_ref[...] = (jnp.broadcast_to(s, (n, LANES)) + bf2_ref[...]).astype(o_ref.dtype)


def _fused_call(x1, pp, n_batch):
    vmem = pltpu.MemorySpace.VMEM
    return pl.pallas_call(
        functools.partial(_fused_disc_kernel, n_batch=n_batch),
        out_shape=jax.ShapeDtypeStruct((n_batch, LANES), jnp.float32),
        in_specs=[
            pl.BlockSpec(memory_space=vmem),     # X1   (im2col'd input)
            pl.BlockSpec(memory_space=vmem),     # W1p  (256, 128)
            pl.BlockSpec(memory_space=vmem),     # b1p
            pl.BlockSpec(memory_space=vmem),     # W2p  (512, 128)  merged taps
            pl.BlockSpec(memory_space=vmem),     # b2p
            pl.BlockSpec(memory_space=vmem),     # Tp   (384, 128)  merged positions
            pl.BlockSpec(memory_space=pl.ANY),   # Wf1p (512, 1024) HBM, manual DMA
            pl.BlockSpec(memory_space=vmem),     # bf1p
            pl.BlockSpec(memory_space=vmem),     # Wf2p (1, 1024) dense
            pl.BlockSpec(memory_space=vmem),     # bf2p (1, 128) lane-filled bias
        ],
        out_specs=pl.BlockSpec(memory_space=vmem),
        scratch_shapes=[
            pltpu.VMEM((4 * LANES, 1024), jnp.float32),   # fc1 weight staging
            pltpu.SemaphoreType.DMA,                      # its DMA semaphore
        ],
    )(x1, pp["W1p"], pp["b1p"], pp["W2p"], pp["b2p"], pp["Tp"],
      pp["Wf1p"], pp["bf1p"], pp["Wf2p"], pp["bf2p"])


# ----------------------------------------------------------------------------
# Forward pass wrapper (only glue: conv1 im2col of the raw input)
# ----------------------------------------------------------------------------
def discriminator_forward(x, packed):
    n = x.shape[0]
    # Row = w * n + sample, col = h*2 + kw  (matches packed W1p layout).
    x1 = x.reshape(n, 128, 8, 2).transpose(2, 0, 1, 3).reshape(8 * n, 256)
    out = _fused_call(x1, packed, n)
    return out[:, :1]


# ----------------------------------------------------------------------------
# One-time parameter packing (padding / permutation / merges folded in)
# ----------------------------------------------------------------------------
def prepare_params(p):
    f32 = jnp.float32

    # conv1: W1 (14,1,128,2) -> (256, 14) -> pad cols to 128
    w1 = p["W1"].reshape(14, 256).T
    w1p = jnp.zeros((256, LANES), f32).at[:, :14].set(w1)
    b1p = jnp.zeros((1, LANES), f32).at[0, :14].set(p["b1"])

    # conv2 merged over the 4 taps: row = kw*128 + c_in, col = c_out.
    w2 = jnp.transpose(p["W2"][:, :, 0, :], (2, 1, 0))                 # (4, 14, 77)
    w2p = (jnp.zeros((4, LANES, LANES), f32).at[:, :14, :77].set(w2)
           .reshape(4 * LANES, LANES))
    b2p = jnp.zeros((1, LANES), f32).at[0, :77].set(p["b2"])

    # MBD T merged over the 3 width positions: row = wp*128 + c_out.
    # Kernel feature layout is wp*128 + c_out; torch flatten is c_out*3 + wp.
    t = jnp.transpose(p["T"].reshape(77, 3, B_MBD * C_MBD), (1, 0, 2))  # (3, 77, 50)
    tp = (jnp.zeros((3, LANES, LANES), f32)
          .at[:, :77, :B_MBD * C_MBD].set(t).reshape(3 * LANES, LANES))

    # fc1 merged: rows 0..383 = conv feature blocks (wp-major), rows 384..393 =
    # mbd weights, rows 394..511 MUST stay zero (they mask the mbd garbage lanes).
    wt = p["Wf1"].T                                                     # (241, 1024)
    wf = jnp.transpose(wt[:231].reshape(77, 3, 1024), (1, 0, 2))        # (3, 77, 1024)
    wf1p = jnp.zeros((4, LANES, 1024), f32)
    wf1p = wf1p.at[:3, :77, :].set(wf)
    wf1p = wf1p.at[3, :B_MBD, :].set(wt[231:231 + B_MBD])
    wf1p = wf1p.reshape(4 * LANES, 1024)
    bf1p = p["bf1"][None, :]

    # fc2: dense (1,1024) weight (no zero padding); bias lane-filled to (1,128).
    wf2p = p["Wf2"].astype(f32)                                         # (1, 1024)
    bf2p = jnp.full((1, LANES), p["bf2"][0], f32)

    return dict(W1p=w1p, b1p=b1p, W2p=w2p, b2p=b2p, Tp=tp,
                Wf1p=wf1p, bf1p=bf1p, Wf2p=wf2p, bf2p=bf2p)


# ----------------------------------------------------------------------------
# Deterministic parameter init (synthetic, not a checkpoint load)
# ----------------------------------------------------------------------------
def init_params(key):
    ks = jax.random.split(key, 10)
    return {
        "W1": 0.05 * jax.random.normal(ks[0], (14, 1, 128, 2), jnp.float32),
        "b1": 0.01 * jax.random.normal(ks[1], (14,), jnp.float32),
        "W2": 0.05 * jax.random.normal(ks[2], (77, 14, 1, 4), jnp.float32),
        "b2": 0.01 * jax.random.normal(ks[3], (77,), jnp.float32),
        "T": jax.random.normal(ks[4], (231, B_MBD * C_MBD), jnp.float32),
        "Wf1": 0.02 * jax.random.normal(ks[5], (1024, 241), jnp.float32),
        "bf1": 0.01 * jax.random.normal(ks[6], (1024,), jnp.float32),
        "Wf2": 0.02 * jax.random.normal(ks[7], (1, 1024), jnp.float32),
        "bf2": 0.01 * jax.random.normal(ks[8], (1,), jnp.float32),
    }


# ----------------------------------------------------------------------------
# Pure-JAX reference of the PyTorch forward (correctness check only)
# ----------------------------------------------------------------------------
def reference_forward(x, p):
    n = x.shape[0]
    patches = jnp.stack([x[:, 0, :, 2 * w:2 * w + 2] for w in range(8)], axis=1)
    y1 = jnp.einsum("nwhk,chk->ncw", patches, p["W1"][:, 0]) + p["b1"][None, :, None]
    y1 = _leaky(y1)                                               # (n, 14, 8)
    p2 = jnp.stack([y1[:, :, 2 * w:2 * w + 4] for w in range(3)], axis=1)
    y2 = jnp.einsum("nwck,dck->ndw", p2, p["W2"][:, :, 0, :]) + p["b2"][None, :, None]
    y2 = _leaky(y2)                                               # (n, 77, 3)
    feats = y2.reshape(n, 231)
    m = (feats @ p["T"]).reshape(n, B_MBD, C_MBD)
    diff = jnp.abs(m[:, None] - m[None, :]).sum(-1)               # (n, n, 10)
    mbd = jnp.exp(-diff).sum(1) - 1.0
    comb = jnp.concatenate([feats, mbd], axis=1)
    h = _leaky(comb @ p["Wf1"].T + p["bf1"])
    return h @ p["Wf2"].T + p["bf2"]


if __name__ == "__main__":
    key = jax.random.PRNGKey(0)
    pkey, xkey = jax.random.split(key)
    params = init_params(pkey)
    packed = prepare_params(params)

    # Input spatial dims are forced by the architecture (231 = 77*3 flattened feats):
    # H=128 (consumed by conv1 kernel height), W=16 -> 8 -> 3 columns.
    N = 4
    x = jax.random.normal(xkey, (N, 1, 128, 16), jnp.float32)

    fwd = jax.jit(discriminator_forward)
    out = fwd(x, packed)
    jax.block_until_ready(out)
    assert out.shape == (N, 1), out.shape

    ref = reference_forward(x, params)
    err = float(jnp.max(jnp.abs(out - ref)))
    assert err < 1e-3, f"mismatch vs reference: {err}"

    print("KERNEL_OK")
</pallas_src>

<mosaic_0001>
module attributes {stable_mosaic.version = 11 : i64} {
  func.func @_fused_disc_kernel(%arg0: memref<32x256xf32, #tpu.memory_space<vmem>>, %arg1: memref<256x128xf32, #tpu.memory_space<vmem>>, %arg2: memref<1x128xf32, #tpu.memory_space<vmem>>, %arg3: memref<512x128xf32, #tpu.memory_space<vmem>>, %arg4: memref<1x128xf32, #tpu.memory_space<vmem>>, %arg5: memref<384x128xf32, #tpu.memory_space<vmem>>, %arg6: memref<512x1024xf32, #tpu.memory_space<any>>, %arg7: memref<1x1024xf32, #tpu.memory_space<vmem>>, %arg8: memref<1x1024xf32, #tpu.memory_space<vmem>>, %arg9: memref<1x128xf32, #tpu.memory_space<vmem>>, %arg10: memref<4x128xf32, #tpu.memory_space<vmem>>, %arg11: memref<512x1024xf32, #tpu.memory_space<vmem>>, %arg12: memref<!tpu.dma_semaphore, #tpu.memory_space<semaphore_mem>>) attributes {dimension_semantics = [], scalar_prefetch = 0 : i64, scratch_operands = 2 : i64, tpu.core_type = #tpu.core_type<tc>} {
    tpu.enqueue_dma source(%arg6 : memref<512x1024xf32, #tpu.memory_space<any>>) target(%arg11 : memref<512x1024xf32, #tpu.memory_space<vmem>>) target_semaphore(%arg12 : memref<!tpu.dma_semaphore, #tpu.memory_space<semaphore_mem>>)
    %c0 = arith.constant 0 : index
    %c0_0 = arith.constant 0 : index
    %0 = vector.load %arg0[%c0, %c0_0] : memref<32x256xf32, #tpu.memory_space<vmem>>, vector<32x256xf32>
    %c0_1 = arith.constant 0 : index
    %c0_2 = arith.constant 0 : index
    %1 = vector.load %arg1[%c0_1, %c0_2] : memref<256x128xf32, #tpu.memory_space<vmem>>, vector<256x128xf32>
    %cst = arith.constant dense<0.000000e+00> : vector<32x128xf32>
    %2 = tpu.matmul %0, %1, %cst {dimension_numbers = #tpu.dot_dimension_numbers<[1], [0], [0], [1], [0, 0, 1, 1], [], []>} : vector<32x256xf32>, vector<256x128xf32>, vector<32x128xf32> -> vector<32x128xf32>
    %c0_3 = arith.constant 0 : index
    %c0_4 = arith.constant 0 : index
    %3 = vector.load %arg2[%c0_3, %c0_4] : memref<1x128xf32, #tpu.memory_space<vmem>>, vector<1x128xf32>
    %4 = vector.broadcast %3 : vector<1x128xf32> to vector<32x128xf32>
    %5 = arith.addf %2, %4 : vector<32x128xf32>
    %cst_5 = arith.constant 0.000000e+00 : f32
    %6 = vector.broadcast %cst_5 : f32 to vector<32x128xf32>
    %7 = arith.cmpf ogt, %5, %6 : vector<32x128xf32>
    %cst_6 = arith.constant 0.00999999977 : f32
    %8 = vector.broadcast %cst_6 : f32 to vector<32x128xf32>
    %9 = arith.mulf %8, %5 : vector<32x128xf32>
    %10 = arith.select %7, %5, %9 : vector<32x128xi1>, vector<32x128xf32>
    %11 = vector.extract_strided_slice %10 {offsets = [0, 0], sizes = [4, 128], strides = [1, 1]} : vector<32x128xf32> to vector<4x128xf32>
    %12 = vector.extract_strided_slice %10 {offsets = [4, 0], sizes = [4, 128], strides = [1, 1]} : vector<32x128xf32> to vector<4x128xf32>
    %13 = vector.extract_strided_slice %10 {offsets = [8, 0], sizes = [4, 128], strides = [1, 1]} : vector<32x128xf32> to vector<4x128xf32>
    %14 = vector.extract_strided_slice %10 {offsets = [12, 0], sizes = [4, 128], strides = [1, 1]} : vector<32x128xf32> to vector<4x128xf32>
    %15 = tpu.concatenate %11, %12, %13, %14 in 1 : vector<4x128xf32>, vector<4x128xf32>, vector<4x128xf32>, vector<4x128xf32> -> vector<4x512xf32>
    %c0_7 = arith.constant 0 : index
    %c0_8 = arith.constant 0 : index
    %16 = vector.load %arg3[%c0_7, %c0_8] : memref<512x128xf32, #tpu.memory_space<vmem>>, vector<512x128xf32>
    %cst_9 = arith.constant dense<0.000000e+00> : vector<4x128xf32>
    %17 = tpu.matmul %15, %16, %cst_9 {dimension_numbers = #tpu.dot_dimension_numbers<[1], [0], [0], [1], [0, 0, 1, 1], [], []>} : vector<4x512xf32>, vector<512x128xf32>, vector<4x128xf32> -> vector<4x128xf32>
    %c0_10 = arith.constant 0 : index
    %c0_11 = arith.constant 0 : index
    %18 = vector.load %arg4[%c0_10, %c0_11] : memref<1x128xf32, #tpu.memory_space<vmem>>, vector<1x128xf32>
    %19 = vector.broadcast %18 : vector<1x128xf32> to vector<4x128xf32>
    %20 = arith.addf %17, %19 : vector<4x128xf32>
    %cst_12 = arith.constant 0.000000e+00 : f32
    %21 = vector.broadcast %cst_12 : f32 to vector<4x128xf32>
    %22 = arith.cmpf ogt, %20, %21 : vector<4x128xf32>
    %cst_13 = arith.constant 0.00999999977 : f32
    %23 = vector.broadcast %cst_13 : f32 to vector<4x128xf32>
    %24 = arith.mulf %23, %20 : vector<4x128xf32>
    %25 = arith.select %22, %20, %24 : vector<4x128xi1>, vector<4x128xf32>
    %26 = vector.extract_strided_slice %10 {offsets = [8, 0], sizes = [4, 128], strides = [1, 1]} : vector<32x128xf32> to vector<4x128xf32>
    %27 = vector.extract_strided_slice %10 {offsets = [12, 0], sizes = [4, 128], strides = [1, 1]} : vector<32x128xf32> to vector<4x128xf32>
    %28 = vector.extract_strided_slice %10 {offsets = [16, 0], sizes = [4, 128], strides = [1, 1]} : vector<32x128xf32> to vector<4x128xf32>
    %29 = vector.extract_strided_slice %10 {offsets = [20, 0], sizes = [4, 128], strides = [1, 1]} : vector<32x128xf32> to vector<4x128xf32>
    %30 = tpu.concatenate %26, %27, %28, %29 in 1 : vector<4x128xf32>, vector<4x128xf32>, vector<4x128xf32>, vector<4x128xf32> -> vector<4x512xf32>
    %c0_14 = arith.constant 0 : index
    %c0_15 = arith.constant 0 : index
    %31 = vector.load %arg3[%c0_14, %c0_15] : memref<512x128xf32, #tpu.memory_space<vmem>>, vector<512x128xf32>
    %cst_16 = arith.constant dense<0.000000e+00> : vector<4x128xf32>
    %32 = tpu.matmul %30, %31, %cst_16 {dimension_numbers = #tpu.dot_dimension_numbers<[1], [0], [0], [1], [0, 0, 1, 1], [], []>} : vector<4x512xf32>, vector<512x128xf32>, vector<4x128xf32> -> vector<4x128xf32>
    %c0_17 = arith.constant 0 : index
    %c0_18 = arith.constant 0 : index
    %33 = vector.load %arg4[%c0_17, %c0_18] : memref<1x128xf32, #tpu.memory_space<vmem>>, vector<1x128xf32>
    %34 = vector.broadcast %33 : vector<1x128xf32> to vector<4x128xf32>
    %35 = arith.addf %32, %34 : vector<4x128xf32>
    %cst_19 = arith.constant 0.000000e+00 : f32
    %36 = vector.broadcast %cst_19 : f32 to vector<4x128xf32>
    %37 = arith.cmpf ogt, %35, %36 : vector<4x128xf32>
    %cst_20 = arith.constant 0.00999999977 : f32
    %38 = vector.broadcast %cst_20 : f32 to vector<4x128xf32>
    %39 = arith.mulf %38, %35 : vector<4x128xf32>
    %40 = arith.select %37, %35, %39 : vector<4x128xi1>, vector<4x128xf32>
    %41 = vector.extract_strided_slice %10 {offsets = [16, 0], sizes = [4, 128], strides = [1, 1]} : vector<32x128xf32> to vector<4x128xf32>
    %42 = vector.extract_strided_slice %10 {offsets = [20, 0], sizes = [4, 128], strides = [1, 1]} : vector<32x128xf32> to vector<4x128xf32>
    %43 = vector.extract_strided_slice %10 {offsets = [24, 0], sizes = [4, 128], strides = [1, 1]} : vector<32x128xf32> to vector<4x128xf32>
    %44 = vector.extract_strided_slice %10 {offsets = [28, 0], sizes = [4, 128], strides = [1, 1]} : vector<32x128xf32> to vector<4x128xf32>
    %45 = tpu.concatenate %41, %42, %43, %44 in 1 : vector<4x128xf32>, vector<4x128xf32>, vector<4x128xf32>, vector<4x128xf32> -> vector<4x512xf32>
    %c0_21 = arith.constant 0 : index
    %c0_22 = arith.constant 0 : index
    %46 = vector.load %arg3[%c0_21, %c0_22] : memref<512x128xf32, #tpu.memory_space<vmem>>, vector<512x128xf32>
    %cst_23 = arith.constant dense<0.000000e+00> : vector<4x128xf32>
    %47 = tpu.matmul %45, %46, %cst_23 {dimension_numbers = #tpu.dot_dimension_numbers<[1], [0], [0], [1], [0, 0, 1, 1], [], []>} : vector<4x512xf32>, vector<512x128xf32>, vector<4x128xf32> -> vector<4x128xf32>
    %c0_24 = arith.constant 0 : index
    %c0_25 = arith.constant 0 : index
    %48 = vector.load %arg4[%c0_24, %c0_25] : memref<1x128xf32, #tpu.memory_space<vmem>>, vector<1x128xf32>
    %49 = vector.broadcast %48 : vector<1x128xf32> to vector<4x128xf32>
    %50 = arith.addf %47, %49 : vector<4x128xf32>
    %cst_26 = arith.constant 0.000000e+00 : f32
    %51 = vector.broadcast %cst_26 : f32 to vector<4x128xf32>
    %52 = arith.cmpf ogt, %50, %51 : vector<4x128xf32>
    %cst_27 = arith.constant 0.00999999977 : f32
    %53 = vector.broadcast %cst_27 : f32 to vector<4x128xf32>
    %54 = arith.mulf %53, %50 : vector<4x128xf32>
    %55 = arith.select %52, %50, %54 : vector<4x128xi1>, vector<4x128xf32>
    %56 = tpu.concatenate %25, %40, %55 in 1 : vector<4x128xf32>, vector<4x128xf32>, vector<4x128xf32> -> vector<4x384xf32>
    %c0_28 = arith.constant 0 : index
    %c0_29 = arith.constant 0 : index
    %57 = vector.load %arg5[%c0_28, %c0_29] : memref<384x128xf32, #tpu.memory_space<vmem>>, vector<384x128xf32>
    %cst_30 = arith.constant dense<0.000000e+00> : vector<4x128xf32>
    %58 = tpu.matmul %56, %57, %cst_30 {dimension_numbers = #tpu.dot_dimension_numbers<[1], [0], [0], [1], [0, 0, 1, 1], [], []>} : vector<4x384xf32>, vector<384x128xf32>, vector<4x128xf32> -> vector<4x128xf32>
    %59 = tpu.iota {dimensions = array<i32: 0>} : vector<128x128xi32>
    %60 = tpu.iota {dimensions = array<i32: 1>} : vector<128x128xi32>
    %c5_i32 = arith.constant 5 : i32
    %61 = vector.broadcast %c5_i32 : i32 to vector<128x128xi32>
    %62 = arith.muli %60, %61 : vector<128x128xi32>
    %63 = arith.cmpi sge, %59, %62 : vector<128x128xi32>
    %c5_i32_31 = arith.constant 5 : i32
    %64 = vector.broadcast %c5_i32_31 : i32 to vector<128x128xi32>
    %65 = arith.addi %62, %64 : vector<128x128xi32>
    %66 = arith.cmpi slt, %59, %65 : vector<128x128xi32>
    %67 = arith.andi %63, %66 : vector<128x128xi1>
    %c10_i32 = arith.constant 10 : i32
    %68 = vector.broadcast %c10_i32 : i32 to vector<128x128xi32>
    %69 = arith.cmpi slt, %60, %68 : vector<128x128xi32>
    %70 = arith.andi %67, %69 : vector<128x128xi1>
    %71 = arith.extui %70 : vector<128x128xi1> to vector<128x128xi32>
    %72 = arith.sitofp %71 : vector<128x128xi32> to vector<128x128xf32>
    %73 = vector.extract_strided_slice %58 {offsets = [0, 0], sizes = [1, 128], strides = [1, 1]} : vector<4x128xf32> to vector<1x128xf32>
    %74 = vector.broadcast %73 : vector<1x128xf32> to vector<4x128xf32>
    %75 = arith.subf %58, %74 : vector<4x128xf32>
    %76 = math.absf %75 : vector<4x128xf32>
    %cst_32 = arith.constant dense<0.000000e+00> : vector<4x128xf32>
    %77 = tpu.matmul %76, %72, %cst_32 {dimension_numbers = #tpu.dot_dimension_numbers<[1], [0], [0], [1], [0, 0, 1, 1], [], []>} : vector<4x128xf32>, vector<128x128xf32>, vector<4x128xf32> -> vector<4x128xf32>
    %cst_33 = arith.constant 0.000000e+00 : f32
    %78 = vector.broadcast %cst_33 : f32 to vector<4x128xf32>
    %79 = arith.subf %78, %77 : vector<4x128xf32>
    %80 = math.exp %79 : vector<4x128xf32>
    %cst_34 = arith.constant dense<0.000000e+00> : vector<128xf32>
    %81 = vector.multi_reduction <add>, %80, %cst_34 [0] : vector<4x128xf32> to vector<128xf32>
    %82 = vector.shape_cast %81 : vector<128xf32> to vector<1x128xf32>
    %cst_35 = arith.constant 1.000000e+00 : f32
    %83 = vector.broadcast %cst_35 : f32 to vector<1x128xf32>
    %84 = arith.subf %82, %83 : vector<1x128xf32>
    %85 = vector.extract_strided_slice %58 {offsets = [1, 0], sizes = [1, 128], strides = [1, 1]} : vector<4x128xf32> to vector<1x128xf32>
    %86 = vector.broadcast %85 : vector<1x128xf32> to vector<4x128xf32>
    %87 = arith.subf %58, %86 : vector<4x128xf32>
    %88 = math.absf %87 : vector<4x128xf32>
    %cst_36 = arith.constant dense<0.000000e+00> : vector<4x128xf32>
    %89 = tpu.matmul %88, %72, %cst_36 {dimension_numbers = #tpu.dot_dimension_numbers<[1], [0], [0], [1], [0, 0, 1, 1], [], []>} : vector<4x128xf32>, vector<128x128xf32>, vector<4x128xf32> -> vector<4x128xf32>
    %cst_37 = arith.constant 0.000000e+00 : f32
    %90 = vector.broadcast %cst_37 : f32 to vector<4x128xf32>
    %91 = arith.subf %90, %89 : vector<4x128xf32>
    %92 = math.exp %91 : vector<4x128xf32>
    %cst_38 = arith.constant dense<0.000000e+00> : vector<128xf32>
    %93 = vector.multi_reduction <add>, %92, %cst_38 [0] : vector<4x128xf32> to vector<128xf32>
    %94 = vector.shape_cast %93 : vector<128xf32> to vector<1x128xf32>
    %cst_39 = arith.constant 1.000000e+00 : f32
    %95 = vector.broadcast %cst_39 : f32 to vector<1x128xf32>
    %96 = arith.subf %94, %95 : vector<1x128xf32>
    %97 = vector.extract_strided_slice %58 {offsets = [2, 0], sizes = [1, 128], strides = [1, 1]} : vector<4x128xf32> to vector<1x128xf32>
    %98 = vector.broadcast %97 : vector<1x128xf32> to vector<4x128xf32>
    %99 = arith.subf %58, %98 : vector<4x128xf32>
    %100 = math.absf %99 : vector<4x128xf32>
    %cst_40 = arith.constant dense<0.000000e+00> : vector<4x128xf32>
    %101 = tpu.matmul %100, %72, %cst_40 {dimension_numbers = #tpu.dot_dimension_numbers<[1], [0], [0], [1], [0, 0, 1, 1], [], []>} : vector<4x128xf32>, vector<128x128xf32>, vector<4x128xf32> -> vector<4x128xf32>
    %cst_41 = arith.constant 0.000000e+00 : f32
    %102 = vector.broadcast %cst_41 : f32 to vector<4x128xf32>
    %103 = arith.subf %102, %101 : vector<4x128xf32>
    %104 = math.exp %103 : vector<4x128xf32>
    %cst_42 = arith.constant dense<0.000000e+00> : vector<128xf32>
    %105 = vector.multi_reduction <add>, %104, %cst_42 [0] : vector<4x128xf32> to vector<128xf32>
    %106 = vector.shape_cast %105 : vector<128xf32> to vector<1x128xf32>
    %cst_43 = arith.constant 1.000000e+00 : f32
    %107 = vector.broadcast %cst_43 : f32 to vector<1x128xf32>
    %108 = arith.subf %106, %107 : vector<1x128xf32>
    %109 = vector.extract_strided_slice %58 {offsets = [3, 0], sizes = [1, 128], strides = [1, 1]} : vector<4x128xf32> to vector<1x128xf32>
    %110 = vector.broadcast %109 : vector<1x128xf32> to vector<4x128xf32>
    %111 = arith.subf %58, %110 : vector<4x128xf32>
    %112 = math.absf %111 : vector<4x128xf32>
    %cst_44 = arith.constant dense<0.000000e+00> : vector<4x128xf32>
    %113 = tpu.matmul %112, %72, %cst_44 {dimension_numbers = #tpu.dot_dimension_numbers<[1], [0], [0], [1], [0, 0, 1, 1], [], []>} : vector<4x128xf32>, vector<128x128xf32>, vector<4x128xf32> -> vector<4x128xf32>
    %cst_45 = arith.constant 0.000000e+00 : f32
    %114 = vector.broadcast %cst_45 : f32 to vector<4x128xf32>
    %115 = arith.subf %114, %113 : vector<4x128xf32>
    %116 = math.exp %115 : vector<4x128xf32>
    %cst_46 = arith.constant dense<0.000000e+00> : vector<128xf32>
    %117 = vector.multi_reduction <add>, %116, %cst_46 [0] : vector<4x128xf32> to vector<128xf32>
    %118 = vector.shape_cast %117 : vector<128xf32> to vector<1x128xf32>
    %cst_47 = arith.constant 1.000000e+00 : f32
    %119 = vector.broadcast %cst_47 : f32 to vector<1x128xf32>
    %120 = arith.subf %118, %119 : vector<1x128xf32>
    %121 = tpu.concatenate %84, %96, %108, %120 in 0 : vector<1x128xf32>, vector<1x128xf32>, vector<1x128xf32>, vector<1x128xf32> -> vector<4x128xf32>
    tpu.wait_dma2 semaphore(%arg12 : memref<!tpu.dma_semaphore, #tpu.memory_space<semaphore_mem>>) src(%arg6 : memref<512x1024xf32, #tpu.memory_space<any>>) dst(%arg11 : memref<512x1024xf32, #tpu.memory_space<vmem>>)
    %122 = tpu.concatenate %56, %121 in 1 : vector<4x384xf32>, vector<4x128xf32> -> vector<4x512xf32>
    %c0_48 = arith.constant 0 : index
    %c0_49 = arith.constant 0 : index
    %123 = vector.load %arg11[%c0_48, %c0_49] : memref<512x1024xf32, #tpu.memory_space<vmem>>, vector<512x1024xf32>
    %cst_50 = arith.constant dense<0.000000e+00> : vector<4x1024xf32>
    %124 = tpu.matmul %122, %123, %cst_50 {dimension_numbers = #tpu.dot_dimension_numbers<[1], [0], [0], [1], [0, 0, 1, 1], [], []>} : vector<4x512xf32>, vector<512x1024xf32>, vector<4x1024xf32> -> vector<4x1024xf32>
    %c0_51 = arith.constant 0 : index
    %c0_52 = arith.constant 0 : index
    %125 = vector.load %arg7[%c0_51, %c0_52] : memref<1x1024xf32, #tpu.memory_space<vmem>>, vector<1x1024xf32>
    %126 = vector.broadcast %125 : vector<1x1024xf32> to vector<4x1024xf32>
    %127 = arith.addf %124, %126 : vector<4x1024xf32>
    %cst_53 = arith.constant 0.000000e+00 : f32
    %128 = vector.broadcast %cst_53 : f32 to vector<4x1024xf32>
    %129 = arith.cmpf ogt, %127, %128 : vector<4x1024xf32>
    %cst_54 = arith.constant 0.00999999977 : f32
    %130 = vector.broadcast %cst_54 : f32 to vector<4x1024xf32>
    %131 = arith.mulf %130, %127 : vector<4x1024xf32>
    %132 = arith.select %129, %127, %131 : vector<4x1024xi1>, vector<4x1024xf32>
    %c0_55 = arith.constant 0 : index
    %c0_56 = arith.constant 0 : index
    %133 = vector.load %arg8[%c0_55, %c0_56] : memref<1x1024xf32, #tpu.memory_space<vmem>>, vector<1x1024xf32>
    %134 = vector.broadcast %133 : vector<1x1024xf32> to vector<4x1024xf32>
    %135 = arith.mulf %132, %134 : vector<4x1024xf32>
    %cst_57 = arith.constant dense<0.000000e+00> : vector<4xf32>
    %136 = vector.multi_reduction <add>, %135, %cst_57 [1] : vector<4x1024xf32> to vector<4xf32>
    %137 = vector.shape_cast %136 : vector<4xf32> to vector<4x1xf32>
    %138 = vector.shape_cast %137 : vector<4x1xf32> to vector<4x1xf32>
    %139 = vector.broadcast %138 : vector<4x1xf32> to vector<4x128xf32>
    %c0_58 = arith.constant 0 : index
    %c0_59 = arith.constant 0 : index
    %140 = vector.load %arg9[%c0_58, %c0_59] : memref<1x128xf32, #tpu.memory_space<vmem>>, vector<1x128xf32>
    %141 = vector.broadcast %140 : vector<1x128xf32> to vector<4x128xf32>
    %142 = arith.addf %139, %141 : vector<4x128xf32>
    %c0_60 = arith.constant 0 : index
    %c0_61 = arith.constant 0 : index
    %143 = vector.load %arg10[%c0_60, %c0_61] : memref<4x128xf32, #tpu.memory_space<vmem>>, vector<4x128xf32>
    tpu.vector_store %arg10[%c0_60, %c0_61], %142 {strides = array<i32>} : memref<4x128xf32, #tpu.memory_space<vmem>>, vector<4x128xf32>,
    return
  }
}

</mosaic_0001>

<bundles_post_ra>
// kernel: discriminator_forward.1
= control target key start
LH: loop header
LB: loop body
LE: loop exit
PB: predicated region body
PF: predicated region fallthrough
CT: control target
= control target key end

     0   :  { %15 = vsyncpa [#allocation5], 0  ;;  %s9200_s0 = inlined_call_operand.vmem [shape: f32[32,256], index: 0, kind: input, shape index: {}]   ;;  %s9201_s1 = inlined_call_operand.hbm [shape: f32[256,128], index: 1, kind: input, shape index: {}]   ;;  %s9202_s2 = inlined_call_operand.vmem [shape: f32[1,128], index: 2, kind: input, shape index: {}]   ;;  %s9203_s3 = inlined_call_operand.vmem [shape: f32[512,128], index: 3, kind: input, shape index: {}]   ;;  %s9204_s4 = inlined_call_operand.vmem [shape: f32[1,128], index: 4, kind: input, shape index: {}]   ;;  %s9205_s5 = inlined_call_operand.hbm [shape: f32[384,128], index: 5, kind: input, shape index: {}]   ;;  %s9206_s6 = inlined_call_operand.vmem [shape: f32[512,1024], index: 6, kind: input, shape index: {}]   ;;  %s9207_s7 = inlined_call_operand.vmem [shape: f32[1,1024], index: 7, kind: input, shape index: {}]   ;;  %s9208_s8 = inlined_call_operand.vmem [shape: f32[1,1024], index: 8, kind: input, shape index: {}]   ;;  %s9209_s9 = inlined_call_operand.vmem [shape: f32[1,128], index: 9, kind: input, shape index: {}]   ;;  %s9210_s10 = inlined_call_operand.vmem [shape: f32[4,128], index: 10, kind: output, shape index: {}]  }
   0x1   :  { %16 = vsyncpa [#allocation7], 0  ;;  %s5295_s13 = smov [#allocation4]   ;;  %s5245_s17 = scalar_lea.hbm %s9201_s1, 4096 }
   0x2   :  { %s24_s14 = sshll.u32 %s5295_s13, 4  ;;  %p5246_p0 = scmp.ne.s32.totalorder %s9201_s1, %s5245_s17  ;;  %s25_s14 = int_to_ptr.vmem [resolvable:$true] %s24_s14 }
   0x3   :  { %p5249_p1 = scmp.lt.u32.totalorder %s5245_s17, %s9201_s1 }
   0x5   :  { %p5251_p2 = pnand %p5249_p1, %p5246_p0 }
   0x7   :  { %5254 = shalt.err (!%p5251_p2)
}
   0x8   :  { %s5255_s22 = scalar_lea.vmem %s25_s14, 4096  ;;  %p5260_p4 = scmp.lt.s32.totalorder %s25_s14, %s25_s14 }
   0x9   :  { %p5256_p3 = scmp.ne.s32.totalorder %s25_s14, %s5255_s22  ;;  %p5261_p5 = scmp.lt.s32.totalorder %s5255_s22, %s5255_s22 }
   0xb   :  { %p5262_p6 = por %p5261_p5, %p5260_p4 }
   0xd   :  { %p5263_p7 = pnand %p5262_p6, %p5256_p3 }
   0xf   :  { %5266 = shalt.err (!%p5263_p7)
}
  0x10   :  { %s5296_s23 = smov 128   ;;  %s5297_s24 = smov 8  }
  0x11   :  { %30 = dma.hbm_to_vmem [thread:$0]  %s9201_s1, 4096, %s25_s14, [#allocation5], %s5296_s23, %s5296_s23, %s5297_s24  }
  0x12   :  { %s5298_s27 = smov [#allocation6]   ;;  %s5267_s11 = scalar_lea.hbm %s9205_s5, 6144 }
  0x13   :  { %s42_s28 = sshll.u32 %s5298_s27, 4  ;;  %p5268_p8 = scmp.ne.s32.totalorder %s9205_s5, %s5267_s11  ;;  %s43_s28 = int_to_ptr.vmem [resolvable:$true] %s42_s28 }
  0x14   :  { %p5271_p9 = scmp.lt.u32.totalorder %s5267_s11, %s9205_s5 }
  0x16   :  { %p5273_p10 = pnand %p5271_p9, %p5268_p8 }
  0x18   :  { %5276 = shalt.err (!%p5273_p10)
}
  0x19   :  { %s5277_s17 = scalar_lea.vmem %s43_s28, 6144  ;;  %p5282_p12 = scmp.lt.s32.totalorder %s43_s28, %s43_s28 }
  0x1a   :  { %p5278_p11 = scmp.ne.s32.totalorder %s43_s28, %s5277_s17  ;;  %p5283_p13 = scmp.lt.s32.totalorder %s5277_s17, %s5277_s17 }
  0x1c   :  { %p5284_p0 = por %p5283_p13, %p5282_p12 }
  0x1e   :  { %p5285_p1 = pnand %p5284_p0, %p5278_p11 }
  0x20   :  { %5288 = shalt.err (!%p5285_p1)
}
  0x21   :  { %48 = dma.hbm_to_vmem [thread:$0]  %s9205_s5, 6144, %s43_s28, [#allocation7], %s5296_s23, %s5296_s23, %s5297_s24  }
  0x22   :  { %5289 = dma.done.wait [#allocation5], 4096  }
  0x23   :  { %5290 = vsyncadd [#allocation5], 4294963200 }
  0x24   :  { %5291 = dma.done.wait [#allocation7], 6144  }
  0x25   :  { %5292 = vsyncadd [#allocation7], 4294961152  ;;  %v5385_v0 = vld [vmem:[%s9206_s6] sm:$0xff]  ;;  %v5390_v1 = vld [vmem:[%s9206_s6 + $0x8] sm:$0xff] }
  0x26   :  { %v5395_v2 = vld [vmem:[%s9206_s6 + $0x10] sm:$0xff]  ;;  %v5400_v3 = vld [vmem:[%s9206_s6 + $0x18] sm:$0xff]  ;;  %v5405_v4 = vld [vmem:[%s9206_s6 + $0x20] sm:$0xff] }
  0x27   :  { %9219 = vst [vmem:[#allocation12_spill] sm:$0xff] %v5405_v4  ;;  %v5410_v5 = vld [vmem:[%s9206_s6 + $0x28] sm:$0xff]  ;;  %v5415_v6 = vld [vmem:[%s9206_s6 + $0x30] sm:$0xff]  ;;  %v5420_v7 = vld [vmem:[%s9206_s6 + $0x38] sm:$0xff] }
  0x28   :  { %9220 = vst [vmem:[#allocation13_spill] sm:$0xff] %v5410_v5  ;;  %9221 = vst [vmem:[#allocation14_spill] sm:$0xff] %v5415_v6  ;;  %v5425_v8 = vld [vmem:[%s9206_s6 + $0x40] sm:$0xff]  ;;  %v5430_v9 = vld [vmem:[%s9206_s6 + $0x48] sm:$0xff] }
  0x29   :  { %9222 = vst [vmem:[#allocation15_spill] sm:$0xff] %v5420_v7  ;;  %v5435_v10 = vld [vmem:[%s9206_s6 + $0x50] sm:$0xff]  ;;  %v5440_v11 = vld [vmem:[%s9206_s6 + $0x58] sm:$0xff]  ;;  %v5445_v12 = vld [vmem:[%s9206_s6 + $0x60] sm:$0xff] }
  0x2a   :  { %9223 = vst [vmem:[#allocation16_spill] sm:$0xff] %v5445_v12  ;;  %v5450_v13 = vld [vmem:[%s9206_s6 + $0x68] sm:$0xff]  ;;  %v5455_v14 = vld [vmem:[%s9206_s6 + $0x70] sm:$0xff]  ;;  %v5460_v15 = vld [vmem:[%s9206_s6 + $0x78] sm:$0xff] }
  0x2b   :  { %9224 = vst [vmem:[#allocation17_spill] sm:$0xff] %v5450_v13  ;;  %9225 = vst [vmem:[#allocation18_spill] sm:$0xff] %v5455_v14  ;;  %v5465_v16 = vld [vmem:[%s9206_s6 + $0x80] sm:$0xff]  ;;  %v5470_v17 = vld [vmem:[%s9206_s6 + $0x88] sm:$0xff] }
  0x2c   :  { %9226 = vst [vmem:[#allocation19_spill] sm:$0xff] %v5460_v15  ;;  %v5475_v18 = vld [vmem:[%s9206_s6 + $0x90] sm:$0xff]  ;;  %v5480_v19 = vld [vmem:[%s9206_s6 + $0x98] sm:$0xff]  ;;  %v5485_v20 = vld [vmem:[%s9206_s6 + $0xa0] sm:$0xff] }
  0x2d   :  { %9227 = vst [vmem:[#allocation20_spill] sm:$0xff] %v5475_v18  ;;  %9228 = vst [vmem:[#allocation21_spill] sm:$0xff] %v5485_v20  ;;  %v5490_v21 = vld [vmem:[%s9206_s6 + $0xa8] sm:$0xff]  ;;  %v5495_v22 = vld [vmem:[%s9206_s6 + $0xb0] sm:$0xff] }
  0x2e   :  { %9229 = vst [vmem:[#allocation22_spill] sm:$0xff] %v5490_v21  ;;  %9230 = vst [vmem:[#allocation23_spill] sm:$0xff] %v5495_v22  ;;  %v5500_v23 = vld [vmem:[%s9206_s6 + $0xb8] sm:$0xff]  ;;  %v5505_v24 = vld [vmem:[%s9206_s6 + $0xc0] sm:$0xff] }
  0x2f   :  { %9231 = vst [vmem:[#allocation24_spill] sm:$0xff] %v5500_v23  ;;  %9232 = vst [vmem:[#allocation25_spill] sm:$0xff] %v5505_v24  ;;  %v5510_v25 = vld [vmem:[%s9206_s6 + $0xc8] sm:$0xff]  ;;  %v5515_v26 = vld [vmem:[%s9206_s6 + $0xd0] sm:$0xff] }
  0x30   :  { %9233 = vst [vmem:[#allocation26_spill] sm:$0xff] %v5515_v26  ;;  %v5520_v27 = vld [vmem:[%s9206_s6 + $0xd8] sm:$0xff]  ;;  %v5525_v28 = vld [vmem:[%s9206_s6 + $0xe0] sm:$0xff]  ;;  %v5530_v29 = vld [vmem:[%s9206_s6 + $0xe8] sm:$0xff] }
  0x31   :  { %9234 = vst [vmem:[#allocation27_spill] sm:$0xff] %v5525_v28  ;;  %9235 = vst [vmem:[#allocation28_spill] sm:$0xff] %v5530_v29  ;;  %v5535_v30 = vld [vmem:[%s9206_s6 + $0xf0] sm:$0xff]  ;;  %v5540_v31 = vld [vmem:[%s9206_s6 + $0xf8] sm:$0xff] }
  0x32   :  { %9236 = vst [vmem:[#allocation29_spill] sm:$0xff] %v5535_v30  ;;  %9237 = vst [vmem:[#allocation30_spill] sm:$0xff] %v5540_v31  ;;  %v5545_v32 = vld [vmem:[%s9206_s6 + $0x100] sm:$0xff]  ;;  %v5550_v33 = vld [vmem:[%s9206_s6 + $0x108] sm:$0xff] }
  0x33   :  { %9238 = vst [vmem:[#allocation31_spill] sm:$0xff] %v5545_v32  ;;  %9239 = vst [vmem:[#allocation32_spill] sm:$0xff] %v5550_v33  ;;  %v5555_v34 = vld [vmem:[%s9206_s6 + $0x110] sm:$0xff]  ;;  %v5560_v35 = vld [vmem:[%s9206_s6 + $0x118] sm:$0xff] }
  0x34   :  { %9240 = vst [vmem:[#allocation33_spill] sm:$0xff] %v5555_v34  ;;  %9241 = vst [vmem:[#allocation34_spill] sm:$0xff] %v5560_v35  ;;  %v5565_v36 = vld [vmem:[%s9206_s6 + $0x120] sm:$0xff]  ;;  %v5570_v37 = vld [vmem:[%s9206_s6 + $0x128] sm:$0xff] }
  0x35   :  { %9242 = vst [vmem:[#allocation35_spill] sm:$0xff] %v5565_v36  ;;  %9243 = vst [vmem:[#allocation36_spill] sm:$0xff] %v5570_v37  ;;  %v5575_v38 = vld [vmem:[%s9206_s6 + $0x130] sm:$0xff]  ;;  %v5580_v39 = vld [vmem:[%s9206_s6 + $0x138] sm:$0xff] }
  0x36   :  { %9244 = vst [vmem:[#allocation37_spill] sm:$0xff] %v5575_v38  ;;  %9245 = vst [vmem:[#allocation38_spill] sm:$0xff] %v5580_v39  ;;  %v5585_v40 = vld [vmem:[%s9206_s6 + $0x140] sm:$0xff]  ;;  %v5590_v41 = vld [vmem:[%s9206_s6 + $0x148] sm:$0xff] }
  0x37   :  { %9246 = vst [vmem:[#allocation39_spill] sm:$0xff] %v5585_v40  ;;  %9247 = vst [vmem:[#allocation40_spill] sm:$0xff] %v5590_v41  ;;  %v5595_v42 = vld [vmem:[%s9206_s6 + $0x150] sm:$0xff]  ;;  %v5600_v43 = vld [vmem:[%s9206_s6 + $0x158] sm:$0xff] }
  0x38   :  { %9248 = vst [vmem:[#allocation41_spill] sm:$0xff] %v5595_v42  ;;  %9249 = vst [vmem:[#allocation42_spill] sm:$0xff] %v5600_v43  ;;  %v5605_v44 = vld [vmem:[%s9206_s6 + $0x160] sm:$0xff]  ;;  %v5610_v45 = vld [vmem:[%s9206_s6 + $0x168] sm:$0xff] }
  0x39   :  { %9250 = vst [vmem:[#allocation43_spill] sm:$0xff] %v5605_v44  ;;  %9251 = vst [vmem:[#allocation44_spill] sm:$0xff] %v5610_v45  ;;  %v5615_v46 = vld [vmem:[%s9206_s6 + $0x170] sm:$0xff]  ;;  %v5620_v47 = vld [vmem:[%s9206_s6 + $0x178] sm:$0xff] }
  0x3a   :  { %9252 = vst [vmem:[#allocation45_spill] sm:$0xff] %v5615_v46  ;;  %9253 = vst [vmem:[#allocation46_spill] sm:$0xff] %v5620_v47  ;;  %v5625_v48 = vld [vmem:[%s9206_s6 + $0x180] sm:$0xff]  ;;  %v5630_v49 = vld [vmem:[%s9206_s6 + $0x188] sm:$0xff] }
  0x3b   :  { %9254 = vst [vmem:[#allocation47_spill] sm:$0xff] %v5625_v48  ;;  %9255 = vst [vmem:[#allocation48_spill] sm:$0xff] %v5630_v49  ;;  %v5635_v50 = vld [vmem:[%s9206_s6 + $0x190] sm:$0xff]  ;;  %v5640_v51 = vld [vmem:[%s9206_s6 + $0x198] sm:$0xff] }
  0x3c   :  { %9256 = vst [vmem:[#allocation49_spill] sm:$0xff] %v5635_v50  ;;  %9257 = vst [vmem:[#allocation50_spill] sm:$0xff] %v5640_v51  ;;  %v5645_v52 = vld [vmem:[%s9206_s6 + $0x1a0] sm:$0xff]  ;;  %v5650_v53 = vld [vmem:[%s9206_s6 + $0x1a8] sm:$0xff] }
  0x3d   :  { %9258 = vst [vmem:[#allocation51_spill] sm:$0xff] %v5645_v52  ;;  %9259 = vst [vmem:[#allocation52_spill] sm:$0xff] %v5650_v53  ;;  %v5655_v54 = vld [vmem:[%s9206_s6 + $0x1b0] sm:$0xff]  ;;  %v5660_v55 = vld [vmem:[%s9206_s6 + $0x1b8] sm:$0xff] }
  0x3e   :  { %9260 = vst [vmem:[#allocation53_spill] sm:$0xff] %v5655_v54  ;;  %9261 = vst [vmem:[#allocation54_spill] sm:$0xff] %v5660_v55  ;;  %v5665_v56 = vld [vmem:[%s9206_s6 + $0x1c0] sm:$0xff]  ;;  %v5670_v57 = vld [vmem:[%s9206_s6 + $0x1c8] sm:$0xff] }
  0x3f   :  { %9262 = vst [vmem:[#allocation55_spill] sm:$0xff] %v5665_v56  ;;  %9263 = vst [vmem:[#allocation56_spill] sm:$0xff] %v5670_v57  ;;  %v5675_v58 = vld [vmem:[%s9206_s6 + $0x1d0] sm:$0xff]  ;;  %v5680_v59 = vld [vmem:[%s9206_s6 + $0x1d8] sm:$0xff] }
  0x40   :  { %9264 = vst [vmem:[#allocation57_spill] sm:$0xff] %v5675_v58  ;;  %9265 = vst [vmem:[#allocation58_spill] sm:$0xff] %v5680_v59  ;;  %v5685_v60 = vld [vmem:[%s9206_s6 + $0x1e0] sm:$0xff]  ;;  %v5690_v61 = vld [vmem:[%s9206_s6 + $0x1e8] sm:$0xff] }
  0x41   :  { %9266 = vst [vmem:[#allocation59_spill] sm:$0xff] %v5685_v60  ;;  %9267 = vst [vmem:[#allocation60_spill] sm:$0xff] %v5690_v61  ;;  %v5695_v62 = vld [vmem:[%s9206_s6 + $0x1f0] sm:$0xff]  ;;  %v5700_v63 = vld [vmem:[%s9206_s6 + $0x1f8] sm:$0xff] }
  0x42   :  { %9268 = vst [vmem:[#allocation61_spill] sm:$0xff] %v5695_v62  ;;  %9269 = vst [vmem:[#allocation62_spill] sm:$0xff] %v5700_v63  ;;  %v5705_v54 = vld [vmem:[%s9206_s6 + $0x200] sm:$0xff]  ;;  %v5710_v60 = vld [vmem:[%s9206_s6 + $0x208] sm:$0xff] }
  0x43   :  { %9270 = vst [vmem:[#allocation63_spill] sm:$0xff] %v5705_v54  ;;  %9271 = vst [vmem:[#allocation64_spill] sm:$0xff] %v5710_v60  ;;  %v5715_v52 = vld [vmem:[%s9206_s6 + $0x210] sm:$0xff]  ;;  %v5720_v62 = vld [vmem:[%s9206_s6 + $0x218] sm:$0xff] }
  0x44   :  { %9272 = vst [vmem:[#allocation65_spill] sm:$0xff] %v5715_v52  ;;  %9273 = vst [vmem:[#allocation66_spill] sm:$0xff] %v5720_v62  ;;  %v5725_v63 = vld [vmem:[%s9206_s6 + $0x220] sm:$0xff]  ;;  %v5730_v55 = vld [vmem:[%s9206_s6 + $0x228] sm:$0xff] }
  0x45   :  { %9274 = vst [vmem:[#allocation67_spill] sm:$0xff] %v5725_v63  ;;  %9275 = vst [vmem:[#allocation68_spill] sm:$0xff] %v5730_v55  ;;  %v5735_v61 = vld [vmem:[%s9206_s6 + $0x230] sm:$0xff]  ;;  %v5740_v53 = vld [vmem:[%s9206_s6 + $0x238] sm:$0xff] }
  0x46   :  { %9276 = vst [vmem:[#allocation69_spill] sm:$0xff] %v5735_v61  ;;  %9277 = vst [vmem:[#allocation70_spill] sm:$0xff] %v5740_v53  ;;  %v5745_v46 = vld [vmem:[%s9206_s6 + $0x240] sm:$0xff]  ;;  %v5750_v63 = vld [vmem:[%s9206_s6 + $0x248] sm:$0xff] }
  0x47   :  { %9278 = vst [vmem:[#allocation71_spill] sm:$0xff] %v5745_v46  ;;  %9279 = vst [vmem:[#allocation72_spill] sm:$0xff] %v5750_v63  ;;  %v5755_v55 = vld [vmem:[%s9206_s6 + $0x250] sm:$0xff]  ;;  %v5760_v61 = vld [vmem:[%s9206_s6 + $0x258] sm:$0xff] }
  0x48   :  { %9280 = vst [vmem:[#allocation73_spill] sm:$0xff] %v5755_v55  ;;  %9281 = vst [vmem:[#allocation74_spill] sm:$0xff] %v5760_v61  ;;  %v5765_v53 = vld [vmem:[%s9206_s6 + $0x260] sm:$0xff]  ;;  %v5770_v38 = vld [vmem:[%s9206_s6 + $0x268] sm:$0xff] }
  0x49   :  { %9282 = vst [vmem:[#allocation75_spill] sm:$0xff] %v5765_v53  ;;  %9283 = vst [vmem:[#allocation76_spill] sm:$0xff] %v5770_v38  ;;  %v5775_v44 = vld [vmem:[%s9206_s6 + $0x270] sm:$0xff]  ;;  %v5780_v36 = vld [vmem:[%s9206_s6 + $0x278] sm:$0xff] }
  0x4a   :  { %9284 = vst [vmem:[#allocation77_spill] sm:$0xff] %v5775_v44  ;;  %9285 = vst [vmem:[#allocation78_spill] sm:$0xff] %v5780_v36  ;;  %v5785_v47 = vld [vmem:[%s9206_s6 + $0x280] sm:$0xff]  ;;  %v5790_v53 = vld [vmem:[%s9206_s6 + $0x288] sm:$0xff] }
  0x4b   :  { %9286 = vst [vmem:[#allocation79_spill] sm:$0xff] %v5785_v47  ;;  %9287 = vst [vmem:[#allocation80_spill] sm:$0xff] %v5790_v53  ;;  %v5795_v38 = vld [vmem:[%s9206_s6 + $0x290] sm:$0xff]  ;;  %v5800_v44 = vld [vmem:[%s9206_s6 + $0x298] sm:$0xff] }
  0x4c   :  { %9288 = vst [vmem:[#allocation81_spill] sm:$0xff] %v5795_v38  ;;  %9289 = vst [vmem:[#allocation82_spill] sm:$0xff] %v5800_v44  ;;  %v5805_v36 = vld [vmem:[%s9206_s6 + $0x2a0] sm:$0xff]  ;;  %v5810_v39 = vld [vmem:[%s9206_s6 + $0x2a8] sm:$0xff] }
  0x4d   :  { %9290 = vst [vmem:[#allocation83_spill] sm:$0xff] %v5805_v36  ;;  %9291 = vst [vmem:[#allocation84_spill] sm:$0xff] %v5810_v39  ;;  %v5815_v45 = vld [vmem:[%s9206_s6 + $0x2b0] sm:$0xff]  ;;  %v5820_v37 = vld [vmem:[%s9206_s6 + $0x2b8] sm:$0xff] }
  0x4e   :  { %9292 = vst [vmem:[#allocation85_spill] sm:$0xff] %v5815_v45  ;;  %9293 = vst [vmem:[#allocation86_spill] sm:$0xff] %v5820_v37  ;;  %v5825_v30 = vld [vmem:[%s9206_s6 + $0x2c0] sm:$0xff]  ;;  %v5830_v36 = vld [vmem:[%s9206_s6 + $0x2c8] sm:$0xff] }
  0x4f   :  { %9294 = vst [vmem:[#allocation87_spill] sm:$0xff] %v5825_v30  ;;  %9295 = vst [vmem:[#allocation88_spill] sm:$0xff] %v5830_v36  ;;  %v5835_v39 = vld [vmem:[%s9206_s6 + $0x2d0] sm:$0xff]  ;;  %v5840_v45 = vld [vmem:[%s9206_s6 + $0x2d8] sm:$0xff] }
  0x50   :  { %9296 = vst [vmem:[#allocation89_spill] sm:$0xff] %v5835_v39  ;;  %9297 = vst [vmem:[#allocation90_spill] sm:$0xff] %v5840_v45  ;;  %v5845_v37 = vld [vmem:[%s9206_s6 + $0x2e0] sm:$0xff]  ;;  %v5850_v22 = vld [vmem:[%s9206_s6 + $0x2e8] sm:$0xff] }
  0x51   :  { %9298 = vst [vmem:[#allocation91_spill] sm:$0xff] %v5845_v37  ;;  %9299 = vst [vmem:[#allocation92_spill] sm:$0xff] %v5850_v22  ;;  %v5855_v28 = vld [vmem:[%s9206_s6 + $0x2f0] sm:$0xff]  ;;  %v5860_v20 = vld [vmem:[%s9206_s6 + $0x2f8] sm:$0xff] }
  0x52   :  { %9300 = vst [vmem:[#allocation93_spill] sm:$0xff] %v5855_v28  ;;  %9301 = vst [vmem:[#allocation94_spill] sm:$0xff] %v5860_v20  ;;  %v5865_v31 = vld [vmem:[%s9206_s6 + $0x300] sm:$0xff]  ;;  %v5870_v37 = vld [vmem:[%s9206_s6 + $0x308] sm:$0xff] }
  0x53   :  { %9302 = vst [vmem:[#allocation95_spill] sm:$0xff] %v5865_v31  ;;  %9303 = vst [vmem:[#allocation96_spill] sm:$0xff] %v5870_v37  ;;  %v5875_v22 = vld [vmem:[%s9206_s6 + $0x310] sm:$0xff]  ;;  %v5880_v28 = vld [vmem:[%s9206_s6 + $0x318] sm:$0xff] }
  0x54   :  { %9304 = vst [vmem:[#allocation97_spill] sm:$0xff] %v5875_v22  ;;  %9305 = vst [vmem:[#allocation98_spill] sm:$0xff] %v5880_v28  ;;  %v5885_v20 = vld [vmem:[%s9206_s6 + $0x320] sm:$0xff]  ;;  %v5890_v23 = vld [vmem:[%s9206_s6 + $0x328] sm:$0xff] }
  0x55   :  { %9306 = vst [vmem:[#allocation99_spill] sm:$0xff] %v5885_v20  ;;  %9307 = vst [vmem:[#allocation100_spill] sm:$0xff] %v5890_v23  ;;  %v5895_v29 = vld [vmem:[%s9206_s6 + $0x330] sm:$0xff]  ;;  %v5900_v21 = vld [vmem:[%s9206_s6 + $0x338] sm:$0xff] }
  0x56   :  { %9308 = vst [vmem:[#allocation101_spill] sm:$0xff] %v5895_v29  ;;  %9309 = vst [vmem:[#allocation102_spill] sm:$0xff] %v5900_v21  ;;  %v5905_v14 = vld [vmem:[%s9206_s6 + $0x340] sm:$0xff]  ;;  %v5910_v20 = vld [vmem:[%s9206_s6 + $0x348] sm:$0xff] }
  0x57   :  { %9310 = vst [vmem:[#allocation103_spill] sm:$0xff] %v5905_v14  ;;  %9311 = vst [vmem:[#allocation104_spill] sm:$0xff] %v5910_v20  ;;  %v5915_v23 = vld [vmem:[%s9206_s6 + $0x350] sm:$0xff]  ;;  %v5920_v29 = vld [vmem:[%s9206_s6 + $0x358] sm:$0xff] }
  0x58   :  { %9312 = vst [vmem:[#allocation105_spill] sm:$0xff] %v5915_v23  ;;  %9313 = vst [vmem:[#allocation106_spill] sm:$0xff] %v5920_v29  ;;  %v5925_v21 = vld [vmem:[%s9206_s6 + $0x360] sm:$0xff]  ;;  %v5930_v6 = vld [vmem:[%s9206_s6 + $0x368] sm:$0xff] }
  0x59   :  { %9314 = vst [vmem:[#allocation107_spill] sm:$0xff] %v5925_v21  ;;  %9315 = vst [vmem:[#allocation108_spill] sm:$0xff] %v5930_v6  ;;  %v5935_v12 = vld [vmem:[%s9206_s6 + $0x370] sm:$0xff]  ;;  %v5940_v4 = vld [vmem:[%s9206_s6 + $0x378] sm:$0xff] }
  0x5a   :  { %9316 = vst [vmem:[#allocation109_spill] sm:$0xff] %v5935_v12  ;;  %9317 = vst [vmem:[#allocation110_spill] sm:$0xff] %v5940_v4  ;;  %v5945_v15 = vld [vmem:[%s9206_s6 + $0x380] sm:$0xff]  ;;  %v5950_v21 = vld [vmem:[%s9206_s6 + $0x388] sm:$0xff] }
  0x5b   :  { %9318 = vst [vmem:[#allocation111_spill] sm:$0xff] %v5945_v15  ;;  %9319 = vst [vmem:[#allocation112_spill] sm:$0xff] %v5950_v21  ;;  %v5955_v6 = vld [vmem:[%s9206_s6 + $0x390] sm:$0xff]  ;;  %v5960_v12 = vld [vmem:[%s9206_s6 + $0x398] sm:$0xff] }
  0x5c   :  { %9320 = vst [vmem:[#allocation113_spill] sm:$0xff] %v5955_v6  ;;  %9321 = vst [vmem:[#allocation114_spill] sm:$0xff] %v5960_v12  ;;  %v5965_v4 = vld [vmem:[%s9206_s6 + $0x3a0] sm:$0xff]  ;;  %v5970_v7 = vld [vmem:[%s9206_s6 + $0x3a8] sm:$0xff] }
  0x5d   :  { %9322 = vst [vmem:[#allocation115_spill] sm:$0xff] %v5965_v4  ;;  %9323 = vst [vmem:[#allocation116_spill] sm:$0xff] %v5970_v7  ;;  %v5975_v13 = vld [vmem:[%s9206_s6 + $0x3b0] sm:$0xff]  ;;  %v5980_v5 = vld [vmem:[%s9206_s6 + $0x3b8] sm:$0xff] }
  0x5e   :  { %9324 = vst [vmem:[#allocation117_spill] sm:$0xff] %v5975_v13  ;;  %9325 = vst [vmem:[#allocation118_spill] sm:$0xff] %v5980_v5  ;;  %v5985_v6 = vld [vmem:[%s9206_s6 + $0x3c0] sm:$0xff]  ;;  %v5990_v4 = vld [vmem:[%s9206_s6 + $0x3c8] sm:$0xff] }
  0x5f   :  { %9326 = vst [vmem:[#allocation119_spill] sm:$0xff] %v5985_v6  ;;  %9327 = vst [vmem:[#allocation120_spill] sm:$0xff] %v5990_v4  ;;  %v5995_v7 = vld [vmem:[%s9206_s6 + $0x3d0] sm:$0xff]  ;;  %v6000_v13 = vld [vmem:[%s9206_s6 + $0x3d8] sm:$0xff] }
  0x60   :  { %9328 = vst [vmem:[#allocation121_spill] sm:$0xff] %v5995_v7  ;;  %9329 = vst [vmem:[#allocation122_spill] sm:$0xff] %v6000_v13  ;;  %v6005_v5 = vld [vmem:[%s9206_s6 + $0x3e0] sm:$0xff]  ;;  %v6010_v6 = vld [vmem:[%s9206_s6 + $0x3e8] sm:$0xff] }
  0x61   :  { %9330 = vst [vmem:[#allocation123_spill] sm:$0xff] %v6005_v5  ;;  %9331 = vst [vmem:[#allocation124_spill] sm:$0xff] %v6010_v6  ;;  %v6015_v15 = vld [vmem:[%s9206_s6 + $0x3f0] sm:$0xff]  ;;  %v6020_v7 = vld [vmem:[%s9206_s6 + $0x3f8] sm:$0xff] }
  0x62   :  { %9332 = vst [vmem:[#allocation125_spill] sm:$0xff] %v6015_v15  ;;  %9333 = vst [vmem:[#allocation126_spill] sm:$0xff] %v6020_v7  ;;  %v6025_v13 = vld [vmem:[%s9206_s6 + $0x400] sm:$0xff]  ;;  %v6030_v5 = vld [vmem:[%s9206_s6 + $0x408] sm:$0xff] }
  0x63   :  { %9334 = vst [vmem:[#allocation127_spill] sm:$0xff] %v6025_v13  ;;  %9335 = vst [vmem:[#allocation128_spill] sm:$0xff] %v6030_v5  ;;  %v6035_v6 = vld [vmem:[%s9206_s6 + $0x410] sm:$0xff]  ;;  %v6040_v15 = vld [vmem:[%s9206_s6 + $0x418] sm:$0xff] }
  0x64   :  { %9336 = vst [vmem:[#allocation129_spill] sm:$0xff] %v6035_v6  ;;  %9337 = vst [vmem:[#allocation130_spill] sm:$0xff] %v6040_v15  ;;  %v6045_v7 = vld [vmem:[%s9206_s6 + $0x420] sm:$0xff]  ;;  %v6050_v13 = vld [vmem:[%s9206_s6 + $0x428] sm:$0xff] }
  0x65   :  { %9338 = vst [vmem:[#allocation131_spill] sm:$0xff] %v6045_v7  ;;  %9339 = vst [vmem:[#allocation132_spill] sm:$0xff] %v6050_v13  ;;  %v6055_v5 = vld [vmem:[%s9206_s6 + $0x430] sm:$0xff]  ;;  %v6060_v6 = vld [vmem:[%s9206_s6 + $0x438] sm:$0xff] }
  0x66   :  { %9340 = vst [vmem:[#allocation133_spill] sm:$0xff] %v6055_v5  ;;  %9341 = vst [vmem:[#allocation134_spill] sm:$0xff] %v6060_v6  ;;  %v6065_v15 = vld [vmem:[%s9206_s6 + $0x440] sm:$0xff]  ;;  %v6070_v7 = vld [vmem:[%s9206_s6 + $0x448] sm:$0xff] }
  0x67   :  { %9342 = vst [vmem:[#allocation135_spill] sm:$0xff] %v6065_v15  ;;  %9343 = vst [vmem:[#allocation136_spill] sm:$0xff] %v6070_v7  ;;  %v6075_v13 = vld [vmem:[%s9206_s6 + $0x450] sm:$0xff]  ;;  %v6080_v5 = vld [vmem:[%s9206_s6 + $0x458] sm:$0xff] }
  0x68   :  { %9344 = vst [vmem:[#allocation137_spill] sm:$0xff] %v6075_v13  ;;  %9345 = vst [vmem:[#allocation138_spill] sm:$0xff] %v6080_v5  ;;  %v6085_v6 = vld [vmem:[%s9206_s6 + $0x460] sm:$0xff]  ;;  %v6090_v15 = vld [vmem:[%s9206_s6 + $0x468] sm:$0xff] }
  0x69   :  { %9346 = vst [vmem:[#allocation139_spill] sm:$0xff] %v6085_v6  ;;  %9347 = vst [vmem:[#allocation140_spill] sm:$0xff] %v6090_v15  ;;  %v6095_v7 = vld [vmem:[%s9206_s6 + $0x470] sm:$0xff]  ;;  %v6100_v13 = vld [vmem:[%s9206_s6 + $0x478] sm:$0xff] }
  0x6a   :  { %9348 = vst [vmem:[#allocation141_spill] sm:$0xff] %v6095_v7  ;;  %9349 = vst [vmem:[#allocation142_spill] sm:$0xff] %v6100_v13  ;;  %v6105_v5 = vld [vmem:[%s9206_s6 + $0x480] sm:$0xff]  ;;  %v6110_v6 = vld [vmem:[%s9206_s6 + $0x488] sm:$0xff] }
  0x6b   :  { %9350 = vst [vmem:[#allocation143_spill] sm:$0xff] %v6105_v5  ;;  %9351 = vst [vmem:[#allocation144_spill] sm:$0xff] %v6110_v6  ;;  %v6115_v15 = vld [vmem:[%s9206_s6 + $0x490] sm:$0xff]  ;;  %v6120_v7 = vld [vmem:[%s9206_s6 + $0x498] sm:$0xff] }
  0x6c   :  { %9352 = vst [vmem:[#allocation145_spill] sm:$0xff] %v6115_v15  ;;  %9353 = vst [vmem:[#allocation146_spill] sm:$0xff] %v6120_v7  ;;  %v6125_v13 = vld [vmem:[%s9206_s6 + $0x4a0] sm:$0xff]  ;;  %v6130_v5 = vld [vmem:[%s9206_s6 + $0x4a8] sm:$0xff] }
  0x6d   :  { %9354 = vst [vmem:[#allocation147_spill] sm:$0xff] %v6125_v13  ;;  %9355 = vst [vmem:[#allocation148_spill] sm:$0xff] %v6130_v5  ;;  %v6135_v6 = vld [vmem:[%s9206_s6 + $0x4b0] sm:$0xff]  ;;  %v6140_v15 = vld [vmem:[%s9206_s6 + $0x4b8] sm:$0xff] }
  0x6e   :  { %9356 = vst [vmem:[#allocation149_spill] sm:$0xff] %v6135_v6  ;;  %9357 = vst [vmem:[#allocation150_spill] sm:$0xff] %v6140_v15  ;;  %v6145_v7 = vld [vmem:[%s9206_s6 + $0x4c0] sm:$0xff]  ;;  %v6150_v13 = vld [vmem:[%s9206_s6 + $0x4c8] sm:$0xff] }
  0x6f   :  { %9358 = vst [vmem:[#allocation151_spill] sm:$0xff] %v6145_v7  ;;  %9359 = vst [vmem:[#allocation152_spill] sm:$0xff] %v6150_v13  ;;  %v6155_v5 = vld [vmem:[%s9206_s6 + $0x4d0] sm:$0xff]  ;;  %v6160_v6 = vld [vmem:[%s9206_s6 + $0x4d8] sm:$0xff] }
  0x70   :  { %9360 = vst [vmem:[#allocation153_spill] sm:$0xff] %v6155_v5  ;;  %9361 = vst [vmem:[#allocation154_spill] sm:$0xff] %v6160_v6  ;;  %v6165_v15 = vld [vmem:[%s9206_s6 + $0x4e0] sm:$0xff]  ;;  %v6170_v7 = vld [vmem:[%s9206_s6 + $0x4e8] sm:$0xff] }
  0x71   :  { %9362 = vst [vmem:[#allocation155_spill] sm:$0xff] %v6165_v15  ;;  %9363 = vst [vmem:[#allocation156_spill] sm:$0xff] %v6170_v7  ;;  %v6175_v13 = vld [vmem:[%s9206_s6 + $0x4f0] sm:$0xff]  ;;  %v6180_v5 = vld [vmem:[%s9206_s6 + $0x4f8] sm:$0xff] }
  0x72   :  { %9364 = vst [vmem:[#allocation157_spill] sm:$0xff] %v6175_v13  ;;  %9365 = vst [vmem:[#allocation158_spill] sm:$0xff] %v6180_v5  ;;  %v6185_v6 = vld [vmem:[%s9206_s6 + $0x500] sm:$0xff]  ;;  %v6190_v15 = vld [vmem:[%s9206_s6 + $0x508] sm:$0xff] }
  0x73   :  { %9366 = vst [vmem:[#allocation159_spill] sm:$0xff] %v6185_v6  ;;  %9367 = vst [vmem:[#allocation160_spill] sm:$0xff] %v6190_v15  ;;  %v6195_v7 = vld [vmem:[%s9206_s6 + $0x510] sm:$0xff]  ;;  %v6200_v13 = vld [vmem:[%s9206_s6 + $0x518] sm:$0xff] }
  0x74   :  { %9368 = vst [vmem:[#allocation161_spill] sm:$0xff] %v6195_v7  ;;  %9369 = vst [vmem:[#allocation162_spill] sm:$0xff] %v6200_v13  ;;  %v6205_v5 = vld [vmem:[%s9206_s6 + $0x520] sm:$0xff]  ;;  %v6210_v6 = vld [vmem:[%s9206_s6 + $0x528] sm:$0xff] }
  0x75   :  { %9370 = vst [vmem:[#allocation163_spill] sm:$0xff] %v6205_v5  ;;  %9371 = vst [vmem:[#allocation164_spill] sm:$0xff] %v6210_v6  ;;  %v6215_v15 = vld [vmem:[%s9206_s6 + $0x530] sm:$0xff]  ;;  %v6220_v7 = vld [vmem:[%s9206_s6 + $0x538] sm:$0xff] }
  0x76   :  { %9372 = vst [vmem:[#allocation165_spill] sm:$0xff] %v6215_v15  ;;  %9373 = vst [vmem:[#allocation166_spill] sm:$0xff] %v6220_v7  ;;  %v6225_v13 = vld [vmem:[%s9206_s6 + $0x540] sm:$0xff]  ;;  %v6230_v5 = vld [vmem:[%s9206_s6 + $0x548] sm:$0xff] }
  0x77   :  { %9374 = vst [vmem:[#allocation167_spill] sm:$0xff] %v6225_v13  ;;  %9375 = vst [vmem:[#allocation168_spill] sm:$0xff] %v6230_v5  ;;  %v6235_v6 = vld [vmem:[%s9206_s6 + $0x550] sm:$0xff]  ;;  %v6240_v15 = vld [vmem:[%s9206_s6 + $0x558] sm:$0xff] }
  0x78   :  { %9376 = vst [vmem:[#allocation169_spill] sm:$0xff] %v6235_v6  ;;  %9377 = vst [vmem:[#allocation170_spill] sm:$0xff] %v6240_v15  ;;  %v6245_v7 = vld [vmem:[%s9206_s6 + $0x560] sm:$0xff]  ;;  %v6250_v13 = vld [vmem:[%s9206_s6 + $0x568] sm:$0xff] }
  0x79   :  { %9378 = vst [vmem:[#allocation171_spill] sm:$0xff] %v6245_v7  ;;  %9379 = vst [vmem:[#allocation172_spill] sm:$0xff] %v6250_v13  ;;  %v6255_v5 = vld [vmem:[%s9206_s6 + $0x570] sm:$0xff]  ;;  %v6260_v6 = vld [vmem:[%s9206_s6 + $0x578] sm:$0xff] }
  0x7a   :  { %9380 = vst [vmem:[#allocation173_spill] sm:$0xff] %v6255_v5  ;;  %9381 = vst [vmem:[#allocation174_spill] sm:$0xff] %v6260_v6  ;;  %v6265_v15 = vld [vmem:[%s9206_s6 + $0x580] sm:$0xff]  ;;  %v6270_v7 = vld [vmem:[%s9206_s6 + $0x588] sm:$0xff] }
  0x7b   :  { %9382 = vst [vmem:[#allocation175_spill] sm:$0xff] %v6265_v15  ;;  %9383 = vst [vmem:[#allocation176_spill] sm:$0xff] %v6270_v7  ;;  %v6275_v13 = vld [vmem:[%s9206_s6 + $0x590] sm:$0xff]  ;;  %v6280_v5 = vld [vmem:[%s9206_s6 + $0x598] sm:$0xff] }
  0x7c   :  { %9384 = vst [vmem:[#allocation177_spill] sm:$0xff] %v6275_v13  ;;  %9385 = vst [vmem:[#allocation178_spill] sm:$0xff] %v6280_v5  ;;  %v6285_v6 = vld [vmem:[%s9206_s6 + $0x5a0] sm:$0xff]  ;;  %v6290_v15 = vld [vmem:[%s9206_s6 + $0x5a8] sm:$0xff] }
  0x7d   :  { %9386 = vst [vmem:[#allocation179_spill] sm:$0xff] %v6285_v6  ;;  %9387 = vst [vmem:[#allocation180_spill] sm:$0xff] %v6290_v15  ;;  %v6295_v7 = vld [vmem:[%s9206_s6 + $0x5b0] sm:$0xff]  ;;  %v6300_v13 = vld [vmem:[%s9206_s6 + $0x5b8] sm:$0xff] }
  0x7e   :  { %9388 = vst [vmem:[#allocation181_spill] sm:$0xff] %v6295_v7  ;;  %9389 = vst [vmem:[#allocation182_spill] sm:$0xff] %v6300_v13  ;;  %v6305_v5 = vld [vmem:[%s9206_s6 + $0x5c0] sm:$0xff]  ;;  %v6310_v6 = vld [vmem:[%s9206_s6 + $0x5c8] sm:$0xff] }
  0x7f   :  { %9390 = vst [vmem:[#allocation183_spill] sm:$0xff] %v6305_v5  ;;  %9391 = vst [vmem:[#allocation184_spill] sm:$0xff] %v6310_v6  ;;  %v6315_v15 = vld [vmem:[%s9206_s6 + $0x5d0] sm:$0xff]  ;;  %v6320_v7 = vld [vmem:[%s9206_s6 + $0x5d8] sm:$0xff] }
  0x80   :  { %9392 = vst [vmem:[#allocation185_spill] sm:$0xff] %v6315_v15  ;;  %9393 = vst [vmem:[#allocation186_spill] sm:$0xff] %v6320_v7  ;;  %v6325_v13 = vld [vmem:[%s9206_s6 + $0x5e0] sm:$0xff]  ;;  %v6330_v5 = vld [vmem:[%s9206_s6 + $0x5e8] sm:$0xff] }
  0x81   :  { %9394 = vst [vmem:[#allocation187_spill] sm:$0xff] %v6325_v13  ;;  %9395 = vst [vmem:[#allocation188_spill] sm:$0xff] %v6330_v5  ;;  %v6335_v6 = vld [vmem:[%s9206_s6 + $0x5f0] sm:$0xff]  ;;  %v6340_v15 = vld [vmem:[%s9206_s6 + $0x5f8] sm:$0xff] }
  0x82   :  { %9396 = vst [vmem:[#allocation189_spill] sm:$0xff] %v6335_v6  ;;  %9397 = vst [vmem:[#allocation190_spill] sm:$0xff] %v6340_v15  ;;  %v6345_v7 = vld [vmem:[%s9206_s6 + $0x600] sm:$0xff]  ;;  %v6350_v13 = vld [vmem:[%s9206_s6 + $0x608] sm:$0xff] }
  0x83   :  { %9398 = vst [vmem:[#allocation191_spill] sm:$0xff] %v6345_v7  ;;  %9399 = vst [vmem:[#allocation192_spill] sm:$0xff] %v6350_v13  ;;  %v6355_v5 = vld [vmem:[%s9206_s6 + $0x610] sm:$0xff]  ;;  %v6360_v6 = vld [vmem:[%s9206_s6 + $0x618] sm:$0xff] }
  0x84   :  { %9400 = vst [vmem:[#allocation193_spill] sm:$0xff] %v6355_v5  ;;  %9401 = vst [vmem:[#allocation194_spill] sm:$0xff] %v6360_v6  ;;  %v6365_v15 = vld [vmem:[%s9206_s6 + $0x620] sm:$0xff]  ;;  %v6370_v7 = vld [vmem:[%s9206_s6 + $0x628] sm:$0xff] }
  0x85   :  { %9402 = vst [vmem:[#allocation195_spill] sm:$0xff] %v6365_v15  ;;  %9403 = vst [vmem:[#allocation196_spill] sm:$0xff] %v6370_v7  ;;  %v6375_v13 = vld [vmem:[%s9206_s6 + $0x630] sm:$0xff]  ;;  %v6380_v5 = vld [vmem:[%s9206_s6 + $0x638] sm:$0xff] }
  0x86   :  { %9404 = vst [vmem:[#allocation197_spill] sm:$0xff] %v6375_v13  ;;  %9405 = vst [vmem:[#allocation198_spill] sm:$0xff] %v6380_v5  ;;  %v6385_v6 = vld [vmem:[%s9206_s6 + $0x640] sm:$0xff]  ;;  %v6390_v15 = vld [vmem:[%s9206_s6 + $0x648] sm:$0xff] }
  0x87   :  { %9406 = vst [vmem:[#allocation199_spill] sm:$0xff] %v6385_v6  ;;  %9407 = vst [vmem:[#allocation200_spill] sm:$0xff] %v6390_v15  ;;  %v6395_v7 = vld [vmem:[%s9206_s6 + $0x650] sm:$0xff]  ;;  %v6400_v13 = vld [vmem:[%s9206_s6 + $0x658] sm:$0xff] }
  0x88   :  { %9408 = vst [vmem:[#allocation201_spill] sm:$0xff] %v6395_v7  ;;  %9409 = vst [vmem:[#allocation202_spill] sm:$0xff] %v6400_v13  ;;  %v6405_v5 = vld [vmem:[%s9206_s6 + $0x660] sm:$0xff]  ;;  %v6410_v6 = vld [vmem:[%s9206_s6 + $0x668] sm:$0xff] }
  0x89   :  { %9410 = vst [vmem:[#allocation203_spill] sm:$0xff] %v6405_v5  ;;  %9411 = vst [vmem:[#allocation204_spill] sm:$0xff] %v6410_v6  ;;  %v6415_v15 = vld [vmem:[%s9206_s6 + $0x670] sm:$0xff]  ;;  %v6420_v7 = vld [vmem:[%s9206_s6 + $0x678] sm:$0xff] }
  0x8a   :  { %9412 = vst [vmem:[#allocation205_spill] sm:$0xff] %v6415_v15  ;;  %9413 = vst [vmem:[#allocation206_spill] sm:$0xff] %v6420_v7  ;;  %v6425_v13 = vld [vmem:[%s9206_s6 + $0x680] sm:$0xff]  ;;  %v6430_v5 = vld [vmem:[%s9206_s6 + $0x688] sm:$0xff] }
  0x8b   :  { %9414 = vst [vmem:[#allocation207_spill] sm:$0xff] %v6425_v13  ;;  %9415 = vst [vmem:[#allocation208_spill] sm:$0xff] %v6430_v5  ;;  %v6435_v6 = vld [vmem:[%s9206_s6 + $0x690] sm:$0xff]  ;;  %v6440_v15 = vld [vmem:[%s9206_s6 + $0x698] sm:$0xff] }
  0x8c   :  { %9416 = vst [vmem:[#allocation209_spill] sm:$0xff] %v6435_v6  ;;  %9417 = vst [vmem:[#allocation210_spill] sm:$0xff] %v6440_v15  ;;  %v6445_v7 = vld [vmem:[%s9206_s6 + $0x6a0] sm:$0xff]  ;;  %v6450_v13 = vld [vmem:[%s9206_s6 + $0x6a8] sm:$0xff] }
  0x8d   :  { %9418 = vst [vmem:[#allocation211_spill] sm:$0xff] %v6445_v7  ;;  %9419 = vst [vmem:[#allocation212_spill] sm:$0xff] %v6450_v13  ;;  %v6455_v5 = vld [vmem:[%s9206_s6 + $0x6b0] sm:$0xff]  ;;  %v6460_v6 = vld [vmem:[%s9206_s6 + $0x6b8] sm:$0xff] }
  0x8e   :  { %9420 = vst [vmem:[#allocation213_spill] sm:$0xff] %v6455_v5  ;;  %9421 = vst [vmem:[#allocation214_spill] sm:$0xff] %v6460_v6  ;;  %v6465_v15 = vld [vmem:[%s9206_s6 + $0x6c0] sm:$0xff]  ;;  %v6470_v7 = vld [vmem:[%s9206_s6 + $0x6c8] sm:$0xff] }
  0x8f   :  { %9422 = vst [vmem:[#allocation215_spill] sm:$0xff] %v6465_v15  ;;  %9423 = vst [vmem:[#allocation216_spill] sm:$0xff] %v6470_v7  ;;  %v6475_v13 = vld [vmem:[%s9206_s6 + $0x6d0] sm:$0xff]  ;;  %v6480_v5 = vld [vmem:[%s9206_s6 + $0x6d8] sm:$0xff] }
  0x90   :  { %9424 = vst [vmem:[#allocation217_spill] sm:$0xff] %v6475_v13  ;;  %9425 = vst [vmem:[#allocation218_spill] sm:$0xff] %v6480_v5  ;;  %v6485_v6 = vld [vmem:[%s9206_s6 + $0x6e0] sm:$0xff]  ;;  %v6490_v15 = vld [vmem:[%s9206_s6 + $0x6e8] sm:$0xff] }
  0x91   :  { %9426 = vst [vmem:[#allocation219_spill] sm:$0xff] %v6485_v6  ;;  %9427 = vst [vmem:[#allocation220_spill] sm:$0xff] %v6490_v15  ;;  %v6495_v7 = vld [vmem:[%s9206_s6 + $0x6f0] sm:$0xff]  ;;  %v6500_v13 = vld [vmem:[%s9206_s6 + $0x6f8] sm:$0xff] }
  0x92   :  { %9428 = vst [vmem:[#allocation221_spill] sm:$0xff] %v6495_v7  ;;  %9429 = vst [vmem:[#allocation222_spill] sm:$0xff] %v6500_v13  ;;  %v6505_v5 = vld [vmem:[%s9206_s6 + $0x700] sm:$0xff]  ;;  %v6510_v6 = vld [vmem:[%s9206_s6 + $0x708] sm:$0xff] }
  0x93   :  { %9430 = vst [vmem:[#allocation223_spill] sm:$0xff] %v6505_v5  ;;  %9431 = vst [vmem:[#allocation224_spill] sm:$0xff] %v6510_v6  ;;  %v6515_v15 = vld [vmem:[%s9206_s6 + $0x710] sm:$0xff]  ;;  %v6520_v7 = vld [vmem:[%s9206_s6 + $0x718] sm:$0xff] }
  0x94   :  { %9432 = vst [vmem:[#allocation225_spill] sm:$0xff] %v6515_v15  ;;  %9433 = vst [vmem:[#allocation226_spill] sm:$0xff] %v6520_v7  ;;  %v6525_v13 = vld [vmem:[%s9206_s6 + $0x720] sm:$0xff]  ;;  %v6530_v5 = vld [vmem:[%s9206_s6 + $0x728] sm:$0xff] }
  0x95   :  { %9434 = vst [vmem:[#allocation227_spill] sm:$0xff] %v6525_v13  ;;  %9435 = vst [vmem:[#allocation228_spill] sm:$0xff] %v6530_v5  ;;  %v6535_v6 = vld [vmem:[%s9206_s6 + $0x730] sm:$0xff]  ;;  %v6540_v15 = vld [vmem:[%s9206_s6 + $0x738] sm:$0xff] }
  0x96   :  { %9436 = vst [vmem:[#allocation229_spill] sm:$0xff] %v6535_v6  ;;  %9437 = vst [vmem:[#allocation230_spill] sm:$0xff] %v6540_v15  ;;  %v6545_v7 = vld [vmem:[%s9206_s6 + $0x740] sm:$0xff]  ;;  %v6550_v13 = vld [vmem:[%s9206_s6 + $0x748] sm:$0xff] }
  0x97   :  { %9438 = vst [vmem:[#allocation231_spill] sm:$0xff] %v6545_v7  ;;  %9439 = vst [vmem:[#allocation232_spill] sm:$0xff] %v6550_v13  ;;  %v6555_v5 = vld [vmem:[%s9206_s6 + $0x750] sm:$0xff]  ;;  %v6560_v6 = vld [vmem:[%s9206_s6 + $0x758] sm:$0xff] }
  0x98   :  { %9440 = vst [vmem:[#allocation233_spill] sm:$0xff] %v6555_v5  ;;  %9441 = vst [vmem:[#allocation234_spill] sm:$0xff] %v6560_v6  ;;  %v6565_v15 = vld [vmem:[%s9206_s6 + $0x760] sm:$0xff]  ;;  %v6570_v7 = vld [vmem:[%s9206_s6 + $0x768] sm:$0xff] }
  0x99   :  { %9442 = vst [vmem:[#allocation235_spill] sm:$0xff] %v6565_v15  ;;  %9443 = vst [vmem:[#allocation236_spill] sm:$0xff] %v6570_v7  ;;  %v6575_v13 = vld [vmem:[%s9206_s6 + $0x770] sm:$0xff]  ;;  %v6580_v5 = vld [vmem:[%s9206_s6 + $0x778] sm:$0xff] }
  0x9a   :  { %9444 = vst [vmem:[#allocation237_spill] sm:$0xff] %v6575_v13  ;;  %9445 = vst [vmem:[#allocation238_spill] sm:$0xff] %v6580_v5  ;;  %v6585_v6 = vld [vmem:[%s9206_s6 + $0x780] sm:$0xff]  ;;  %v6590_v15 = vld [vmem:[%s9206_s6 + $0x788] sm:$0xff] }
  0x9b   :  { %9446 = vst [vmem:[#allocation239_spill] sm:$0xff] %v6585_v6  ;;  %9447 = vst [vmem:[#allocation240_spill] sm:$0xff] %v6590_v15  ;;  %v6595_v7 = vld [vmem:[%s9206_s6 + $0x790] sm:$0xff]  ;;  %v6600_v13 = vld [vmem:[%s9206_s6 + $0x798] sm:$0xff] }
  0x9c   :  { %9448 = vst [vmem:[#allocation241_spill] sm:$0xff] %v6595_v7  ;;  %9449 = vst [vmem:[#allocation242_spill] sm:$0xff] %v6600_v13  ;;  %v6605_v5 = vld [vmem:[%s9206_s6 + $0x7a0] sm:$0xff]  ;;  %v6610_v6 = vld [vmem:[%s9206_s6 + $0x7a8] sm:$0xff] }
  0x9d   :  { %9450 = vst [vmem:[#allocation243_spill] sm:$0xff] %v6605_v5  ;;  %9451 = vst [vmem:[#allocation244_spill] sm:$0xff] %v6610_v6  ;;  %v6615_v15 = vld [vmem:[%s9206_s6 + $0x7b0] sm:$0xff]  ;;  %v6620_v7 = vld [vmem:[%s9206_s6 + $0x7b8] sm:$0xff] }
  0x9e   :  { %9452 = vst [vmem:[#allocation245_spill] sm:$0xff] %v6615_v15  ;;  %9453 = vst [vmem:[#allocation246_spill] sm:$0xff] %v6620_v7  ;;  %v6625_v13 = vld [vmem:[%s9206_s6 + $0x7c0] sm:$0xff]  ;;  %v6630_v5 = vld [vmem:[%s9206_s6 + $0x7c8] sm:$0xff] }
  0x9f   :  { %9454 = vst [vmem:[#allocation247_spill] sm:$0xff] %v6625_v13  ;;  %9455 = vst [vmem:[#allocation248_spill] sm:$0xff] %v6630_v5  ;;  %v6635_v6 = vld [vmem:[%s9206_s6 + $0x7d0] sm:$0xff]  ;;  %v6640_v15 = vld [vmem:[%s9206_s6 + $0x7d8] sm:$0xff] }
  0xa0   :  { %9456 = vst [vmem:[#allocation249_spill] sm:$0xff] %v6635_v6  ;;  %9457 = vst [vmem:[#allocation250_spill] sm:$0xff] %v6640_v15  ;;  %v6645_v7 = vld [vmem:[%s9206_s6 + $0x7e0] sm:$0xff]  ;;  %v6650_v13 = vld [vmem:[%s9206_s6 + $0x7e8] sm:$0xff] }
  0xa1   :  { %9458 = vst [vmem:[#allocation251_spill] sm:$0xff] %v6645_v7  ;;  %9459 = vst [vmem:[#allocation252_spill] sm:$0xff] %v6650_v13  ;;  %v6655_v5 = vld [vmem:[%s9206_s6 + $0x7f0] sm:$0xff]  ;;  %v6660_v6 = vld [vmem:[%s9206_s6 + $0x7f8] sm:$0xff] }
  0xa2   :  { %9460 = vst [vmem:[#allocation253_spill] sm:$0xff] %v6655_v5  ;;  %9461 = vst [vmem:[#allocation254_spill] sm:$0xff] %v6660_v6  ;;  %v6665_v15 = vld [vmem:[%s9206_s6 + $0x800] sm:$0xff]  ;;  %v6670_v7 = vld [vmem:[%s9206_s6 + $0x808] sm:$0xff] }
  0xa3   :  { %9462 = vst [vmem:[#allocation255_spill] sm:$0xff] %v6665_v15  ;;  %9463 = vst [vmem:[#allocation256_spill] sm:$0xff] %v6670_v7  ;;  %v6675_v13 = vld [vmem:[%s9206_s6 + $0x810] sm:$0xff]  ;;  %v6680_v5 = vld [vmem:[%s9206_s6 + $0x818] sm:$0xff] }
  0xa4   :  { %9464 = vst [vmem:[#allocation257_spill] sm:$0xff] %v6675_v13  ;;  %9465 = vst [vmem:[#allocation258_spill] sm:$0xff] %v6680_v5  ;;  %v6685_v6 = vld [vmem:[%s9206_s6 + $0x820] sm:$0xff]  ;;  %v6690_v15 = vld [vmem:[%s9206_s6 + $0x828] sm:$0xff] }
  0xa5   :  { %9466 = vst [vmem:[#allocation259_spill] sm:$0xff] %v6685_v6  ;;  %9467 = vst [vmem:[#allocation260_spill] sm:$0xff] %v6690_v15  ;;  %v6695_v7 = vld [vmem:[%s9206_s6 + $0x830] sm:$0xff]  ;;  %v6700_v13 = vld [vmem:[%s9206_s6 + $0x838] sm:$0xff] }
  0xa6   :  { %9468 = vst [vmem:[#allocation261_spill] sm:$0xff] %v6695_v7  ;;  %9469 = vst [vmem:[#allocation262_spill] sm:$0xff] %v6700_v13  ;;  %v6705_v5 = vld [vmem:[%s9206_s6 + $0x840] sm:$0xff]  ;;  %v6710_v6 = vld [vmem:[%s9206_s6 + $0x848] sm:$0xff] }
  0xa7   :  { %9470 = vst [vmem:[#allocation263_spill] sm:$0xff] %v6705_v5  ;;  %9471 = vst [vmem:[#allocation264_spill] sm:$0xff] %v6710_v6  ;;  %v6715_v15 = vld [vmem:[%s9206_s6 + $0x850] sm:$0xff]  ;;  %v6720_v7 = vld [vmem:[%s9206_s6 + $0x858] sm:$0xff] }
  0xa8   :  { %9472 = vst [vmem:[#allocation265_spill] sm:$0xff] %v6715_v15  ;;  %9473 = vst [vmem:[#allocation266_spill] sm:$0xff] %v6720_v7  ;;  %v6725_v13 = vld [vmem:[%s9206_s6 + $0x860] sm:$0xff]  ;;  %v6730_v5 = vld [vmem:[%s9206_s6 + $0x868] sm:$0xff] }
  0xa9   :  { %9474 = vst [vmem:[#allocation267_spill] sm:$0xff] %v6725_v13  ;;  %9475 = vst [vmem:[#allocation268_spill] sm:$0xff] %v6730_v5  ;;  %v6735_v6 = vld [vmem:[%s9206_s6 + $0x870] sm:$0xff]  ;;  %v6740_v15 = vld [vmem:[%s9206_s6 + $0x878] sm:$0xff] }
  0xaa   :  { %9476 = vst [vmem:[#allocation269_spill] sm:$0xff] %v6735_v6  ;;  %9477 = vst [vmem:[#allocation270_spill] sm:$0xff] %v6740_v15  ;;  %v6745_v7 = vld [vmem:[%s9206_s6 + $0x880] sm:$0xff]  ;;  %v6750_v13 = vld [vmem:[%s9206_s6 + $0x888] sm:$0xff] }
  0xab   :  { %9478 = vst [vmem:[#allocation271_spill] sm:$0xff] %v6745_v7  ;;  %9479 = vst [vmem:[#allocation272_spill] sm:$0xff] %v6750_v13  ;;  %v6755_v5 = vld [vmem:[%s9206_s6 + $0x890] sm:$0xff]  ;;  %v6760_v6 = vld [vmem:[%s9206_s6 + $0x898] sm:$0xff] }
  0xac   :  { %9480 = vst [vmem:[#allocation273_spill] sm:$0xff] %v6755_v5  ;;  %9481 = vst [vmem:[#allocation274_spill] sm:$0xff] %v6760_v6  ;;  %v6765_v15 = vld [vmem:[%s9206_s6 + $0x8a0] sm:$0xff]  ;;  %v6770_v7 = vld [vmem:[%s9206_s6 + $0x8a8] sm:$0xff] }
  0xad   :  { %9482 = vst [vmem:[#allocation275_spill] sm:$0xff] %v6765_v15  ;;  %9483 = vst [vmem:[#allocation276_spill] sm:$0xff] %v6770_v7  ;;  %v6775_v13 = vld [vmem:[%s9206_s6 + $0x8b0] sm:$0xff]  ;;  %v6780_v5 = vld [vmem:[%s9206_s6 + $0x8b8] sm:$0xff] }
  0xae   :  { %9484 = vst [vmem:[#allocation277_spill] sm:$0xff] %v6775_v13  ;;  %9485 = vst [vmem:[#allocation278_spill] sm:$0xff] %v6780_v5  ;;  %v6785_v6 = vld [vmem:[%s9206_s6 + $0x8c0] sm:$0xff]  ;;  %v6790_v15 = vld [vmem:[%s9206_s6 + $0x8c8] sm:$0xff] }
  0xaf   :  { %9486 = vst [vmem:[#allocation279_spill] sm:$0xff] %v6785_v6  ;;  %9487 = vst [vmem:[#allocation280_spill] sm:$0xff] %v6790_v15  ;;  %v6795_v7 = vld [vmem:[%s9206_s6 + $0x8d0] sm:$0xff]  ;;  %v6800_v13 = vld [vmem:[%s9206_s6 + $0x8d8] sm:$0xff] }
  0xb0   :  { %9488 = vst [vmem:[#allocation281_spill] sm:$0xff] %v6795_v7  ;;  %9489 = vst [vmem:[#allocation282_spill] sm:$0xff] %v6800_v13  ;;  %v6805_v5 = vld [vmem:[%s9206_s6 + $0x8e0] sm:$0xff]  ;;  %v6810_v6 = vld [vmem:[%s9206_s6 + $0x8e8] sm:$0xff] }
  0xb1   :  { %9490 = vst [vmem:[#allocation283_spill] sm:$0xff] %v6805_v5  ;;  %9491 = vst [vmem:[#allocation284_spill] sm:$0xff] %v6810_v6  ;;  %v6815_v15 = vld [vmem:[%s9206_s6 + $0x8f0] sm:$0xff]  ;;  %v6820_v7 = vld [vmem:[%s9206_s6 + $0x8f8] sm:$0xff] }
  0xb2   :  { %9492 = vst [vmem:[#allocation285_spill] sm:$0xff] %v6815_v15  ;;  %9493 = vst [vmem:[#allocation286_spill] sm:$0xff] %v6820_v7  ;;  %v6825_v13 = vld [vmem:[%s9206_s6 + $0x900] sm:$0xff]  ;;  %v6830_v5 = vld [vmem:[%s9206_s6 + $0x908] sm:$0xff] }
  0xb3   :  { %9494 = vst [vmem:[#allocation287_spill] sm:$0xff] %v6825_v13  ;;  %9495 = vst [vmem:[#allocation288_spill] sm:$0xff] %v6830_v5  ;;  %v6835_v6 = vld [vmem:[%s9206_s6 + $0x910] sm:$0xff]  ;;  %v6840_v15 = vld [vmem:[%s9206_s6 + $0x918] sm:$0xff] }
  0xb4   :  { %9496 = vst [vmem:[#allocation289_spill] sm:$0xff] %v6835_v6  ;;  %9497 = vst [vmem:[#allocation290_spill] sm:$0xff] %v6840_v15  ;;  %v6845_v7 = vld [vmem:[%s9206_s6 + $0x920] sm:$0xff]  ;;  %v6850_v13 = vld [vmem:[%s9206_s6 + $0x928] sm:$0xff] }
  0xb5   :  { %9498 = vst [vmem:[#allocation291_spill] sm:$0xff] %v6845_v7  ;;  %9499 = vst [vmem:[#allocation292_spill] sm:$0xff] %v6850_v13  ;;  %v6855_v5 = vld [vmem:[%s9206_s6 + $0x930] sm:$0xff]  ;;  %v6860_v6 = vld [vmem:[%s9206_s6 + $0x938] sm:$0xff] }
  0xb6   :  { %9500 = vst [vmem:[#allocation293_spill] sm:$0xff] %v6855_v5  ;;  %9501 = vst [vmem:[#allocation294_spill] sm:$0xff] %v6860_v6  ;;  %v6865_v15 = vld [vmem:[%s9206_s6 + $0x940] sm:$0xff]  ;;  %v6870_v7 = vld [vmem:[%s9206_s6 + $0x948] sm:$0xff] }
  0xb7   :  { %9502 = vst [vmem:[#allocation295_spill] sm:$0xff] %v6865_v15  ;;  %9503 = vst [vmem:[#allocation296_spill] sm:$0xff] %v6870_v7  ;;  %v6875_v13 = vld [vmem:[%s9206_s6 + $0x950] sm:$0xff]  ;;  %v6880_v5 = vld [vmem:[%s9206_s6 + $0x958] sm:$0xff] }
  0xb8   :  { %9504 = vst [vmem:[#allocation297_spill] sm:$0xff] %v6875_v13  ;;  %9505 = vst [vmem:[#allocation298_spill] sm:$0xff] %v6880_v5  ;;  %v6885_v6 = vld [vmem:[%s9206_s6 + $0x960] sm:$0xff]  ;;  %v6890_v15 = vld [vmem:[%s9206_s6 + $0x968] sm:$0xff] }
  0xb9   :  { %9506 = vst [vmem:[#allocation299_spill] sm:$0xff] %v6885_v6  ;;  %9507 = vst [vmem:[#allocation300_spill] sm:$0xff] %v6890_v15  ;;  %v6895_v7 = vld [vmem:[%s9206_s6 + $0x970] sm:$0xff]  ;;  %v6900_v13 = vld [vmem:[%s9206_s6 + $0x978] sm:$0xff] }
  0xba   :  { %9508 = vst [vmem:[#allocation301_spill] sm:$0xff] %v6895_v7  ;;  %9509 = vst [vmem:[#allocation302_spill] sm:$0xff] %v6900_v13  ;;  %v6905_v5 = vld [vmem:[%s9206_s6 + $0x980] sm:$0xff]  ;;  %v6910_v6 = vld [vmem:[%s9206_s6 + $0x988] sm:$0xff] }
  0xbb   :  { %9510 = vst [vmem:[#allocation303_spill] sm:$0xff] %v6905_v5  ;;  %9511 = vst [vmem:[#allocation304_spill] sm:$0xff] %v6910_v6  ;;  %v6915_v15 = vld [vmem:[%s9206_s6 + $0x990] sm:$0xff]  ;;  %v6920_v7 = vld [vmem:[%s9206_s6 + $0x998] sm:$0xff] }
  0xbc   :  { %9512 = vst [vmem:[#allocation305_spill] sm:$0xff] %v6915_v15  ;;  %9513 = vst [vmem:[#allocation306_spill] sm:$0xff] %v6920_v7  ;;  %v6925_v13 = vld [vmem:[%s9206_s6 + $0x9a0] sm:$0xff]  ;;  %v6930_v5 = vld [vmem:[%s9206_s6 + $0x9a8] sm:$0xff] }
  0xbd   :  { %9514 = vst [vmem:[#allocation307_spill] sm:$0xff] %v6925_v13  ;;  %9515 = vst [vmem:[#allocation308_spill] sm:$0xff] %v6930_v5  ;;  %v6935_v6 = vld [vmem:[%s9206_s6 + $0x9b0] sm:$0xff]  ;;  %v6940_v15 = vld [vmem:[%s9206_s6 + $0x9b8] sm:$0xff] }
  0xbe   :  { %9516 = vst [vmem:[#allocation309_spill] sm:$0xff] %v6935_v6  ;;  %9517 = vst [vmem:[#allocation310_spill] sm:$0xff] %v6940_v15  ;;  %v6945_v7 = vld [vmem:[%s9206_s6 + $0x9c0] sm:$0xff]  ;;  %v6950_v13 = vld [vmem:[%s9206_s6 + $0x9c8] sm:$0xff] }
  0xbf   :  { %9518 = vst [vmem:[#allocation311_spill] sm:$0xff] %v6945_v7  ;;  %9519 = vst [vmem:[#allocation312_spill] sm:$0xff] %v6950_v13  ;;  %v6955_v5 = vld [vmem:[%s9206_s6 + $0x9d0] sm:$0xff]  ;;  %v6960_v6 = vld [vmem:[%s9206_s6 + $0x9d8] sm:$0xff] }
  0xc0   :  { %9520 = vst [vmem:[#allocation313_spill] sm:$0xff] %v6955_v5  ;;  %9521 = vst [vmem:[#allocation314_spill] sm:$0xff] %v6960_v6  ;;  %v6965_v15 = vld [vmem:[%s9206_s6 + $0x9e0] sm:$0xff]  ;;  %v6970_v7 = vld [vmem:[%s9206_s6 + $0x9e8] sm:$0xff] }
  0xc1   :  { %9522 = vst [vmem:[#allocation315_spill] sm:$0xff] %v6965_v15  ;;  %9523 = vst [vmem:[#allocation316_spill] sm:$0xff] %v6970_v7  ;;  %v6975_v13 = vld [vmem:[%s9206_s6 + $0x9f0] sm:$0xff]  ;;  %v6980_v5 = vld [vmem:[%s9206_s6 + $0x9f8] sm:$0xff] }
  0xc2   :  { %9524 = vst [vmem:[#allocation317_spill] sm:$0xff] %v6975_v13  ;;  %9525 = vst [vmem:[#allocation318_spill] sm:$0xff] %v6980_v5  ;;  %v6985_v6 = vld [vmem:[%s9206_s6 + $0xa00] sm:$0xff]  ;;  %v6990_v15 = vld [vmem:[%s9206_s6 + $0xa08] sm:$0xff] }
  0xc3   :  { %9526 = vst [vmem:[#allocation319_spill] sm:$0xff] %v6985_v6  ;;  %9527 = vst [vmem:[#allocation320_spill] sm:$0xff] %v6990_v15  ;;  %v6995_v7 = vld [vmem:[%s9206_s6 + $0xa10] sm:$0xff]  ;;  %v7000_v13 = vld [vmem:[%s9206_s6 + $0xa18] sm:$0xff] }
  0xc4   :  { %9528 = vst [vmem:[#allocation321_spill] sm:$0xff] %v6995_v7  ;;  %9529 = vst [vmem:[#allocation322_spill] sm:$0xff] %v7000_v13  ;;  %v7005_v5 = vld [vmem:[%s9206_s6 + $0xa20] sm:$0xff]  ;;  %v7010_v6 = vld [vmem:[%s9206_s6 + $0xa28] sm:$0xff] }
  0xc5   :  { %9530 = vst [vmem:[#allocation323_spill] sm:$0xff] %v7005_v5  ;;  %9531 = vst [vmem:[#allocation324_spill] sm:$0xff] %v7010_v6  ;;  %v7015_v15 = vld [vmem:[%s9206_s6 + $0xa30] sm:$0xff]  ;;  %v7020_v7 = vld [vmem:[%s9206_s6 + $0xa38] sm:$0xff] }
  0xc6   :  { %9532 = vst [vmem:[#allocation325_spill] sm:$0xff] %v7015_v15  ;;  %9533 = vst [vmem:[#allocation326_spill] sm:$0xff] %v7020_v7  ;;  %v7025_v13 = vld [vmem:[%s9206_s6 + $0xa40] sm:$0xff]  ;;  %v7030_v5 = vld [vmem:[%s9206_s6 + $0xa48] sm:$0xff] }
  0xc7   :  { %9534 = vst [vmem:[#allocation327_spill] sm:$0xff] %v7025_v13  ;;  %9535 = vst [vmem:[#allocation328_spill] sm:$0xff] %v7030_v5  ;;  %v7035_v6 = vld [vmem:[%s9206_s6 + $0xa50] sm:$0xff]  ;;  %v7040_v15 = vld [vmem:[%s9206_s6 + $0xa58] sm:$0xff] }
  0xc8   :  { %9536 = vst [vmem:[#allocation329_spill] sm:$0xff] %v7035_v6  ;;  %9537 = vst [vmem:[#allocation330_spill] sm:$0xff] %v7040_v15  ;;  %v7045_v7 = vld [vmem:[%s9206_s6 + $0xa60] sm:$0xff]  ;;  %v7050_v13 = vld [vmem:[%s9206_s6 + $0xa68] sm:$0xff] }
  0xc9   :  { %9538 = vst [vmem:[#allocation331_spill] sm:$0xff] %v7045_v7  ;;  %9539 = vst [vmem:[#allocation332_spill] sm:$0xff] %v7050_v13  ;;  %v7055_v5 = vld [vmem:[%s9206_s6 + $0xa70] sm:$0xff]  ;;  %v7060_v6 = vld [vmem:[%s9206_s6 + $0xa78] sm:$0xff] }
  0xca   :  { %9540 = vst [vmem:[#allocation333_spill] sm:$0xff] %v7055_v5  ;;  %9541 = vst [vmem:[#allocation334_spill] sm:$0xff] %v7060_v6  ;;  %v7065_v15 = vld [vmem:[%s9206_s6 + $0xa80] sm:$0xff]  ;;  %v7070_v7 = vld [vmem:[%s9206_s6 + $0xa88] sm:$0xff] }
  0xcb   :  { %9542 = vst [vmem:[#allocation335_spill] sm:$0xff] %v7065_v15  ;;  %9543 = vst [vmem:[#allocation336_spill] sm:$0xff] %v7070_v7  ;;  %v7075_v13 = vld [vmem:[%s9206_s6 + $0xa90] sm:$0xff]  ;;  %v7080_v5 = vld [vmem:[%s9206_s6 + $0xa98] sm:$0xff] }
  0xcc   :  { %9544 = vst [vmem:[#allocation337_spill] sm:$0xff] %v7075_v13  ;;  %9545 = vst [vmem:[#allocation338_spill] sm:$0xff] %v7080_v5  ;;  %v7085_v6 = vld [vmem:[%s9206_s6 + $0xaa0] sm:$0xff]  ;;  %v7090_v15 = vld [vmem:[%s9206_s6 + $0xaa8] sm:$0xff] }
  0xcd   :  { %9546 = vst [vmem:[#allocation339_spill] sm:$0xff] %v7085_v6  ;;  %9547 = vst [vmem:[#allocation340_spill] sm:$0xff] %v7090_v15  ;;  %v7095_v7 = vld [vmem:[%s9206_s6 + $0xab0] sm:$0xff]  ;;  %v7100_v13 = vld [vmem:[%s9206_s6 + $0xab8] sm:$0xff] }
  0xce   :  { %9548 = vst [vmem:[#allocation341_spill] sm:$0xff] %v7095_v7  ;;  %9549 = vst [vmem:[#allocation342_spill] sm:$0xff] %v7100_v13  ;;  %v7105_v5 = vld [vmem:[%s9206_s6 + $0xac0] sm:$0xff]  ;;  %v7110_v6 = vld [vmem:[%s9206_s6 + $0xac8] sm:$0xff] }
  0xcf   :  { %9550 = vst [vmem:[#allocation343_spill] sm:$0xff] %v7105_v5  ;;  %9551 = vst [vmem:[#allocation344_spill] sm:$0xff] %v7110_v6  ;;  %v7115_v15 = vld [vmem:[%s9206_s6 + $0xad0] sm:$0xff]  ;;  %v7120_v7 = vld [vmem:[%s9206_s6 + $0xad8] sm:$0xff] }
  0xd0   :  { %9552 = vst [vmem:[#allocation345_spill] sm:$0xff] %v7115_v15  ;;  %9553 = vst [vmem:[#allocation346_spill] sm:$0xff] %v7120_v7  ;;  %v7125_v13 = vld [vmem:[%s9206_s6 + $0xae0] sm:$0xff]  ;;  %v7130_v5 = vld [vmem:[%s9206_s6 + $0xae8] sm:$0xff] }
  0xd1   :  { %9554 = vst [vmem:[#allocation347_spill] sm:$0xff] %v7125_v13  ;;  %9555 = vst [vmem:[#allocation348_spill] sm:$0xff] %v7130_v5  ;;  %v7135_v6 = vld [vmem:[%s9206_s6 + $0xaf0] sm:$0xff]  ;;  %v7140_v15 = vld [vmem:[%s9206_s6 + $0xaf8] sm:$0xff] }
  0xd2   :  { %9556 = vst [vmem:[#allocation349_spill] sm:$0xff] %v7135_v6  ;;  %9557 = vst [vmem:[#allocation350_spill] sm:$0xff] %v7140_v15  ;;  %v7145_v7 = vld [vmem:[%s9206_s6 + $0xb00] sm:$0xff]  ;;  %v7150_v13 = vld [vmem:[%s9206_s6 + $0xb08] sm:$0xff] }
  0xd3   :  { %9558 = vst [vmem:[#allocation351_spill] sm:$0xff] %v7145_v7  ;;  %9559 = vst [vmem:[#allocation352_spill] sm:$0xff] %v7150_v13  ;;  %v7155_v5 = vld [vmem:[%s9206_s6 + $0xb10] sm:$0xff]  ;;  %v7160_v6 = vld [vmem:[%s9206_s6 + $0xb18] sm:$0xff] }
  0xd4   :  { %9560 = vst [vmem:[#allocation353_spill] sm:$0xff] %v7155_v5  ;;  %9561 = vst [vmem:[#allocation354_spill] sm:$0xff] %v7160_v6  ;;  %v7165_v15 = vld [vmem:[%s9206_s6 + $0xb20] sm:$0xff]  ;;  %v7170_v7 = vld [vmem:[%s9206_s6 + $0xb28] sm:$0xff] }
  0xd5   :  { %9562 = vst [vmem:[#allocation355_spill] sm:$0xff] %v7165_v15  ;;  %9563 = vst [vmem:[#allocation356_spill] sm:$0xff] %v7170_v7  ;;  %v7175_v13 = vld [vmem:[%s9206_s6 + $0xb30] sm:$0xff]  ;;  %v7180_v5 = vld [vmem:[%s9206_s6 + $0xb38] sm:$0xff] }
  0xd6   :  { %9564 = vst [vmem:[#allocation357_spill] sm:$0xff] %v7175_v13  ;;  %9565 = vst [vmem:[#allocation358_spill] sm:$0xff] %v7180_v5  ;;  %v7185_v6 = vld [vmem:[%s9206_s6 + $0xb40] sm:$0xff]  ;;  %v7190_v15 = vld [vmem:[%s9206_s6 + $0xb48] sm:$0xff] }
  0xd7   :  { %9566 = vst [vmem:[#allocation359_spill] sm:$0xff] %v7185_v6  ;;  %9567 = vst [vmem:[#allocation360_spill] sm:$0xff] %v7190_v15  ;;  %v7195_v7 = vld [vmem:[%s9206_s6 + $0xb50] sm:$0xff]  ;;  %v7200_v13 = vld [vmem:[%s9206_s6 + $0xb58] sm:$0xff] }
  0xd8   :  { %9568 = vst [vmem:[#allocation361_spill] sm:$0xff] %v7195_v7  ;;  %9569 = vst [vmem:[#allocation362_spill] sm:$0xff] %v7200_v13  ;;  %v7205_v5 = vld [vmem:[%s9206_s6 + $0xb60] sm:$0xff]  ;;  %v7210_v6 = vld [vmem:[%s9206_s6 + $0xb68] sm:$0xff] }
  0xd9   :  { %9570 = vst [vmem:[#allocation363_spill] sm:$0xff] %v7205_v5  ;;  %9571 = vst [vmem:[#allocation364_spill] sm:$0xff] %v7210_v6  ;;  %v7215_v15 = vld [vmem:[%s9206_s6 + $0xb70] sm:$0xff]  ;;  %v7220_v7 = vld [vmem:[%s9206_s6 + $0xb78] sm:$0xff] }
  0xda   :  { %9572 = vst [vmem:[#allocation365_spill] sm:$0xff] %v7215_v15  ;;  %9573 = vst [vmem:[#allocation366_spill] sm:$0xff] %v7220_v7  ;;  %v7225_v13 = vld [vmem:[%s9206_s6 + $0xb80] sm:$0xff]  ;;  %v7230_v5 = vld [vmem:[%s9206_s6 + $0xb88] sm:$0xff] }
  0xdb   :  { %9574 = vst [vmem:[#allocation367_spill] sm:$0xff] %v7225_v13  ;;  %9575 = vst [vmem:[#allocation368_spill] sm:$0xff] %v7230_v5  ;;  %v7235_v6 = vld [vmem:[%s9206_s6 + $0xb90] sm:$0xff]  ;;  %v7240_v15 = vld [vmem:[%s9206_s6 + $0xb98] sm:$0xff] }
  0xdc   :  { %9576 = vst [vmem:[#allocation369_spill] sm:$0xff] %v7235_v6  ;;  %9577 = vst [vmem:[#allocation370_spill] sm:$0xff] %v7240_v15  ;;  %v7245_v7 = vld [vmem:[%s9206_s6 + $0xba0] sm:$0xff]  ;;  %v7250_v13 = vld [vmem:[%s9206_s6 + $0xba8] sm:$0xff] }
  0xdd   :  { %9578 = vst [vmem:[#allocation371_spill] sm:$0xff] %v7245_v7  ;;  %9579 = vst [vmem:[#allocation372_spill] sm:$0xff] %v7250_v13  ;;  %v7255_v5 = vld [vmem:[%s9206_s6 + $0xbb0] sm:$0xff]  ;;  %v7260_v6 = vld [vmem:[%s9206_s6 + $0xbb8] sm:$0xff] }
  0xde   :  { %9580 = vst [vmem:[#allocation373_spill] sm:$0xff] %v7255_v5  ;;  %9581 = vst [vmem:[#allocation374_spill] sm:$0xff] %v7260_v6  ;;  %v7265_v15 = vld [vmem:[%s9206_s6 + $0xbc0] sm:$0xff]  ;;  %v7270_v7 = vld [vmem:[%s9206_s6 + $0xbc8] sm:$0xff] }
  0xdf   :  { %9582 = vst [vmem:[#allocation375_spill] sm:$0xff] %v7265_v15  ;;  %9583 = vst [vmem:[#allocation376_spill] sm:$0xff] %v7270_v7  ;;  %v7275_v13 = vld [vmem:[%s9206_s6 + $0xbd0] sm:$0xff]  ;;  %v7280_v5 = vld [vmem:[%s9206_s6 + $0xbd8] sm:$0xff] }
  0xe0   :  { %9584 = vst [vmem:[#allocation377_spill] sm:$0xff] %v7275_v13  ;;  %9585 = vst [vmem:[#allocation378_spill] sm:$0xff] %v7280_v5  ;;  %v7285_v6 = vld [vmem:[%s9206_s6 + $0xbe0] sm:$0xff]  ;;  %v7290_v15 = vld [vmem:[%s9206_s6 + $0xbe8] sm:$0xff] }
  0xe1   :  { %9586 = vst [vmem:[#allocation379_spill] sm:$0xff] %v7285_v6  ;;  %9587 = vst [vmem:[#allocation380_spill] sm:$0xff] %v7290_v15  ;;  %v7295_v7 = vld [vmem:[%s9206_s6 + $0xbf0] sm:$0xff]  ;;  %v7300_v13 = vld [vmem:[%s9206_s6 + $0xbf8] sm:$0xff] }
  0xe2   :  { %9588 = vst [vmem:[#allocation381_spill] sm:$0xff] %v7295_v7  ;;  %9589 = vst [vmem:[#allocation382_spill] sm:$0xff] %v7300_v13  ;;  %v7305_v5 = vld [vmem:[%s9206_s6 + $0xc00] sm:$0xff]  ;;  %v7310_v6 = vld [vmem:[%s9206_s6 + $0xc08] sm:$0xff] }
  0xe3   :  { %9590 = vst [vmem:[#allocation383_spill] sm:$0xff] %v7305_v5  ;;  %9591 = vst [vmem:[#allocation384_spill] sm:$0xff] %v7310_v6  ;;  %v7315_v15 = vld [vmem:[%s9206_s6 + $0xc10] sm:$0xff]  ;;  %v7320_v7 = vld [vmem:[%s9206_s6 + $0xc18] sm:$0xff] }
  0xe4   :  { %9592 = vst [vmem:[#allocation385_spill] sm:$0xff] %v7315_v15  ;;  %9593 = vst [vmem:[#allocation386_spill] sm:$0xff] %v7320_v7  ;;  %v7325_v13 = vld [vmem:[%s9206_s6 + $0xc20] sm:$0xff]  ;;  %v7330_v5 = vld [vmem:[%s9206_s6 + $0xc28] sm:$0xff] }
  0xe5   :  { %9594 = vst [vmem:[#allocation387_spill] sm:$0xff] %v7325_v13  ;;  %9595 = vst [vmem:[#allocation388_spill] sm:$0xff] %v7330_v5  ;;  %v7335_v6 = vld [vmem:[%s9206_s6 + $0xc30] sm:$0xff]  ;;  %v7340_v15 = vld [vmem:[%s9206_s6 + $0xc38] sm:$0xff] }
  0xe6   :  { %9596 = vst [vmem:[#allocation389_spill] sm:$0xff] %v7335_v6  ;;  %9597 = vst [vmem:[#allocation390_spill] sm:$0xff] %v7340_v15  ;;  %v7345_v7 = vld [vmem:[%s9206_s6 + $0xc40] sm:$0xff]  ;;  %v7350_v13 = vld [vmem:[%s9206_s6 + $0xc48] sm:$0xff] }
  0xe7   :  { %9598 = vst [vmem:[#allocation391_spill] sm:$0xff] %v7345_v7  ;;  %9599 = vst [vmem:[#allocation392_spill] sm:$0xff] %v7350_v13  ;;  %v7355_v5 = vld [vmem:[%s9206_s6 + $0xc50] sm:$0xff]  ;;  %v7360_v6 = vld [vmem:[%s9206_s6 + $0xc58] sm:$0xff] }
  0xe8   :  { %9600 = vst [vmem:[#allocation393_spill] sm:$0xff] %v7355_v5  ;;  %9601 = vst [vmem:[#allocation394_spill] sm:$0xff] %v7360_v6  ;;  %v7365_v15 = vld [vmem:[%s9206_s6 + $0xc60] sm:$0xff]  ;;  %v7370_v7 = vld [vmem:[%s9206_s6 + $0xc68] sm:$0xff] }
  0xe9   :  { %9602 = vst [vmem:[#allocation395_spill] sm:$0xff] %v7365_v15  ;;  %9603 = vst [vmem:[#allocation396_spill] sm:$0xff] %v7370_v7  ;;  %v7375_v13 = vld [vmem:[%s9206_s6 + $0xc70] sm:$0xff]  ;;  %v7380_v5 = vld [vmem:[%s9206_s6 + $0xc78] sm:$0xff] }
  0xea   :  { %9604 = vst [vmem:[#allocation397_spill] sm:$0xff] %v7375_v13  ;;  %9605 = vst [vmem:[#allocation398_spill] sm:$0xff] %v7380_v5  ;;  %v7385_v6 = vld [vmem:[%s9206_s6 + $0xc80] sm:$0xff]  ;;  %v7390_v15 = vld [vmem:[%s9206_s6 + $0xc88] sm:$0xff] }
  0xeb   :  { %9606 = vst [vmem:[#allocation399_spill] sm:$0xff] %v7385_v6  ;;  %9607 = vst [vmem:[#allocation400_spill] sm:$0xff] %v7390_v15  ;;  %v7395_v7 = vld [vmem:[%s9206_s6 + $0xc90] sm:$0xff]  ;;  %v7400_v13 = vld [vmem:[%s9206_s6 + $0xc98] sm:$0xff] }
  0xec   :  { %9608 = vst [vmem:[#allocation401_spill] sm:$0xff] %v7395_v7  ;;  %9609 = vst [vmem:[#allocation402_spill] sm:$0xff] %v7400_v13  ;;  %v7405_v5 = vld [vmem:[%s9206_s6 + $0xca0] sm:$0xff]  ;;  %v7410_v6 = vld [vmem:[%s9206_s6 + $0xca8] sm:$0xff] }
  0xed   :  { %9610 = vst [vmem:[#allocation403_spill] sm:$0xff] %v7405_v5  ;;  %9611 = vst [vmem:[#allocation404_spill] sm:$0xff] %v7410_v6  ;;  %v7415_v15 = vld [vmem:[%s9206_s6 + $0xcb0] sm:$0xff]  ;;  %v7420_v7 = vld [vmem:[%s9206_s6 + $0xcb8] sm:$0xff] }
  0xee   :  { %9612 = vst [vmem:[#allocation405_spill] sm:$0xff] %v7415_v15  ;;  %9613 = vst [vmem:[#allocation406_spill] sm:$0xff] %v7420_v7  ;;  %v7425_v13 = vld [vmem:[%s9206_s6 + $0xcc0] sm:$0xff]  ;;  %v7430_v5 = vld [vmem:[%s9206_s6 + $0xcc8] sm:$0xff] }
  0xef   :  { %9614 = vst [vmem:[#allocation407_spill] sm:$0xff] %v7425_v13  ;;  %9615 = vst [vmem:[#allocation408_spill] sm:$0xff] %v7430_v5  ;;  %v7435_v6 = vld [vmem:[%s9206_s6 + $0xcd0] sm:$0xff]  ;;  %v7440_v15 = vld [vmem:[%s9206_s6 + $0xcd8] sm:$0xff] }
  0xf0   :  { %9616 = vst [vmem:[#allocation409_spill] sm:$0xff] %v7435_v6  ;;  %9617 = vst [vmem:[#allocation410_spill] sm:$0xff] %v7440_v15  ;;  %v7445_v7 = vld [vmem:[%s9206_s6 + $0xce0] sm:$0xff]  ;;  %v7450_v13 = vld [vmem:[%s9206_s6 + $0xce8] sm:$0xff] }
  0xf1   :  { %9618 = vst [vmem:[#allocation411_spill] sm:$0xff] %v7445_v7  ;;  %9619 = vst [vmem:[#allocation412_spill] sm:$0xff] %v7450_v13  ;;  %v7455_v5 = vld [vmem:[%s9206_s6 + $0xcf0] sm:$0xff]  ;;  %v7460_v6 = vld [vmem:[%s9206_s6 + $0xcf8] sm:$0xff] }
  0xf2   :  { %9620 = vst [vmem:[#allocation413_spill] sm:$0xff] %v7455_v5  ;;  %9621 = vst [vmem:[#allocation414_spill] sm:$0xff] %v7460_v6  ;;  %v7465_v15 = vld [vmem:[%s9206_s6 + $0xd00] sm:$0xff]  ;;  %v7470_v7 = vld [vmem:[%s9206_s6 + $0xd08] sm:$0xff] }
  0xf3   :  { %9622 = vst [vmem:[#allocation415_spill] sm:$0xff] %v7465_v15  ;;  %9623 = vst [vmem:[#allocation416_spill] sm:$0xff] %v7470_v7  ;;  %v7475_v13 = vld [vmem:[%s9206_s6 + $0xd10] sm:$0xff]  ;;  %v7480_v5 = vld [vmem:[%s9206_s6 + $0xd18] sm:$0xff] }
  0xf4   :  { %9624 = vst [vmem:[#allocation417_spill] sm:$0xff] %v7475_v13  ;;  %9625 = vst [vmem:[#allocation418_spill] sm:$0xff] %v7480_v5  ;;  %v7485_v6 = vld [vmem:[%s9206_s6 + $0xd20] sm:$0xff]  ;;  %v7490_v15 = vld [vmem:[%s9206_s6 + $0xd28] sm:$0xff] }
  0xf5   :  { %9626 = vst [vmem:[#allocation419_spill] sm:$0xff] %v7485_v6  ;;  %9627 = vst [vmem:[#allocation420_spill] sm:$0xff] %v7490_v15  ;;  %v7495_v7 = vld [vmem:[%s9206_s6 + $0xd30] sm:$0xff]  ;;  %v7500_v13 = vld [vmem:[%s9206_s6 + $0xd38] sm:$0xff] }
  0xf6   :  { %9628 = vst [vmem:[#allocation421_spill] sm:$0xff] %v7495_v7  ;;  %9629 = vst [vmem:[#allocation422_spill] sm:$0xff] %v7500_v13  ;;  %v7505_v5 = vld [vmem:[%s9206_s6 + $0xd40] sm:$0xff]  ;;  %v7510_v6 = vld [vmem:[%s9206_s6 + $0xd48] sm:$0xff] }
  0xf7   :  { %9630 = vst [vmem:[#allocation423_spill] sm:$0xff] %v7505_v5  ;;  %9631 = vst [vmem:[#allocation424_spill] sm:$0xff] %v7510_v6  ;;  %v7515_v15 = vld [vmem:[%s9206_s6 + $0xd50] sm:$0xff]  ;;  %v7520_v7 = vld [vmem:[%s9206_s6 + $0xd58] sm:$0xff] }
  0xf8   :  { %9632 = vst [vmem:[#allocation425_spill] sm:$0xff] %v7515_v15  ;;  %9633 = vst [vmem:[#allocation426_spill] sm:$0xff] %v7520_v7  ;;  %v7525_v13 = vld [vmem:[%s9206_s6 + $0xd60] sm:$0xff]  ;;  %v7530_v5 = vld [vmem:[%s9206_s6 + $0xd68] sm:$0xff] }
  0xf9   :  { %9634 = vst [vmem:[#allocation427_spill] sm:$0xff] %v7525_v13  ;;  %9635 = vst [vmem:[#allocation428_spill] sm:$0xff] %v7530_v5  ;;  %v7535_v6 = vld [vmem:[%s9206_s6 + $0xd70] sm:$0xff]  ;;  %v7540_v15 = vld [vmem:[%s9206_s6 + $0xd78] sm:$0xff] }
  0xfa   :  { %9636 = vst [vmem:[#allocation429_spill] sm:$0xff] %v7535_v6  ;;  %9637 = vst [vmem:[#allocation430_spill] sm:$0xff] %v7540_v15  ;;  %v7545_v7 = vld [vmem:[%s9206_s6 + $0xd80] sm:$0xff]  ;;  %v7550_v13 = vld [vmem:[%s9206_s6 + $0xd88] sm:$0xff] }
  0xfb   :  { %9638 = vst [vmem:[#allocation431_spill] sm:$0xff] %v7545_v7  ;;  %9639 = vst [vmem:[#allocation432_spill] sm:$0xff] %v7550_v13  ;;  %v7555_v5 = vld [vmem:[%s9206_s6 + $0xd90] sm:$0xff]  ;;  %v7560_v6 = vld [vmem:[%s9206_s6 + $0xd98] sm:$0xff] }
  0xfc   :  { %9640 = vst [vmem:[#allocation433_spill] sm:$0xff] %v7555_v5  ;;  %9641 = vst [vmem:[#allocation434_spill] sm:$0xff] %v7560_v6  ;;  %v7565_v15 = vld [vmem:[%s9206_s6 + $0xda0] sm:$0xff]  ;;  %v7570_v7 = vld [vmem:[%s9206_s6 + $0xda8] sm:$0xff] }
  0xfd   :  { %9642 = vst [vmem:[#allocation435_spill] sm:$0xff] %v7565_v15  ;;  %9643 = vst [vmem:[#allocation436_spill] sm:$0xff] %v7570_v7  ;;  %v7575_v13 = vld [vmem:[%s9206_s6 + $0xdb0] sm:$0xff]  ;;  %v7580_v5 = vld [vmem:[%s9206_s6 + $0xdb8] sm:$0xff] }
  0xfe   :  { %9644 = vst [vmem:[#allocation437_spill] sm:$0xff] %v7575_v13  ;;  %9645 = vst [vmem:[#allocation438_spill] sm:$0xff] %v7580_v5  ;;  %v7585_v6 = vld [vmem:[%s9206_s6 + $0xdc0] sm:$0xff]  ;;  %v7590_v15 = vld [vmem:[%s9206_s6 + $0xdc8] sm:$0xff] }
  0xff   :  { %9646 = vst [vmem:[#allocation439_spill] sm:$0xff] %v7585_v6  ;;  %9647 = vst [vmem:[#allocation440_spill] sm:$0xff] %v7590_v15  ;;  %v7595_v7 = vld [vmem:[%s9206_s6 + $0xdd0] sm:$0xff]  ;;  %v7600_v13 = vld [vmem:[%s9206_s6 + $0xdd8] sm:$0xff] }
 0x100   :  { %9648 = vst [vmem:[#allocation441_spill] sm:$0xff] %v7595_v7  ;;  %9649 = vst [vmem:[#allocation442_spill] sm:$0xff] %v7600_v13  ;;  %v7605_v5 = vld [vmem:[%s9206_s6 + $0xde0] sm:$0xff]  ;;  %v7610_v6 = vld [vmem:[%s9206_s6 + $0xde8] sm:$0xff] }
 0x101   :  { %9650 = vst [vmem:[#allocation443_spill] sm:$0xff] %v7605_v5  ;;  %9651 = vst [vmem:[#allocation444_spill] sm:$0xff] %v7610_v6  ;;  %v7615_v15 = vld [vmem:[%s9206_s6 + $0xdf0] sm:$0xff]  ;;  %v7620_v7 = vld [vmem:[%s9206_s6 + $0xdf8] sm:$0xff] }
 0x102   :  { %9652 = vst [vmem:[#allocation445_spill] sm:$0xff] %v7615_v15  ;;  %9653 = vst [vmem:[#allocation446_spill] sm:$0xff] %v7620_v7  ;;  %v7625_v13 = vld [vmem:[%s9206_s6 + $0xe00] sm:$0xff]  ;;  %v7630_v5 = vld [vmem:[%s9206_s6 + $0xe08] sm:$0xff] }
 0x103   :  { %9654 = vst [vmem:[#allocation447_spill] sm:$0xff] %v7625_v13  ;;  %9655 = vst [vmem:[#allocation448_spill] sm:$0xff] %v7630_v5  ;;  %v7635_v6 = vld [vmem:[%s9206_s6 + $0xe10] sm:$0xff]  ;;  %v7640_v15 = vld [vmem:[%s9206_s6 + $0xe18] sm:$0xff] }
 0x104   :  { %9656 = vst [vmem:[#allocation449_spill] sm:$0xff] %v7635_v6  ;;  %9657 = vst [vmem:[#allocation450_spill] sm:$0xff] %v7640_v15  ;;  %v7645_v7 = vld [vmem:[%s9206_s6 + $0xe20] sm:$0xff]  ;;  %v7650_v13 = vld [vmem:[%s9206_s6 + $0xe28] sm:$0xff] }
 0x105   :  { %9658 = vst [vmem:[#allocation451_spill] sm:$0xff] %v7645_v7  ;;  %9659 = vst [vmem:[#allocation452_spill] sm:$0xff] %v7650_v13  ;;  %v7655_v5 = vld [vmem:[%s9206_s6 + $0xe30] sm:$0xff]  ;;  %v7660_v6 = vld [vmem:[%s9206_s6 + $0xe38] sm:$0xff] }
 0x106   :  { %9660 = vst [vmem:[#allocation453_spill] sm:$0xff] %v7655_v5  ;;  %9661 = vst [vmem:[#allocation454_spill] sm:$0xff] %v7660_v6  ;;  %v7665_v15 = vld [vmem:[%s9206_s6 + $0xe40] sm:$0xff]  ;;  %v7670_v7 = vld [vmem:[%s9206_s6 + $0xe48] sm:$0xff] }
 0x107   :  { %9662 = vst [vmem:[#allocation455_spill] sm:$0xff] %v7665_v15  ;;  %9663 = vst [vmem:[#allocation456_spill] sm:$0xff] %v7670_v7  ;;  %v7675_v13 = vld [vmem:[%s9206_s6 + $0xe50] sm:$0xff]  ;;  %v7680_v5 = vld [vmem:[%s9206_s6 + $0xe58] sm:$0xff] }
 0x108   :  { %9664 = vst [vmem:[#allocation457_spill] sm:$0xff] %v7675_v13  ;;  %9665 = vst [vmem:[#allocation458_spill] sm:$0xff] %v7680_v5  ;;  %v7685_v6 = vld [vmem:[%s9206_s6 + $0xe60] sm:$0xff]  ;;  %v7690_v15 = vld [vmem:[%s9206_s6 + $0xe68] sm:$0xff] }
 0x109   :  { %9666 = vst [vmem:[#allocation459_spill] sm:$0xff] %v7685_v6  ;;  %9667 = vst [vmem:[#allocation460_spill] sm:$0xff] %v7690_v15  ;;  %v7695_v7 = vld [vmem:[%s9206_s6 + $0xe70] sm:$0xff]  ;;  %v7700_v13 = vld [vmem:[%s9206_s6 + $0xe78] sm:$0xff] }
 0x10a   :  { %9668 = vst [vmem:[#allocation461_spill] sm:$0xff] %v7695_v7  ;;  %9669 = vst [vmem:[#allocation462_spill] sm:$0xff] %v7700_v13  ;;  %v7705_v5 = vld [vmem:[%s9206_s6 + $0xe80] sm:$0xff]  ;;  %v7710_v6 = vld [vmem:[%s9206_s6 + $0xe88] sm:$0xff] }
 0x10b   :  { %9670 = vst [vmem:[#allocation463_spill] sm:$0xff] %v7705_v5  ;;  %9671 = vst [vmem:[#allocation464_spill] sm:$0xff] %v7710_v6  ;;  %v7715_v15 = vld [vmem:[%s9206_s6 + $0xe90] sm:$0xff]  ;;  %v7720_v7 = vld [vmem:[%s9206_s6 + $0xe98] sm:$0xff] }
 0x10c   :  { %9672 = vst [vmem:[#allocation465_spill] sm:$0xff] %v7715_v15  ;;  %9673 = vst [vmem:[#allocation466_spill] sm:$0xff] %v7720_v7  ;;  %v7725_v13 = vld [vmem:[%s9206_s6 + $0xea0] sm:$0xff]  ;;  %v7730_v5 = vld [vmem:[%s9206_s6 + $0xea8] sm:$0xff] }
 0x10d   :  { %9674 = vst [vmem:[#allocation467_spill] sm:$0xff] %v7725_v13  ;;  %9675 = vst [vmem:[#allocation468_spill] sm:$0xff] %v7730_v5  ;;  %v7735_v6 = vld [vmem:[%s9206_s6 + $0xeb0] sm:$0xff]  ;;  %v7740_v15 = vld [vmem:[%s9206_s6 + $0xeb8] sm:$0xff] }
 0x10e   :  { %9676 = vst [vmem:[#allocation469_spill] sm:$0xff] %v7735_v6  ;;  %9677 = vst [vmem:[#allocation470_spill] sm:$0xff] %v7740_v15  ;;  %v7745_v7 = vld [vmem:[%s9206_s6 + $0xec0] sm:$0xff]  ;;  %v7750_v13 = vld [vmem:[%s9206_s6 + $0xec8] sm:$0xff] }
 0x10f   :  { %9678 = vst [vmem:[#allocation471_spill] sm:$0xff] %v7745_v7  ;;  %9679 = vst [vmem:[#allocation472_spill] sm:$0xff] %v7750_v13  ;;  %v7755_v5 = vld [vmem:[%s9206_s6 + $0xed0] sm:$0xff]  ;;  %v7760_v6 = vld [vmem:[%s9206_s6 + $0xed8] sm:$0xff] }
 0x110   :  { %9680 = vst [vmem:[#allocation473_spill] sm:$0xff] %v7755_v5  ;;  %9681 = vst [vmem:[#allocation474_spill] sm:$0xff] %v7760_v6  ;;  %v7765_v15 = vld [vmem:[%s9206_s6 + $0xee0] sm:$0xff]  ;;  %v7770_v7 = vld [vmem:[%s9206_s6 + $0xee8] sm:$0xff] }
 0x111   :  { %9682 = vst [vmem:[#allocation475_spill] sm:$0xff] %v7765_v15  ;;  %9683 = vst [vmem:[#allocation476_spill] sm:$0xff] %v7770_v7  ;;  %v7775_v13 = vld [vmem:[%s9206_s6 + $0xef0] sm:$0xff]  ;;  %v7780_v5 = vld [vmem:[%s9206_s6 + $0xef8] sm:$0xff] }
 0x112   :  { %9684 = vst [vmem:[#allocation477_spill] sm:$0xff] %v7775_v13  ;;  %9685 = vst [vmem:[#allocation478_spill] sm:$0xff] %v7780_v5  ;;  %v7785_v6 = vld [vmem:[%s9206_s6 + $0xf00] sm:$0xff]  ;;  %v7790_v15 = vld [vmem:[%s9206_s6 + $0xf08] sm:$0xff] }
 0x113   :  { %9686 = vst [vmem:[#allocation479_spill] sm:$0xff] %v7785_v6  ;;  %9687 = vst [vmem:[#allocation480_spill] sm:$0xff] %v7790_v15  ;;  %v7795_v7 = vld [vmem:[%s9206_s6 + $0xf10] sm:$0xff]  ;;  %v7800_v13 = vld [vmem:[%s9206_s6 + $0xf18] sm:$0xff] }
 0x114   :  { %9688 = vst [vmem:[#allocation481_spill] sm:$0xff] %v7795_v7  ;;  %9689 = vst [vmem:[#allocation482_spill] sm:$0xff] %v7800_v13  ;;  %v7805_v5 = vld [vmem:[%s9206_s6 + $0xf20] sm:$0xff]  ;;  %v7810_v6 = vld [vmem:[%s9206_s6 + $0xf28] sm:$0xff] }
 0x115   :  { %9690 = vst [vmem:[#allocation483_spill] sm:$0xff] %v7805_v5  ;;  %9691 = vst [vmem:[#allocation484_spill] sm:$0xff] %v7810_v6  ;;  %v7815_v15 = vld [vmem:[%s9206_s6 + $0xf30] sm:$0xff]  ;;  %v7820_v7 = vld [vmem:[%s9206_s6 + $0xf38] sm:$0xff] }
 0x116   :  { %9692 = vst [vmem:[#allocation485_spill] sm:$0xff] %v7815_v15  ;;  %9693 = vst [vmem:[#allocation486_spill] sm:$0xff] %v7820_v7  ;;  %v7825_v13 = vld [vmem:[%s9206_s6 + $0xf40] sm:$0xff]  ;;  %v7830_v5 = vld [vmem:[%s9206_s6 + $0xf48] sm:$0xff] }
 0x117   :  { %9694 = vst [vmem:[#allocation487_spill] sm:$0xff] %v7825_v13  ;;  %9695 = vst [vmem:[#allocation488_spill] sm:$0xff] %v7830_v5  ;;  %v7835_v6 = vld [vmem:[%s9206_s6 + $0xf50] sm:$0xff]  ;;  %v7840_v15 = vld [vmem:[%s9206_s6 + $0xf58] sm:$0xff] }
 0x118   :  { %9696 = vst [vmem:[#allocation489_spill] sm:$0xff] %v7835_v6  ;;  %9697 = vst [vmem:[#allocation490_spill] sm:$0xff] %v7840_v15  ;;  %v7845_v7 = vld [vmem:[%s9206_s6 + $0xf60] sm:$0xff]  ;;  %v7850_v13 = vld [vmem:[%s9206_s6 + $0xf68] sm:$0xff] }
 0x119   :  { %9698 = vst [vmem:[#allocation491_spill] sm:$0xff] %v7845_v7  ;;  %9699 = vst [vmem:[#allocation492_spill] sm:$0xff] %v7850_v13  ;;  %v7855_v5 = vld [vmem:[%s9206_s6 + $0xf70] sm:$0xff]  ;;  %v7860_v6 = vld [vmem:[%s9206_s6 + $0xf78] sm:$0xff] }
 0x11a   :  { %9700 = vst [vmem:[#allocation493_spill] sm:$0xff] %v7855_v5  ;;  %9701 = vst [vmem:[#allocation494_spill] sm:$0xff] %v7860_v6  ;;  %v7865_v15 = vld [vmem:[%s9206_s6 + $0xf80] sm:$0xff]  ;;  %v7870_v7 = vld [vmem:[%s9206_s6 + $0xf88] sm:$0xff] }
 0x11b   :  { %9702 = vst [vmem:[#allocation495_spill] sm:$0xff] %v7865_v15  ;;  %9703 = vst [vmem:[#allocation496_spill] sm:$0xff] %v7870_v7  ;;  %v7875_v13 = vld [vmem:[%s9206_s6 + $0xf90] sm:$0xff]  ;;  %v7880_v5 = vld [vmem:[%s9206_s6 + $0xf98] sm:$0xff] }
 0x11c   :  { %9704 = vst [vmem:[#allocation497_spill] sm:$0xff] %v7875_v13  ;;  %9705 = vst [vmem:[#allocation498_spill] sm:$0xff] %v7880_v5  ;;  %v7885_v6 = vld [vmem:[%s9206_s6 + $0xfa0] sm:$0xff]  ;;  %v7890_v15 = vld [vmem:[%s9206_s6 + $0xfa8] sm:$0xff] }
 0x11d   :  { %9706 = vst [vmem:[#allocation499_spill] sm:$0xff] %v7885_v6  ;;  %9707 = vst [vmem:[#allocation500_spill] sm:$0xff] %v7890_v15  ;;  %v7895_v7 = vld [vmem:[%s9206_s6 + $0xfb0] sm:$0xff]  ;;  %v7900_v13 = vld [vmem:[%s9206_s6 + $0xfb8] sm:$0xff] }
 0x11e   :  { %9708 = vst [vmem:[#allocation501_spill] sm:$0xff] %v7895_v7  ;;  %9709 = vst [vmem:[#allocation502_spill] sm:$0xff] %v7900_v13  ;;  %v7905_v5 = vld [vmem:[%s9206_s6 + $0xfc0] sm:$0xff]  ;;  %v7910_v6 = vld [vmem:[%s9206_s6 + $0xfc8] sm:$0xff] }
 0x11f   :  { %9710 = vst [vmem:[#allocation503_spill] sm:$0xff] %v7905_v5  ;;  %9711 = vst [vmem:[#allocation504_spill] sm:$0xff] %v7910_v6  ;;  %v7915_v15 = vld [vmem:[%s9206_s6 + $0xfd0] sm:$0xff]  ;;  %v7920_v7 = vld [vmem:[%s9206_s6 + $0xfd8] sm:$0xff] }
 0x120   :  { %9712 = vst [vmem:[#allocation505_spill] sm:$0xff] %v7915_v15  ;;  %9713 = vst [vmem:[#allocation506_spill] sm:$0xff] %v7920_v7  ;;  %v7925_v13 = vld [vmem:[%s9206_s6 + $0xfe0] sm:$0xff]  ;;  %v7930_v5 = vld [vmem:[%s9206_s6 + $0xfe8] sm:$0xff] }
 0x121   :  { %9714 = vst [vmem:[#allocation507_spill] sm:$0xff] %v7925_v13  ;;  %9715 = vst [vmem:[#allocation508_spill] sm:$0xff] %v7930_v5  ;;  %v7935_v6 = vld [vmem:[%s9206_s6 + $0xff0] sm:$0xff]  ;;  %v7940_v15 = vld [vmem:[%s9206_s6 + $0xff8] sm:$0xff] }
 0x122   :  { %9716 = vst [vmem:[#allocation509_spill] sm:$0xff] %v7935_v6  ;;  %9717 = vst [vmem:[#allocation510_spill] sm:$0xff] %v7940_v15 }
 0x123   :  { %1124 = vsyncadd [#allocation3], 65536  ;;  %v1149_v7 = vld [vmem:[#allocation4 + $0x80] sm:$0xff]  ;;  %v1150_v12 = vld [vmem:[#allocation4 + $0x88] sm:$0xff]  ;;  %vm9211_vm4 = vmmov 0  }
 0x124   :  { %v4325_v4 = vpack.c.bf16 %v1150_v12, %v1149_v7  ;;  %v1133_v13 = vld [vmem:[#allocation4] sm:$0xff]  ;;  %v1134_v21 = vld [vmem:[#allocation4 + $0x8] sm:$0xff]  ;;  %v1151_v23 = vld [vmem:[#allocation4 + $0x90] sm:$0xff] }
 0x125   :  { %v4327_v22 = vpack.c.bf16 %v1134_v21, %v1133_v13  ;;  %v1152_v14 = vld [vmem:[#allocation4 + $0x98] sm:$0xff]  ;;  %v1135_v5 = vld [vmem:[#allocation4 + $0x10] sm:$0xff]  ;;  %v1153_v28 = vld [vmem:[#allocation4 + $0xa0] sm:$0xff] }
 0x126   :  { %v1136_v31 = vld [vmem:[#allocation4 + $0x18] sm:$0xff]  ;;  %4326 = vmatprep.subr.bf16.mxu0 %v4325_v4  ;;  %v4329_v29 = vpack.c.bf16 %v1152_v14, %v1151_v23  ;;  %v1154_v6 = vld [vmem:[#allocation4 + $0xa8] sm:$0xff]  ;;  %v1137_v15 = vld [vmem:[#allocation4 + $0x20] sm:$0xff] }
 0x127   :  { %4328 = vmatpush3.bf16.msra.mxu0 %v4327_v22  ;;  %v4331_v20 = vpack.c.bf16 %v1136_v31, %v1135_v5  ;;  %v4333_v37 = vpack.c.bf16 %v1154_v6, %v1153_v28  ;;  %v1138_v39 = vld [vmem:[#allocation4 + $0x28] sm:$0xff]  ;;  %v1155_v38 = vld [vmem:[#allocation4 + $0xb0] sm:$0xff]  ;;  %v1156_v30 = vld [vmem:[#allocation4 + $0xb8] sm:$0xff] }
 0x128   :  { %4330 = vmatprep.subr.bf16.mxu0 %v4329_v29  ;;  %v4335_v7 = vpack.c.bf16 %v1138_v39, %v1137_v15  ;;  %v4337_v12 = vpack.c.bf16 %v1156_v30, %v1155_v38  ;;  %v1139_v13 = vld [vmem:[#allocation4 + $0x30] sm:$0xff]  ;;  %v1140_v21 = vld [vmem:[#allocation4 + $0x38] sm:$0xff]  ;;  %v1157_v47 = vld [vmem:[#allocation4 + $0xc0] sm:$0xff] }
 0x129   :  { %v1158_v45 = vld [vmem:[#allocation4 + $0xc8] sm:$0xff]  ;;  %v4339_v5 = vpack.c.bf16 %v1140_v21, %v1139_v13  ;;  %v1141_v14 = vld [vmem:[#allocation4 + $0x40] sm:$0xff]  ;;  %v1159_v23 = vld [vmem:[#allocation4 + $0xd0] sm:$0xff] }
 0x12a   :  { %v1126_v4 = vld [vmem:[%s9200_s0 + $0x8] sm:$0xff]  ;;  %v4341_v22 = vpack.c.bf16 %v1158_v45, %v1157_v47  ;;  %v1291_v15 = vld [vmem:[%s9203_s3 + $0x80] sm:$0xff]  ;;  %v1293_v38 = vld [vmem:[%s9203_s3 + $0x90] sm:$0xff] }
 0x12b   :  { %4332 = vmatpush3.bf16.msra.mxu0 %v4331_v20  ;;  %v1142_v6 = vld [vmem:[#allocation4 + $0x48] sm:$0xff]  ;;  %1236 = vmatprep.mubr.f32.mxu0 %v1126_v4  ;;  %v1160_v20 = vld [vmem:[#allocation4 + $0xd8] sm:$0xff]  ;;  %v1275_v29 = vld [vmem:[%s9203_s3] sm:$0xff] }
 0x12c   :  { %4334 = vmatprep.subr.bf16.mxu0 %v4333_v37  ;;  %v1292_v28 = vld [vmem:[%s9203_s3 + $0x88] sm:$0xff]  ;;  %v1294_v39 = vld [vmem:[%s9203_s3 + $0x98] sm:$0xff]  ;;  %v4343_v45 = vpack.c.bf16 %v1142_v6, %v1141_v14  ;;  %v4345_v13 = vpack.c.bf16 %v1160_v20, %v1159_v23  ;;  %v1143_v21 = vld [vmem:[#allocation4 + $0x50] sm:$0xff] }
 0x12d   :  { %v1276_v30 = vld [vmem:[%s9203_s3 + $0x8] sm:$0xff]  ;;  %v7957_v31 = vpack.c.bf16 %v1292_v28, %v1291_v15  ;;  %v7967_v47 = vpack.c.bf16 %v1294_v39, %v1293_v38  ;;  %v1144_v4 = vld [vmem:[#allocation4 + $0x58] sm:$0xff]  ;;  %v1161_v14 = vld [vmem:[#allocation4 + $0xe0] sm:$0xff] }
 0x12e   :  { %v7959_v37 = vpack.c.bf16 %v1276_v30, %v1275_v29  ;;  %v1162_v6 = vld [vmem:[#allocation4 + $0xe8] sm:$0xff]  ;;  %v1279_v23 = vld [vmem:[%s9203_s3 + $0x20] sm:$0xff]  ;;  %v4347_v29 = vpack.c.bf16 %v1144_v4, %v1143_v21  ;;  %v1297_v30 = vld [vmem:[%s9203_s3 + $0xb0] sm:$0xff] }
 0x12f   :  { %4336 = vmatpush3.bf16.msra.mxu0 %v4335_v7  ;;  %v1277_v7 = vld [vmem:[%s9203_s3 + $0x10] sm:$0xff]  ;;  %4358 = vmatprep.subr.bf16.mxu1 %v7957_v31  ;;  %v1296_v28 = vld [vmem:[%s9203_s3 + $0xa8] sm:$0xff]  ;;  %v1298_v38 = vld [vmem:[%s9203_s3 + $0xb8] sm:$0xff]  ;;  %v4349_v39 = vpack.c.bf16 %v1162_v6, %v1161_v14 }
 0x130   :  { %4338 = vmatprep.subr.bf16.mxu0 %v4337_v12  ;;  %v1278_v12 = vld [vmem:[%s9203_s3 + $0x18] sm:$0xff]  ;;  %4360 = vmatpush3.bf16.msra.mxu1 %v7959_v37  ;;  %v1280_v20 = vld [vmem:[%s9203_s3 + $0x28] sm:$0xff]  ;;  %v1281_v21 = vld [vmem:[%s9203_s3 + $0x30] sm:$0xff] }
 0x131   :  { %v7980_v15 = vpack.c.bf16 %v1278_v12, %v1277_v7  ;;  %4362 = vmatprep.subr.bf16.mxu1 %v7967_v47  ;;  %v1145_v7 = vld [vmem:[#allocation4 + $0x60] sm:$0xff]  ;;  %v1146_v12 = vld [vmem:[#allocation4 + $0x68] sm:$0xff]  ;;  %v8001_v44 = vpack.c.bf16 %v1280_v20, %v1279_v23  ;;  %v1147_v20 = vld [vmem:[#allocation4 + $0x70] sm:$0xff] }
 0x132   :  { %v4351_v4 = vpack.c.bf16 %v1146_v12, %v1145_v7  ;;  %v1299_v14 = vld [vmem:[%s9203_s3 + $0xc0] sm:$0xff]  ;;  %v1300_v6 = vld [vmem:[%s9203_s3 + $0xc8] sm:$0xff]  ;;  %v1301_v36 = vld [vmem:[%s9203_s3 + $0xd0] sm:$0xff] }
 0x133   :  { %4340 = vmatpush3.bf16.msra.mxu0 %v4339_v5  ;;  %v1295_v5 = vld [vmem:[%s9203_s3 + $0xa0] sm:$0xff]  ;;  %v8028_v12 = vpack.c.bf16 %v1300_v6, %v1299_v14  ;;  %v1325_v6 = vld [vmem:[%s9203_s3 + $0x190] sm:$0xff]  ;;  %v1128_v53 = vld [vmem:[%s9200_s0 + $0x18] sm:$0xff] }
 0x134   :  { %4342 = vmatprep.subr.bf16.mxu0 %v4341_v22  ;;  %v7986_v22 = vpack.c.bf16 %v1296_v28, %v1295_v5  ;;  %v1163_v5 = vld [vmem:[#allocation4 + $0xf0] sm:$0xff]  ;;  %v1164_v28 = vld [vmem:[#allocation4 + $0xf8] sm:$0xff]  ;;  %4364 = vmatpush3.bf16.msra.mxu1 %v7980_v15  ;;  %v1307_v14 = vld [vmem:[%s9203_s3 + $0x100] sm:$0xff] }
 0x135   :  { %v4353_v23 = vpack.c.bf16 %v1164_v28, %v1163_v5  ;;  %v1284_v5 = vld [vmem:[%s9203_s3 + $0x48] sm:$0xff]  ;;  %v1335_v58 = vld [vmem:[%s9203_s3 + $0x1e0] sm:$0xff] }
 0x136   :  { %4366 = vmatprep.subr.bf16.mxu1 %v7986_v22  ;;  %v1304_v54 = vld [vmem:[%s9203_s3 + $0xe8] sm:$0xff] }
 0x137   :  { %4344 = vmatpush3.bf16.msra.mxu0 %v4343_v45  ;;  %v8004_v45 = vpack.c.bf16 %v1298_v38, %v1297_v30  ;;  %v1148_v30 = vld [vmem:[#allocation4 + $0x78] sm:$0xff]  ;;  %v1323_v38 = vld [vmem:[%s9203_s3 + $0x180] sm:$0xff]  ;;  %v1288_v62 = vld [vmem:[%s9203_s3 + $0x68] sm:$0xff] }
 0x138   :  { %4346 = vmatprep.subr.bf16.mxu0 %v4345_v13  ;;  %v1282_v13 = vld [vmem:[%s9203_s3 + $0x38] sm:$0xff]  ;;  %4368 = vmatpush3.bf16.msra.mxu1 %v8001_v44  ;;  %v4355_v28 = vpack.c.bf16 %v1148_v30, %v1147_v20 }
 0x139   :  { %v8025_v7 = vpack.c.bf16 %v1282_v13, %v1281_v21  ;;  %4370 = vmatprep.subr.bf16.mxu1 %v8004_v45  ;;  %v1302_v21 = vld [vmem:[%s9203_s3 + $0xd8] sm:$0xff] }
 0x13a   :  { %v1326_v20 = vld [vmem:[%s9203_s3 + $0x198] sm:$0xff]  ;;  %v8060_v30 = vpack.c.bf16 %v1302_v21, %v1301_v36  ;;  %v1309_v36 = vld [vmem:[%s9203_s3 + $0x110] sm:$0xff] }
 0x13b   :  { %4348 = vmatpush3.bf16.msra.mxu0 %v4347_v29  ;;  %v1324_v29 = vld [vmem:[%s9203_s3 + $0x188] sm:$0xff]  ;;  %v8071_v55 = vpack.c.bf16 %v1326_v20, %v1325_v6  ;;  %v1127_v21 = vld [vmem:[%s9200_s0 + $0x10] sm:$0xff] }
 0x13c   :  { %4350 = vmatprep.subr.bf16.mxu0 %v4349_v39  ;;  %v1283_v39 = vld [vmem:[%s9203_s3 + $0x40] sm:$0xff]  ;;  %v8042_v13 = vpack.c.bf16 %v1324_v29, %v1323_v38  ;;  %4372 = vmatpush3.bf16.msra.mxu1 %v8025_v7  ;;  %v1312_v20 = vld [vmem:[%s9203_s3 + $0x128] sm:$0xff] }
 0x13d   :  { %4374 = vmatprep.subr.bf16.mxu1 %v8028_v12  ;;  %v1125_v38 = vld [vmem:[%s9200_s0] sm:$0xff] }
 0x13f   :  { %4352 = vmatpush3.bf16.msra.mxu0 %v4351_v4  ;;  %v1308_v4 = vld [vmem:[%s9203_s3 + $0x108] sm:$0xff] }
 0x140   :  { %4354 = vmatprep.subr.bf16.mxu0 %v4353_v23  ;;  %v8057_v23 = vpack.c.bf16 %v1284_v5, %v1283_v39  ;;  %v8065_v29 = vpack.c.bf16 %v1308_v4, %v1307_v14  ;;  %v1310_v39 = vld [vmem:[%s9203_s3 + $0x118] sm:$0xff]  ;;  %v1327_v5 = vld [vmem:[%s9203_s3 + $0x1a0] sm:$0xff]  ;;  %v1130_v4 = vld [vmem:[%s9200_s0 + $0x28] sm:$0xff] }
 0x141   :  { %v8091_v14 = vpack.c.bf16 %v1310_v39, %v1309_v36  ;;  %v1330_v36 = vld [vmem:[%s9203_s3 + $0x1b8] sm:$0xff]  ;;  %v1129_v39 = vld [vmem:[%s9200_s0 + $0x20] sm:$0xff] }
 0x142   :  { %4376 = vmatpush3.bf16.msra.mxu1 %v8057_v23 }
 0x143   :  { %4356 = vmatpush3.bf16.msra.mxu0 %v4355_v28  ;;  %v1328_v28 = vld [vmem:[%s9203_s3 + $0x1a8] sm:$0xff]  ;;  %4378 = vmatprep.subr.bf16.mxu1 %v8060_v30 }
 0x144   :  { %4390 = vmatprep.subr.bf16.mxu0 %v8042_v13  ;;  %v8097_v6 = vpack.c.bf16 %v1328_v28, %v1327_v5  ;;  %v1132_v28 = vld [vmem:[%s9200_s0 + $0x38] sm:$0xff] }
 0x146   :  { %1237 = vmatmul.mubr.f32.vlgmr.msra.gmra.mrb[0].mxu0 %v1125_v38  ;;  %v1329_v38 = vld [vmem:[%s9203_s3 + $0x1b0] sm:$0xff] }
 0x147   :  { %1241 = vmatprep.mubr.f32.mxu0 %v1128_v53  ;;  %4392 = vmatpush3.bf16.msra.mxu0 %v8065_v29  ;;  %v1311_v53 = vld [vmem:[%s9203_s3 + $0x120] sm:$0xff]  ;;  %v8121_v52 = vpack.c.bf16 %v1330_v36, %v1329_v38  ;;  %v1131_v38 = vld [vmem:[%s9200_s0 + $0x30] sm:$0xff] }
 0x148   :  { %4394 = vmatprep.subr.bf16.mxu0 %v8071_v55  ;;  %v8115_v5 = vpack.c.bf16 %v1312_v20, %v1311_v53  ;;  %v1331_v53 = vld [vmem:[%s9203_s3 + $0x1c0] sm:$0xff]  ;;  %v1332_v20 = vld [vmem:[%s9203_s3 + $0x1c8] sm:$0xff] }
 0x149   :  { %v8142_v46 = vpack.c.bf16 %v1332_v20, %v1331_v53  ;;  %v1316_v53 = vld [vmem:[%s9203_s3 + $0x148] sm:$0xff] }
 0x14a   :  { %1242 = vmatmul.mubr.f32.gmra.mrb[2].mxu0 %v1127_v21  ;;  %v1313_v21 = vld [vmem:[%s9203_s3 + $0x130] sm:$0xff] }
 0x14b   :  { %1246 = vmatprep.mubr.f32.mxu0 %v1130_v4  ;;  %4396 = vmatpush3.bf16.msra.mxu0 %v8091_v14  ;;  %v1314_v4 = vld [vmem:[%s9203_s3 + $0x138] sm:$0xff] }
 0x14c   :  { %4398 = vmatprep.subr.bf16.mxu0 %v8097_v6  ;;  %v8139_v36 = vpack.c.bf16 %v1314_v4, %v1313_v21  ;;  %v1315_v21 = vld [vmem:[%s9203_s3 + $0x140] sm:$0xff] }
 0x14d   :  { %v8160_v20 = vpack.c.bf16 %v1316_v53, %v1315_v21  ;;  %v1334_v21 = vld [vmem:[%s9203_s3 + $0x1d8] sm:$0xff]  ;;  %v1287_v53 = vld [vmem:[%s9203_s3 + $0x60] sm:$0xff] }
 0x14e   :  { %1247 = vmatmul.mubr.f32.gmra.mrb[4].mxu0 %v1129_v39  ;;  %v1285_v39 = vld [vmem:[%s9203_s3 + $0x50] sm:$0xff]  ;;  %v8193_v63 = vpack.c.bf16 %v1288_v62, %v1287_v53  ;;  %v1336_v53 = vld [vmem:[%s9203_s3 + $0x1e8] sm:$0xff] }
 0x14f   :  { %1251 = vmatprep.mubr.f32.mxu0 %v1132_v28  ;;  %4400 = vmatpush3.bf16.msra.mxu0 %v8115_v5  ;;  %v1286_v28 = vld [vmem:[%s9203_s3 + $0x58] sm:$0xff]  ;;  %v8220_v50 = vpack.c.bf16 %v1336_v53, %v1335_v58  ;;  %v1337_v58 = vld [vmem:[%s9203_s3 + $0x1f0] sm:$0xff] }
 0x150   :  { %4402 = vmatprep.subr.bf16.mxu0 %v8121_v52  ;;  %v8155_v4 = vpack.c.bf16 %v1286_v28, %v1285_v39  ;;  %v1333_v28 = vld [vmem:[%s9203_s3 + $0x1d0] sm:$0xff]  ;;  %v1338_v53 = vld [vmem:[%s9203_s3 + $0x1f8] sm:$0xff] }
 0x151   :  { %v8181_v61 = vpack.c.bf16 %v1334_v21, %v1333_v28  ;;  %v1305_v28 = vld [vmem:[%s9203_s3 + $0xf0] sm:$0xff]  ;;  %v1306_v21 = vld [vmem:[%s9203_s3 + $0xf8] sm:$0xff] }
 0x152   :  { %1252 = vmatmul.mubr.f32.gmra.mrb[6].mxu0 %v1131_v38  ;;  %4380 = vmatpush3.bf16.msra.mxu1 %v8155_v4  ;;  %v1303_v38 = vld [vmem:[%s9203_s3 + $0xe0] sm:$0xff]  ;;  %v8209_v62 = vpack.c.bf16 %v1306_v21, %v1305_v28  ;;  %v1320_v21 = vld [vmem:[%s9203_s3 + $0x168] sm:$0xff] }
 0x153   :  { %4404 = vmatpush3.bf16.msra.mxu0 %v8139_v36  ;;  %v8170_v39 = vpack.c.bf16 %v1304_v54, %v1303_v38  ;;  %v1317_v54 = vld [vmem:[%s9203_s3 + $0x150] sm:$0xff]  ;;  %v1318_v38 = vld [vmem:[%s9203_s3 + $0x158] sm:$0xff]  ;;  %v1319_v28 = vld [vmem:[%s9203_s3 + $0x160] sm:$0xff] }
 0x154   :  { %4406 = vmatprep.subr.bf16.mxu0 %v8142_v46  ;;  %v8195_v60 = vpack.c.bf16 %v1318_v38, %v1317_v54  ;;  %v1289_v54 = vld [vmem:[%s9203_s3 + $0x70] sm:$0xff]  ;;  %v1290_v38 = vld [vmem:[%s9203_s3 + $0x78] sm:$0xff]  ;;  %v8231_v48 = vpack.c.bf16 %v1320_v21, %v1319_v28 }
 0x155   :  { %4382 = vmatprep.subr.bf16.mxu1 %v8170_v39  ;;  %v8222_v56 = vpack.c.bf16 %v1290_v38, %v1289_v54  ;;  %v8242_v54 = vpack.c.bf16 %v1338_v53, %v1337_v58  ;;  %v1321_v38 = vld [vmem:[%s9203_s3 + $0x170] sm:$0xff]  ;;  %v1322_v28 = vld [vmem:[%s9203_s3 + $0x178] sm:$0xff]  ;;  %v3688_v53 = vld [vmem:[%s9202_s2] ss:$0 sm:$0xff] }
 0x156   :  { %4384 = vmatpush3.bf16.msra.mxu1 %v8193_v63  ;;  %v8251_v21 = vpack.c.bf16 %v1322_v28, %v1321_v38 }
 0x157   :  { %4408 = vmatpush3.bf16.msra.mxu0 %v8160_v20  ;;  %4386 = vmatprep.subr.bf16.mxu1 %v8209_v62 }
 0x158   :  { %4410 = vmatprep.subr.bf16.mxu0 %v8181_v61 }
 0x15a   :  { %4388 = vmatpush3.bf16.msra.mxu1 %v8222_v56 }
 0x15b   :  { %4412 = vmatpush3.bf16.msra.mxu0 %v8195_v60  ;;  %4422 = vmatprep.subr.bf16.mxu1 %v7957_v31 }
 0x15c   :  { %4414 = vmatprep.subr.bf16.mxu0 %v8220_v50 }
 0x15f   :  { %4416 = vmatpush3.bf16.msra.mxu0 %v8231_v48 }
 0x160   :  { %4418 = vmatprep.subr.bf16.mxu0 %v8242_v54 }
 0x163   :  { %4420 = vmatpush3.bf16.msra.mxu0 %v8251_v21 }
 0x164   :  { %4454 = vmatprep.subr.bf16.mxu0 %v8042_v13 }
 0x219   :  { %v3808_v58 = vpop.f32.mrb[0].mxu0 }
 0x21a   :  { %v3809_v59 = vpop.f32.mrb[1].mxu0 }
 0x21b   :  { %v3810_v51 = vadd.f32 %v3809_v59, %v3808_v58  ;;  %v1810_v58 = vld [vmem:[#allocation6 + $0xe8] sm:$0xff] }
 0x21d   :  { %v1239_v57 = vadd.f32 %v3810_v51, %v3688_v53  ;;  %v3811_v49 = vpop.f32.mrb[2].mxu0 }
 0x21e   :  { %v3812_v42 = vpop.f32.mrb[3].mxu0 }
 0x21f   :  { %v3813_v34 = vadd.f32 %v3812_v42, %v3811_v49  ;;  %vm1257_vm0 = vcmp.gt.f32.partialorder %v1239_v57, 0.0  ;;  %v1261_v38 = vmul.f32 0.01, %v1239_v57 }
 0x221   :  { %v1244_v28 = vadd.f32 %v3813_v34, %v3688_v53  ;;  %v1265_v40 = vsel %vm1257_vm0, %v1239_v57, %v1261_v38  ;;  %v3814_v32 = vpop.f32.mrb[4].mxu0  ;;  %v1783_v57 = vld [vmem:[#allocation6 + $0x10] sm:$0xff]  ;;  %v1793_v38 = vld [vmem:[#allocation6 + $0x60] sm:$0xff] }
 0x222   :  { %v1270_v43 = vrot.slane %v1265_v40, 4  ;;  %v3815_v35 = vpop.f32.mrb[5].mxu0 }
 0x223   :  { %vm1258_vm1 = vcmp.gt.f32.partialorder %v1244_v28, 0.0  ;;  %v1262_v41 = vmul.f32 0.01, %v1244_v28  ;;  %v3816_v33 = vadd.f32 %v3815_v35, %v3814_v32 }
 0x224   :  { %1410 = vmatprep.mubr.f32.mxu1 %v1270_v43 }
 0x225   :  { %1411 = vmatmul.mubr.f32.vlgmr.msra.gmra.mrb[0].mxu1 %v1265_v40  ;;  %v1266_v26 = vsel %vm1258_vm1, %v1244_v28, %v1262_v41  ;;  %v1249_v18 = vadd.f32 %v3816_v33, %v3688_v53  ;;  %v3817_v24 = vpop.f32.mrb[6].mxu0  ;;  %v1798_v40 = vld [vmem:[#allocation6 + $0x88] sm:$0xff]  ;;  %v1781_v41 = vld [vmem:[#allocation6] sm:$0xff] }
 0x226   :  { %4424 = vmatpush3.bf16.msra.mxu1 %v7959_v37  ;;  %v1273_v51 = vrot.slane %v1266_v26, 4  ;;  %v3818_v59 = vpop.f32.mrb[7].mxu0  ;;  %v1794_v28 = vld [vmem:[#allocation6 + $0x68] sm:$0xff] }
 0x227   :  { %4426 = vmatprep.subr.bf16.mxu1 %v7967_v47  ;;  %vm1259_vm2 = vcmp.gt.f32.partialorder %v1249_v18, 0.0  ;;  %v1263_v34 = vmul.f32 0.01, %v1249_v18  ;;  %v3819_v42 = vadd.f32 %v3818_v59, %v3817_v24  ;;  %v1811_v59 = vld [vmem:[#allocation6 + $0xf0] sm:$0xff] }
 0x228   :  { %1480 = vmatprep.mubr.f32.mxu0 %v1273_v51  ;;  %1556 = vmatprep.mubr.f32.mxu1 %v1273_v51  ;;  %v4575_v51 = vpack.c.bf16 %v1794_v28, %v1793_v38 }
 0x229   :  { %1481 = vmatmul.mubr.f32.vlgmr.msra.gmra.mrb[8].mxu0 %v1266_v26  ;;  %v8261_v49 = vsel %vm1259_vm2, %v1249_v18, %v1263_v34  ;;  %v1254_v18 = vadd.f32 %v3819_v42, %v3688_v53  ;;  %v1812_v34 = vld [vmem:[#allocation6 + $0xf8] sm:$0xff]  ;;  %v1795_v42 = vld [vmem:[#allocation6 + $0x70] sm:$0xff] }
 0x22a   :  { %4428 = vmatpush3.bf16.msra.mxu1 %v7980_v15  ;;  %4456 = vmatpush3.bf16.msra.mxu0 %v8065_v29  ;;  %v1490_v32 = vrot.slane %v8261_v49, 4 }
 0x22b   :  { %4430 = vmatprep.subr.bf16.mxu1 %v7986_v22  ;;  %4458 = vmatprep.subr.bf16.mxu0 %v8071_v55  ;;  %v1264_v24 = vmul.f32 0.01, %v1254_v18  ;;  %vm1260_vm3 = vcmp.gt.f32.partialorder %v1254_v18, 0.0 }
 0x22c   :  { %1626 = vmatprep.mubr.f32.mxu0 %v1490_v32 }
 0x22d   :  { %v1268_v33 = vsel %vm1260_vm3, %v1254_v18, %v1264_v24  ;;  %v1813_v24 = vld [vmem:[#allocation6 + $0x100] sm:$0xff] }
 0x22e   :  { %4432 = vmatpush3.bf16.msra.mxu1 %v8001_v44  ;;  %4460 = vmatpush3.bf16.msra.mxu0 %v8091_v14  ;;  %v1636_v35 = vrot.slane %v1268_v33, 4 }
 0x22f   :  { %4434 = vmatprep.subr.bf16.mxu1 %v8004_v45  ;;  %4462 = vmatprep.subr.bf16.mxu0 %v8097_v6 }
 0x232   :  { %4436 = vmatpush3.bf16.msra.mxu1 %v8025_v7  ;;  %4464 = vmatpush3.bf16.msra.mxu0 %v8115_v5 }
 0x233   :  { %4438 = vmatprep.subr.bf16.mxu1 %v8028_v12  ;;  %4466 = vmatprep.subr.bf16.mxu0 %v8121_v52 }
 0x236   :  { %4440 = vmatpush3.bf16.msra.mxu1 %v8057_v23  ;;  %4468 = vmatpush3.bf16.msra.mxu0 %v8139_v36 }
 0x237   :  { %4442 = vmatprep.subr.bf16.mxu1 %v8060_v30  ;;  %4470 = vmatprep.subr.bf16.mxu0 %v8142_v46 }
 0x23a   :  { %4444 = vmatpush3.bf16.msra.mxu1 %v8155_v4  ;;  %4472 = vmatpush3.bf16.msra.mxu0 %v8160_v20 }
 0x23b   :  { %4446 = vmatprep.subr.bf16.mxu1 %v8170_v39  ;;  %4474 = vmatprep.subr.bf16.mxu0 %v8181_v61 }
 0x23e   :  { %4448 = vmatpush3.bf16.msra.mxu1 %v8193_v63  ;;  %4476 = vmatpush3.bf16.msra.mxu0 %v8195_v60 }
 0x23f   :  { %4450 = vmatprep.subr.bf16.mxu1 %v8209_v62  ;;  %4478 = vmatprep.subr.bf16.mxu0 %v8220_v50 }
 0x242   :  { %4452 = vmatpush3.bf16.msra.mxu1 %v8222_v56  ;;  %4480 = vmatpush3.bf16.msra.mxu0 %v8231_v48 }
 0x243   :  { %4482 = vmatprep.subr.bf16.mxu0 %v8242_v54  ;;  %4486 = vmatprep.subr.bf16.mxu1 %v7957_v31  ;;  %v1785_v31 = vld [vmem:[#allocation6 + $0x20] sm:$0xff] }
 0x245   :  { %1557 = vmatmul.mubr.f32.vlgmr.msra.gmra.mrb[2].mxu1 %v1266_v26  ;;  %v1797_v26 = vld [vmem:[#allocation6 + $0x80] sm:$0xff] }
 0x246   :  { %4484 = vmatpush3.bf16.msra.mxu0 %v8251_v21  ;;  %4488 = vmatpush3.bf16.msra.mxu1 %v7959_v37  ;;  %v4549_v43 = vpack.c.bf16 %v1798_v40, %v1797_v26  ;;  %v1786_v37 = vld [vmem:[#allocation6 + $0x28] sm:$0xff]  ;;  %v5299_v26 = vmov 0.0|0.0   ;;  %v1815_v40 = vld [vmem:[#allocation6 + $0x110] sm:$0xff] }
 0x247   :  { %1702 = vmatprep.mubr.f32.mxu1 %v1490_v32  ;;  %4490 = vmatprep.subr.bf16.mxu1 %v7967_v47  ;;  %v1803_v47 = vld [vmem:[#allocation6 + $0xb0] sm:$0xff]  ;;  %v1796_v32 = vld [vmem:[#allocation6 + $0x78] sm:$0xff] }
 0x248   :  { %4518 = vmatprep.subr.bf16.mxu0 %v8042_v13  ;;  %v1805_v13 = vld [vmem:[#allocation6 + $0xc0] sm:$0xff]  ;;  %v4579_v18 = vpack.c.bf16 %v1796_v32, %v1795_v42 }
 0x249   :  { %1627 = vmatmul.mubr.f32.vlgmr.msra.gmra.mrb[10].mxu0 %v8261_v49 }
 0x24a   :  { %4492 = vmatpush3.bf16.msra.mxu1 %v7980_v15  ;;  %4520 = vmatpush3.bf16.msra.mxu0 %v8065_v29  ;;  %v1804_v15 = vld [vmem:[#allocation6 + $0xb8] sm:$0xff] }
 0x24b   :  { %4494 = vmatprep.subr.bf16.mxu1 %v7986_v22  ;;  %4522 = vmatprep.subr.bf16.mxu0 %v8071_v55  ;;  %v4559_v22 = vpack.c.bf16 %v1786_v37, %v1785_v31  ;;  %v1825_v37 = vld [vmem:[#allocation6 + $0x160] sm:$0xff] }
 0x24c   :  { %1772 = vmatprep.mubr.f32.mxu0 %v1636_v35 }
 0x24e   :  { %4496 = vmatpush3.bf16.msra.mxu1 %v8001_v44  ;;  %4524 = vmatpush3.bf16.msra.mxu0 %v8091_v14  ;;  %v1782_v44 = vld [vmem:[#allocation6 + $0x8] sm:$0xff]  ;;  %v1789_v14 = vld [vmem:[#allocation6 + $0x40] sm:$0xff] }
 0x24f   :  { %4498 = vmatprep.subr.bf16.mxu1 %v8004_v45  ;;  %4526 = vmatprep.subr.bf16.mxu0 %v8097_v6  ;;  %v4551_v55 = vpack.c.bf16 %v1782_v44, %v1781_v41  ;;  %v4561_v45 = vpack.c.bf16 %v1804_v15, %v1803_v47  ;;  %v1790_v6 = vld [vmem:[#allocation6 + $0x48] sm:$0xff]  ;;  %v1816_v41 = vld [vmem:[#allocation6 + $0x118] sm:$0xff]  ;;  %v1817_v44 = vld [vmem:[#allocation6 + $0x120] sm:$0xff] }
 0x250   :  { %v1826_v47 = vld [vmem:[#allocation6 + $0x168] sm:$0xff] }
 0x251   :  { %v4600_v15 = vpack.c.bf16 %v1826_v47, %v1825_v37 }
 0x252   :  { %4500 = vmatpush3.bf16.msra.mxu1 %v8025_v7  ;;  %4528 = vmatpush3.bf16.msra.mxu0 %v8115_v5  ;;  %v1787_v7 = vld [vmem:[#allocation6 + $0x30] sm:$0xff]  ;;  %v4567_v5 = vpack.c.bf16 %v1790_v6, %v1789_v14 }
 0x253   :  { %4502 = vmatprep.subr.bf16.mxu1 %v8028_v12  ;;  %4530 = vmatprep.subr.bf16.mxu0 %v8121_v52  ;;  %v1800_v52 = vld [vmem:[#allocation6 + $0x98] sm:$0xff] }
 0x254   :  { %v1788_v12 = vld [vmem:[#allocation6 + $0x38] sm:$0xff] }
 0x256   :  { %4504 = vmatpush3.bf16.msra.mxu1 %v8057_v23  ;;  %4532 = vmatpush3.bf16.msra.mxu0 %v8139_v36  ;;  %v1806_v23 = vld [vmem:[#allocation6 + $0xc8] sm:$0xff]  ;;  %v1807_v36 = vld [vmem:[#allocation6 + $0xd0] sm:$0xff] }
 0x257   :  { %4506 = vmatprep.subr.bf16.mxu1 %v8060_v30  ;;  %4534 = vmatprep.subr.bf16.mxu0 %v8142_v46  ;;  %v1799_v46 = vld [vmem:[#allocation6 + $0x90] sm:$0xff]  ;;  %v4563_v30 = vpack.c.bf16 %v1788_v12, %v1787_v7  ;;  %v4565_v29 = vpack.c.bf16 %v1806_v23, %v1805_v13  ;;  %v5301_v12 = vmov 0.0  }
 0x25a   :  { %4508 = vmatpush3.bf16.msra.mxu1 %v8155_v4  ;;  %4536 = vmatpush3.bf16.msra.mxu0 %v8160_v20  ;;  %v1808_v4 = vld [vmem:[#allocation6 + $0xd8] sm:$0xff] }
 0x25b   :  { %4510 = vmatprep.subr.bf16.mxu1 %v8170_v39  ;;  %4538 = vmatprep.subr.bf16.mxu0 %v8181_v61  ;;  %v4569_v20 = vpack.c.bf16 %v1808_v4, %v1807_v36  ;;  %v1791_v39 = vld [vmem:[#allocation6 + $0x50] sm:$0xff] }
 0x25e   :  { %4512 = vmatpush3.bf16.msra.mxu1 %v8193_v63  ;;  %4540 = vmatpush3.bf16.msra.mxu0 %v8195_v60  ;;  %v1801_v60 = vld [vmem:[#allocation6 + $0xa0] sm:$0xff] }
 0x25f   :  { %4514 = vmatprep.subr.bf16.mxu1 %v8209_v62  ;;  %4542 = vmatprep.subr.bf16.mxu0 %v8220_v50  ;;  %v4553_v50 = vpack.c.bf16 %v1800_v52, %v1799_v46  ;;  %v1792_v62 = vld [vmem:[#allocation6 + $0x58] sm:$0xff]  ;;  %v1818_v46 = vld [vmem:[#allocation6 + $0x128] sm:$0xff] }
 0x260   :  { %v4588_v52 = vpack.c.bf16 %v1818_v46, %v1817_v44  ;;  %v1969_v44 = vlaneseq }
 0x262   :  { %4516 = vmatpush3.bf16.msra.mxu1 %v8222_v56  ;;  %4544 = vmatpush3.bf16.msra.mxu0 %v8231_v48  ;;  %v1784_v56 = vld [vmem:[#allocation6 + $0x18] sm:$0xff]  ;;  %v1802_v48 = vld [vmem:[#allocation6 + $0xa8] sm:$0xff]  ;;  %v8354_v46 = vand.u32 127, %v1969_v44 }
 0x263   :  { %4546 = vmatprep.subr.bf16.mxu0 %v8242_v54  ;;  %4550 = vmatprep.subr.bf16.mxu1 %v4549_v43  ;;  %v4555_v61 = vpack.c.bf16 %v1784_v56, %v1783_v57  ;;  %v4557_v63 = vpack.c.bf16 %v1802_v48, %v1801_v60  ;;  %v4571_v54 = vpack.c.bf16 %v1792_v62, %v1791_v39  ;;  %v1821_v56 = vld [vmem:[#allocation6 + $0x140] sm:$0xff]  ;;  %v1822_v60 = vld [vmem:[#allocation6 + $0x148] sm:$0xff] }
 0x264   :  { %v4585_v43 = vpack.c.bf16 %v1816_v41, %v1815_v40  ;;  %v4594_v48 = vpack.c.bf16 %v1822_v60, %v1821_v56  ;;  %vm2038_vm9 = vcmp.lt.s32.totalorder %v8354_v46, 10 }
 0x265   :  { %1703 = vmatmul.mubr.f32.vlgmr.msra.gmra.mrb[4].mxu1 %v8261_v49  ;;  %v4577_v49 = vpack.c.bf16 %v1812_v34, %v1811_v59 }
 0x266   :  { %4548 = vmatpush3.bf16.msra.mxu0 %v8251_v21  ;;  %4552 = vmatpush3.bf16.msra.mxu1 %v4551_v55  ;;  %v1809_v21 = vld [vmem:[#allocation6 + $0xe0] sm:$0xff]  ;;  %v1819_v55 = vld [vmem:[#allocation6 + $0x130] sm:$0xff] }
 0x267   :  { %4554 = vmatprep.subr.bf16.mxu1 %v4553_v50  ;;  %v4573_v53 = vpack.c.bf16 %v1810_v58, %v1809_v21  ;;  %4581 = vmatprep.subr.bf16.mxu0 %v5299_v26  ;;  %v1820_v50 = vld [vmem:[#allocation6 + $0x138] sm:$0xff] }
 0x268   :  { %v4591_v57 = vpack.c.bf16 %v1820_v50, %v1819_v55  ;;  %v8359_v55 = vmul.u32 5, %v8354_v46 }
 0x269   :  { %1773 = vmatmul.mubr.f32.vlgmr.msra.gmra.mrb[12].mxu0 %v1268_v33  ;;  %v1814_v33 = vld [vmem:[#allocation6 + $0x108] sm:$0xff] }
 0x26a   :  { %4556 = vmatpush3.bf16.msra.mxu1 %v4555_v61  ;;  %v4582_v35 = vpack.c.bf16 %v1814_v33, %v1813_v24  ;;  %v1823_v61 = vld [vmem:[#allocation6 + $0x150] sm:$0xff]  ;;  %4182 = vmatprep.mubr.msk.f32.mxu0 %vm9211_vm4, %v5301_v12 }
 0x26b   :  { %4558 = vmatprep.subr.bf16.mxu1 %v4557_v63  ;;  %v1824_v63 = vld [vmem:[#allocation6 + $0x158] sm:$0xff] }
 0x26c   :  { %4583 = vmatpush3.bf16.msra.mxu0 %v4582_v35  ;;  %v4597_v31 = vpack.c.bf16 %v1824_v63, %v1823_v61 }
 0x26d   :  { %4584 = vmatprep.subr.bf16.mxu0 %v5299_v26 }
 0x26e   :  { %4560 = vmatpush3.bf16.msra.mxu1 %v4559_v22  ;;  %v1827_v22 = vld [vmem:[#allocation6 + $0x170] sm:$0xff] }
 0x26f   :  { %4562 = vmatprep.subr.bf16.mxu1 %v4561_v45  ;;  %v1828_v45 = vld [vmem:[#allocation6 + $0x178] sm:$0xff] }
 0x270   :  { %4586 = vmatpush3.bf16.msra.mxu0 %v4585_v43  ;;  %v4603_v7 = vpack.c.bf16 %v1828_v45, %v1827_v22 }
 0x271   :  { %4587 = vmatprep.subr.bf16.mxu0 %v5299_v26 }
 0x272   :  { %4564 = vmatpush3.bf16.msra.mxu1 %v4563_v30 }
 0x273   :  { %4566 = vmatprep.subr.bf16.mxu1 %v4565_v29  ;;  %v3689_v29 = vld [vmem:[%s9204_s4] ss:$0 sm:$0xff] }
 0x274   :  { %4589 = vmatpush3.bf16.msra.mxu0 %v4588_v52  ;;  %v8356_v52 = vshrl.u32 %v1969_v44, 7 }
 0x275   :  { %4590 = vmatprep.subr.bf16.mxu0 %v5299_v26 }
 0x276   :  { %4568 = vmatpush3.bf16.msra.mxu1 %v4567_v5  ;;  %v1971_v50 = vadd.s32 8, %v8356_v52  ;;  %vm1989_vm8 = vcmp.ge.s32.totalorder %v8356_v52, %v8359_v55  ;;  %v1972_v56 = vadd.s32 16, %v8356_v52  ;;  %v1973_v60 = vadd.s32 24, %v8356_v52 }
 0x277   :  { %4570 = vmatprep.subr.bf16.mxu1 %v4569_v20  ;;  %v1975_v63 = vadd.s32 40, %v8356_v52  ;;  %v1976_v37 = vadd.s32 48, %v8356_v52  ;;  %v1978_v22 = vadd.s32 64, %v8356_v52 }
 0x278   :  { %4592 = vmatpush3.bf16.msra.mxu0 %v4591_v57  ;;  %v8365_v57 = vadd.s32 5, %v8359_v55  ;;  %vm1990_vm10 = vcmp.ge.s32.totalorder %v1971_v50, %v8359_v55  ;;  %vm1991_vm0 = vcmp.ge.s32.totalorder %v1972_v56, %v8359_v55  ;;  %vm1992_vm3 = vcmp.ge.s32.totalorder %v1973_v60, %v8359_v55 }
 0x279   :  { %4593 = vmatprep.subr.bf16.mxu0 %v5299_v26 }
 0x27a   :  { %4572 = vmatpush3.bf16.msra.mxu1 %v4571_v54  ;;  %vm2006_vm11 = vcmp.lt.s32.totalorder %v8356_v52, %v8365_v57  ;;  %vm2007_vm12 = vcmp.lt.s32.totalorder %v1971_v50, %v8365_v57  ;;  %vm2008_vm1 = vcmp.lt.s32.totalorder %v1972_v56, %v8365_v57 }
 0x27b   :  { %4574 = vmatprep.subr.bf16.mxu1 %v4573_v53  ;;  %vm2022_vm13 = vmand %vm1989_vm8, %vm2006_vm11 }
 0x27c   :  { %4595 = vmatpush3.bf16.msra.mxu0 %v4594_v48  ;;  %vm2023_vm14 = vmand %vm1990_vm10, %vm2007_vm12  ;;  %v1974_v48 = vadd.s32 32, %v8356_v52 }
 0x27d   :  { %4596 = vmatprep.subr.bf16.mxu0 %v5299_v26  ;;  %vm2039_vm15 = vmand %vm2022_vm13, %vm2038_vm9 }
 0x27e   :  { %4576 = vmatpush3.bf16.msra.mxu1 %v4575_v51  ;;  %vm2040_vm2 = vmand %vm2023_vm14, %vm2038_vm9  ;;  %vm1993_vm11 = vcmp.ge.s32.totalorder %v1974_v48, %v8359_v55  ;;  %vm2010_vm12 = vcmp.lt.s32.totalorder %v1974_v48, %v8365_v57  ;;  %vm1994_vm14 = vcmp.ge.s32.totalorder %v1975_v63, %v8359_v55 }
 0x27f   :  { %4578 = vmatprep.subr.bf16.mxu1 %v4577_v49 }
 0x280   :  { %4598 = vmatpush3.bf16.msra.mxu0 %v4597_v31  ;;  %v5302_v31 = vmov 1.0|1.0  }
 0x281   :  { %4599 = vmatprep.subr.bf16.mxu0 %v5299_v26 }
 0x282   :  { %4580 = vmatpush3.bf16.msra.mxu1 %v4579_v18 }
 0x283   :  { %4605 = vmatprep.subr.bf16.mxu1 %v5299_v26 }
 0x284   :  { %4601 = vmatpush3.bf16.msra.mxu0 %v4600_v15  ;;  %v1977_v15 = vadd.s32 56, %v8356_v52 }
 0x285   :  { %4602 = vmatprep.subr.bf16.mxu0 %v5299_v26 }
 0x288   :  { %4604 = vmatpush3.bf16.msra.mxu0 %v4603_v7  ;;  %v1979_v7 = vadd.s32 72, %v8356_v52 }
 0x289   :  { %4629 = vmatprep.subr.bf16.mxu0 %v5299_v26 }
 0x2f8   :  { %v3852_v13 = vpop.f32.mrb[0].mxu1 }
 0x2f9   :  { %v3853_v23 = vpop.f32.mrb[1].mxu1 }
 0x2fa   :  { %v3854_v30 = vadd.f32 %v3853_v23, %v3852_v13  ;;  %v1980_v13 = vadd.s32 80, %v8356_v52  ;;  %v9724_v23 = vmov 0 }
 0x2fc   :  { %v3887_v14 = vpop.f32.mrb[8].mxu0  ;;  %v1413_v5 = vadd.f32 %v3854_v30, %v3689_v29  ;;  %v1981_v30 = vadd.s32 88, %v8356_v52 }
 0x2fd   :  { %v3888_v6 = vpop.f32.mrb[9].mxu0 }
 0x2fe   :  { %v3889_v36 = vadd.f32 %v3888_v6, %v3887_v14  ;;  %v9726_v14 = vmov 0  ;;  %v1983_v6 = vadd.s32 104, %v8356_v52 }
 0x300   :  { %v1483_v4 = vadd.f32 %v3889_v36, %v1413_v5  ;;  %v1984_v5 = vadd.s32 112, %v8356_v52  ;;  %v9728_v36 = vmov 0 }
 0x302   :  { %v1487_v28 = vmul.f32 0.01, %v1483_v4  ;;  %vm1486_vm6 = vcmp.gt.f32.partialorder %v1483_v4, 0.0 }
 0x304   :  { %v8344_v34 = vsel %vm1486_vm6, %v1483_v4, %v1487_v28  ;;  %vm8383_vm6 = vmpackc.low %vm2040_vm2, %vm2039_vm15  ;;  %vm2011_vm15 = vcmp.lt.s32.totalorder %v1975_v63, %v8365_v57  ;;  %v1985_v4 = vadd.s32 120, %v8356_v52  ;;  %v8552_v28 = vsub.s32 3, %v8356_v52 }
 0x305   :  { %vm2027_vm2 = vmand %vm1994_vm14, %vm2011_vm15 }
 0x318   :  { %v3922_v20 = vpop.f32.mrb[2].mxu1 }
 0x319   :  { %v3923_v39 = vpop.f32.mrb[3].mxu1 }
 0x31a   :  { %v3924_v62 = vadd.f32 %v3923_v39, %v3922_v20 }
 0x31c   :  { %v3957_v54 = vpop.f32.mrb[10].mxu0  ;;  %v1559_v58 = vadd.f32 %v3924_v62, %v3689_v29 }
 0x31d   :  { %v3958_v21 = vpop.f32.mrb[11].mxu0 }
 0x31e   :  { %v3959_v53 = vadd.f32 %v3958_v21, %v3957_v54 }
 0x320   :  { %v1629_v38 = vadd.f32 %v3959_v53, %v1559_v58  ;;  %v8543_v58 = vsub.s32 0, %v8356_v52  ;;  %v8546_v53 = vsub.s32 1, %v8356_v52 }
 0x322   :  { %vm1632_vm5 = vcmp.gt.f32.partialorder %v1629_v38, 0.0  ;;  %v1633_v51 = vmul.f32 0.01, %v1629_v38 }
 0x324   :  { %v8341_v59 = vsel %vm1632_vm5, %v1629_v38, %v1633_v51  ;;  %vm2009_vm5 = vcmp.lt.s32.totalorder %v1973_v60, %v8365_v57  ;;  %v8549_v38 = vsub.s32 2, %v8356_v52 }
 0x325   :  { %1893 = vmatprep.mubr.f32.mxu1 %v8341_v59  ;;  %vm2025_vm8 = vmand %vm1992_vm3, %vm2009_vm5  ;;  %vm1995_vm5 = vcmp.ge.s32.totalorder %v1976_v37, %v8359_v55 }
 0x326   :  { %1894 = vmatmul.mubr.f32.vlgmr.msra.gmra.mrb[6].mxu1 %v8344_v34  ;;  %vm2042_vm13 = vmand %vm2025_vm8, %vm2038_vm9 }
 0x327   :  { %4217 = vmatprep.mubr.msk.f32.mxu1 %vm9211_vm4, %v5301_v12  ;;  %4607 = vmatpush3.bf16.msk.msra.mxu1 %vm8383_vm6, %v5302_v31  ;;  %vm2044_vm8 = vmand %vm2027_vm2, %vm2038_vm9  ;;  %vm2014_vm2 = vcmp.lt.s32.totalorder %v1978_v22, %v8365_v57 }
 0x328   :  { %4608 = vmatprep.subr.bf16.mxu1 %v5299_v26 }
 0x338   :  { %v3992_v42 = vpop.f32.mrb[4].mxu1 }
 0x339   :  { %v3993_v49 = vpop.f32.mrb[5].mxu1 }
 0x33a   :  { %v3994_v32 = vadd.f32 %v3993_v49, %v3992_v42 }
 0x33c   :  { %v4027_v18 = vpop.f32.mrb[12].mxu0  ;;  %v1705_v33 = vadd.f32 %v3994_v32, %v3689_v29  ;;  %v1982_v29 = vadd.s32 96, %v8356_v52 }
 0x33d   :  { %v4028_v24 = vpop.f32.mrb[13].mxu0 }
 0x33e   :  { %v4029_v35 = vadd.f32 %v4028_v24, %v4027_v18 }
 0x340   :  { %v1775_v40 = vadd.f32 %v4029_v35, %v1705_v33 }
 0x342   :  { %v1779_v41 = vmul.f32 0.01, %v1775_v40  ;;  %vm1778_vm7 = vcmp.gt.f32.partialorder %v1775_v40, 0.0 }
 0x344   :  { %v8349_v43 = vsel %vm1778_vm7, %v1775_v40, %v1779_v41  ;;  %vm2024_vm7 = vmand %vm1991_vm0, %vm2008_vm1 }
 0x345   :  { %4183 = vmatmul.mubr.f32.vlgmr.msra.gmra.mrb[14].mxu0 %v8349_v43  ;;  %vm2041_vm10 = vmand %vm2024_vm7, %vm2038_vm9  ;;  %vm2012_vm7 = vcmp.lt.s32.totalorder %v1976_v37, %v8365_v57 }
 0x346   :  { %4252 = vmatprep.mubr.msk.f32.mxu0 %vm9211_vm4, %v5301_v12  ;;  %4631 = vmatpush3.bf16.msk.msra.mxu0 %vm8383_vm6, %v5302_v31  ;;  %vm8405_vm0 = vmpackc.low %vm2042_vm13, %vm2041_vm10  ;;  %vm1996_vm10 = vcmp.ge.s32.totalorder %v1977_v15, %v8359_v55  ;;  %vm2013_vm13 = vcmp.lt.s32.totalorder %v1977_v15, %v8365_v57  ;;  %vm2015_vm4 = vcmp.lt.s32.totalorder %v1979_v7, %v8365_v57 }
 0x347   :  { %4632 = vmatprep.subr.bf16.mxu0 %v5299_v26  ;;  %4610 = vmatpush3.bf16.msk.msra.mxu1 %vm8405_vm0, %v5302_v31  ;;  %vm2026_vm1 = vmand %vm1993_vm11, %vm2010_vm12 }
 0x348   :  { %4611 = vmatprep.subr.bf16.mxu1 %v5299_v26  ;;  %vm2043_vm3 = vmand %vm2026_vm1, %vm2038_vm9  ;;  %vm1997_vm1 = vcmp.ge.s32.totalorder %v1978_v22, %v8359_v55 }
 0x349   :  { %vm8427_vm11 = vmpackc.low %vm2044_vm8, %vm2043_vm3  ;;  %vm1998_vm8 = vcmp.ge.s32.totalorder %v1979_v7, %v8359_v55 }
 0x34a   :  { %4634 = vmatpush3.bf16.msk.msra.mxu0 %vm8405_vm0, %v5302_v31  ;;  %vm2028_vm12 = vmand %vm1995_vm5, %vm2012_vm7 }
 0x34b   :  { %4635 = vmatprep.subr.bf16.mxu0 %v5299_v26  ;;  %4613 = vmatpush3.bf16.msk.msra.mxu1 %vm8427_vm11, %v5302_v31  ;;  %vm2029_vm14 = vmand %vm1996_vm10, %vm2013_vm13 }
 0x34c   :  { %4614 = vmatprep.subr.bf16.mxu1 %v5299_v26  ;;  %vm2045_vm15 = vmand %vm2028_vm12, %vm2038_vm9  ;;  %vm1999_vm12 = vcmp.ge.s32.totalorder %v1980_v13, %v8359_v55 }
 0x34d   :  { %vm2046_vm3 = vmand %vm2029_vm14, %vm2038_vm9  ;;  %vm2016_vm14 = vcmp.lt.s32.totalorder %v1980_v13, %v8365_v57 }
 0x34e   :  { %4637 = vmatpush3.bf16.msk.msra.mxu0 %vm8427_vm11, %v5302_v31  ;;  %vm8449_vm5 = vmpackc.low %vm2046_vm3, %vm2045_vm15  ;;  %vm2000_vm3 = vcmp.ge.s32.totalorder %v1981_v30, %v8359_v55 }
 0x34f   :  { %4638 = vmatprep.subr.bf16.mxu0 %v5299_v26  ;;  %v9725_v23 = vsel %vm8449_vm5, 4294967295, %v9724_v23  ;;  %4616 = vmatpush3.bf16.msk.msra.mxu1 %vm8449_vm5, %v5302_v31  ;;  %vm2030_vm7 = vmand %vm1997_vm1, %vm2014_vm2 }
 0x350   :  { %4617 = vmatprep.subr.bf16.mxu1 %v5299_v26  ;;  %vm2031_vm10 = vmand %vm1998_vm8, %vm2015_vm4 }
 0x351   :  { %vm2047_vm13 = vmand %vm2030_vm7, %vm2038_vm9  ;;  %vm2001_vm7 = vcmp.ge.s32.totalorder %v1982_v29, %v8359_v55 }
 0x352   :  { %4640 = vmatpush3.bf16.msk.msra.mxu0 %vm8449_vm5, %v5302_v31  ;;  %vm2048_vm15 = vmand %vm2031_vm10, %vm2038_vm9  ;;  %vm2017_vm5 = vcmp.lt.s32.totalorder %v1981_v30, %v8365_v57  ;;  %vm2018_vm10 = vcmp.lt.s32.totalorder %v1982_v29, %v8365_v57 }
 0x353   :  { %4641 = vmatprep.subr.bf16.mxu0 %v5299_v26  ;;  %vm8471_vm1 = vmpackc.low %vm2048_vm15, %vm2047_vm13  ;;  %vm2002_vm15 = vcmp.ge.s32.totalorder %v1983_v6, %v8359_v55 }
 0x354   :  { %v9727_v14 = vsel %vm8471_vm1, 4294967295, %v9726_v14  ;;  %4619 = vmatpush3.bf16.msk.msra.mxu1 %vm8471_vm1, %v5302_v31  ;;  %vm2032_vm4 = vmand %vm1999_vm12, %vm2016_vm14 }
 0x355   :  { %4620 = vmatprep.subr.bf16.mxu1 %v5299_v26  ;;  %vm2033_vm2 = vmand %vm2000_vm3, %vm2017_vm5 }
 0x356   :  { %4643 = vmatpush3.bf16.msk.msra.mxu0 %vm8471_vm1, %v5302_v31  ;;  %vm2049_vm8 = vmand %vm2032_vm4, %vm2038_vm9  ;;  %vm2019_vm1 = vcmp.lt.s32.totalorder %v1983_v6, %v8365_v57  ;;  %vm2003_vm4 = vcmp.ge.s32.totalorder %v1984_v5, %v8359_v55 }
 0x357   :  { %4644 = vmatprep.subr.bf16.mxu0 %v5299_v26  ;;  %vm2050_vm13 = vmand %vm2033_vm2, %vm2038_vm9  ;;  %vm2020_vm2 = vcmp.lt.s32.totalorder %v1984_v5, %v8365_v57 }
 0x358   :  { %vm8493_vm12 = vmpackc.low %vm2050_vm13, %vm2049_vm8  ;;  %vm2004_vm13 = vcmp.ge.s32.totalorder %v1985_v4, %v8359_v55 }
 0x359   :  { %v9729_v36 = vsel %vm8493_vm12, 4294967295, %v9728_v36  ;;  %4622 = vmatpush3.bf16.msk.msra.mxu1 %vm8493_vm12, %v5302_v31  ;;  %vm2034_vm5 = vmand %vm2001_vm7, %vm2018_vm10 }
 0x35a   :  { %4646 = vmatpush3.bf16.msk.msra.mxu0 %vm8493_vm12, %v5302_v31  ;;  %4623 = vmatprep.subr.bf16.mxu1 %v5299_v26  ;;  %vm2035_vm14 = vmand %vm2002_vm15, %vm2019_vm1  ;;  %vm2021_vm12 = vcmp.lt.s32.totalorder %v1985_v4, %v8365_v57 }
 0x35b   :  { %4647 = vmatprep.subr.bf16.mxu0 %v5299_v26  ;;  %vm2051_vm3 = vmand %vm2034_vm5, %vm2038_vm9 }
 0x35c   :  { %vm2052_vm8 = vmand %vm2035_vm14, %vm2038_vm9 }
 0x35d   :  { %vm8514_vm7 = vmpackc.low %vm2052_vm8, %vm2051_vm3  ;;  %vm2436_vm3 = vcmask 1040384  }
 0x35e   :  { %4625 = vmatpush3.bf16.msk.msra.mxu1 %vm8514_vm7, %v5302_v31  ;;  %4649 = vmatpush3.bf16.msk.msra.mxu0 %vm8514_vm7, %v5302_v31  ;;  %vm2036_vm1 = vmand %vm2003_vm4, %vm2020_vm2  ;;  %vm2438_vm4 = vcmask 1041408   ;;  %vm2440_vm2 = vcmask 1042432  }
 0x35f   :  { %4626 = vmatprep.subr.bf16.mxu1 %v5299_v26  ;;  %4650 = vmatprep.subr.bf16.mxu0 %v5299_v26  ;;  %vm2037_vm10 = vmand %vm2004_vm13, %vm2021_vm12  ;;  %vm2166_vm12 = vcmask 1043456  }
 0x360   :  { %vm2053_vm15 = vmand %vm2036_vm1, %vm2038_vm9 }
 0x361   :  { %vm2054_vm5 = vmand %vm2037_vm10, %vm2038_vm9  ;;  %vm9734_vm9 = vmmov 0  }
 0x362   :  { %vm8530_vm14 = vmpackc.low %vm2054_vm5, %vm2053_vm15 }
 0x363   :  { %4628 = vmatpush3.bf16.msk.msra.mxu1 %vm8530_vm14, %v5302_v31  ;;  %4652 = vmatpush3.bf16.msk.msra.mxu0 %vm8530_vm14, %v5302_v31 }
 0x364   :  { %4653 = vmatprep.subr.bf16.mxu1 %v5299_v26  ;;  %4677 = vmatprep.subr.bf16.mxu0 %v5299_v26 }
 0x3f9   :  { %v4062_v62 = vpop.f32.mrb[6].mxu1 }
 0x3fa   :  { %v4063_v54 = vpop.f32.mrb[7].mxu1 }
 0x3fb   :  { %v4064_v21 = vadd.f32 %v4063_v54, %v4062_v62 }
 0x418   :  { %v1965_v51 = vpop.f32.mrb[14].mxu0 }
 0x419   :  { %v1966_v42 = vadd.f32 %v4064_v21, %v1965_v51  ;;  %v4184_v49 = vpop.f32.mrb[15].mxu0 }
 0x41b   :  { %v2090_v32 = vrot.slane %v1966_v42, %v8543_v58  ;;  %v2178_v18 = vrot.slane %v1966_v42, %v8546_v53  ;;  %v2265_v24 = vrot.slane %v1966_v42, %v8549_v38  ;;  %v2352_v33 = vrot.slane %v1966_v42, %v8552_v28 }
 0x41d   :  { %v2091_v35 = vsub.f32 %v1966_v42, %v2090_v32  ;;  %v2179_v40 = vsub.f32 %v1966_v42, %v2178_v18  ;;  %v2266_v41 = vsub.f32 %v1966_v42, %v2265_v24  ;;  %v2353_v44 = vsub.f32 %v1966_v42, %v2352_v33 }
 0x41f   :  { %v2092_v46 = vand.u32 2147483647, %v2091_v35  ;;  %v2180_v55 = vand.u32 2147483647, %v2179_v40  ;;  %v2354_v50 = vand.u32 2147483647, %v2353_v44 }
 0x421   :  { %4218 = vmatmul.mubr.f32.vlgmr.msra.gmra.mrb[8].mxu1 %v2092_v46  ;;  %4253 = vmatmul.mubr.f32.vlgmr.msra.gmra.mrb[16].mxu0 %v2180_v55 }
 0x422   :  { %4655 = vmatpush3.bf16.msk.msra.mxu1 %vm8383_vm6, %v5302_v31  ;;  %4679 = vmatpush3.bf16.msk.msra.mxu0 %vm8383_vm6, %v5302_v31  ;;  %vm9735_vm6 = vnez %v9725_v23 }
 0x423   :  { %4656 = vmatprep.subr.bf16.mxu1 %v5299_v26  ;;  %4680 = vmatprep.subr.bf16.mxu0 %v5299_v26 }
 0x424   :  { %4287 = vmatprep.mubr.msk.f32.mxu1 %vm9734_vm9, %v5301_v12  ;;  %4322 = vmatprep.mubr.msk.f32.mxu0 %vm9734_vm9, %v5301_v12  ;;  %v2267_v12 = vand.u32 2147483647, %v2266_v41 }
 0x426   :  { %4658 = vmatpush3.bf16.msk.msra.mxu1 %vm8405_vm0, %v5302_v31  ;;  %4682 = vmatpush3.bf16.msk.msra.mxu0 %vm8405_vm0, %v5302_v31  ;;  %vm9736_vm0 = vnez %v9727_v14 }
 0x427   :  { %4659 = vmatprep.subr.bf16.mxu1 %v5299_v26  ;;  %4683 = vmatprep.subr.bf16.mxu0 %v5299_v26 }
 0x42a   :  { %4661 = vmatpush3.bf16.msk.msra.mxu1 %vm8427_vm11, %v5302_v31  ;;  %4685 = vmatpush3.bf16.msk.msra.mxu0 %vm8427_vm11, %v5302_v31  ;;  %vm9737_vm11 = vnez %v9729_v36 }
 0x42b   :  { %4662 = vmatprep.subr.bf16.mxu1 %v5299_v26  ;;  %4686 = vmatprep.subr.bf16.mxu0 %v5299_v26 }
 0x42e   :  { %4664 = vmatpush3.bf16.msk.msra.mxu1 %vm9735_vm6, %v5302_v31  ;;  %4688 = vmatpush3.bf16.msk.msra.mxu0 %vm9735_vm6, %v5302_v31 }
 0x42f   :  { %4665 = vmatprep.subr.bf16.mxu1 %v5299_v26  ;;  %4689 = vmatprep.subr.bf16.mxu0 %v5299_v26 }
 0x432   :  { %4667 = vmatpush3.bf16.msk.msra.mxu1 %vm9736_vm0, %v5302_v31  ;;  %4691 = vmatpush3.bf16.msk.msra.mxu0 %vm9736_vm0, %v5302_v31 }
 0x433   :  { %4668 = vmatprep.subr.bf16.mxu1 %v5299_v26  ;;  %4692 = vmatprep.subr.bf16.mxu0 %v5299_v26 }
 0x436   :  { %4670 = vmatpush3.bf16.msk.msra.mxu1 %vm9737_vm11, %v5302_v31  ;;  %4694 = vmatpush3.bf16.msk.msra.mxu0 %vm9737_vm11, %v5302_v31 }
 0x437   :  { %4671 = vmatprep.subr.bf16.mxu1 %v5299_v26  ;;  %4695 = vmatprep.subr.bf16.mxu0 %v5299_v26 }
 0x43a   :  { %4673 = vmatpush3.bf16.msk.msra.mxu1 %vm8514_vm7, %v5302_v31  ;;  %4697 = vmatpush3.bf16.msk.msra.mxu0 %vm8514_vm7, %v5302_v31 }
 0x43b   :  { %4674 = vmatprep.subr.bf16.mxu1 %v5299_v26  ;;  %4698 = vmatprep.subr.bf16.mxu0 %v5299_v26 }
 0x43e   :  { %4676 = vmatpush3.bf16.msk.msra.mxu1 %vm8530_vm14, %v5302_v31  ;;  %4700 = vmatpush3.bf16.msk.msra.mxu0 %vm8530_vm14, %v5302_v31 }
 0x441   :  { %4288 = vmatmul.mubr.f32.vlgmr.msra.gmra.mrb[10].mxu1 %v2267_v12  ;;  %4323 = vmatmul.mubr.f32.vlgmr.msra.gmra.mrb[18].mxu0 %v2354_v50 }
 0x442   :  { %3064 = vmatprep.mubr.f32.mxu1 %v8341_v59 }
 0x4f4   :  { %v2159_v57 = vpop.f32.mrb[8].mxu1  ;;  %v2247_v56 = vpop.f32.mrb[16].mxu0 }
 0x4f5   :  { %v2163_v60 = vsub.f32 0.0, %v2159_v57  ;;  %v2251_v48 = vsub.f32 0.0, %v2247_v56  ;;  %v4219_v61 = vpop.f32.mrb[9].mxu1  ;;  %v4254_v63 = vpop.f32.mrb[17].mxu0 }
 0x4f7   :  { %v2164_v37 = vmul.f32 1.442695, %v2163_v60  ;;  %v2252_v26 = vmul.f32 1.442695, %v2251_v48 }
 0x4f9   :  { %5237 = vpow2.f32 %v2164_v37 }
 0x4fa   :  { %5239 = vpow2.f32 %v2252_v26 }
 0x503   :  { %v5238_v47 = vpop.eup %5237 }
 0x504   :  { %v5240_v15 = vpop.eup %5239  ;;  %v2167_v22 = vsel %vm2166_vm12, %v5238_v47, 0.0 }
 0x505   :  { %v2168_v31 = vrot.slane %v2167_v22, 4  ;;  %v2254_v45 = vsel %vm2166_vm12, %v5240_v15, 0.0 }
 0x506   :  { %v2255_v7 = vrot.slane %v2254_v45, 4 }
 0x507   :  { %v2169_v13 = vadd.f32 %v2168_v31, %v2167_v22 }
 0x508   :  { %v2256_v23 = vadd.f32 %v2255_v7, %v2254_v45  ;;  %v4701_v45 = vpack.c.bf16 %v5430_v9, %v5390_v1  ;;  %v4829_v7 = vpack.c.bf16 %v5440_v11, %v5400_v3 }
 0x509   :  { %v2170_v30 = vrot.slane %v2169_v13, 2 }
 0x50a   :  { %v2257_v29 = vrot.slane %v2256_v23, 2 }
 0x50b   :  { %v2171_v14 = vadd.f32 %v2170_v30, %v2169_v13  ;;  %v4703_v13 = vpack.c.bf16 %v5425_v8, %v5385_v0 }
 0x50c   :  { %v2258_v6 = vadd.f32 %v2257_v29, %v2256_v23  ;;  %v4831_v23 = vpack.c.bf16 %v5435_v10, %v5395_v2 }
 0x50d   :  { %v2172_v5 = vrot.slane %v2171_v14, 1 }
 0x50e   :  { %v2259_v36 = vrot.slane %v2258_v6, 1 }
 0x50f   :  { %v2173_v4 = vadd.f32 %v2172_v5, %v2171_v14 }
 0x510   :  { %v2260_v20 = vadd.f32 %v2259_v36, %v2258_v6 }
 0x511   :  { %v3722_v39 = vadd.f32 -1.0, %v2173_v4 }
 0x512   :  { %v3739_v62 = vadd.f32 -1.0, %v2260_v20 }
 0x514   :  { %v2437_v54 = vsel %vm2436_vm3, %v3722_v39, %v3739_v62  ;;  %v2334_v21 = vpop.f32.mrb[10].mxu1  ;;  %v2421_v51 = vpop.f32.mrb[18].mxu0 }
 0x515   :  { %v2338_v42 = vsub.f32 0.0, %v2334_v21  ;;  %v2425_v49 = vsub.f32 0.0, %v2421_v51  ;;  %v4289_v32 = vpop.f32.mrb[11].mxu1  ;;  %v4324_v18 = vpop.f32.mrb[19].mxu0 }
 0x517   :  { %v2339_v24 = vmul.f32 1.442695, %v2338_v42  ;;  %v2426_v33 = vmul.f32 1.442695, %v2425_v49 }
 0x519   :  { %5241 = vpow2.f32 %v2339_v24 }
 0x51a   :  { %5243 = vpow2.f32 %v2426_v33 }
 0x523   :  { %v5242_v35 = vpop.eup %5241 }
 0x524   :  { %v5244_v40 = vpop.eup %5243  ;;  %v2341_v41 = vsel %vm2166_vm12, %v5242_v35, 0.0 }
 0x525   :  { %v2342_v44 = vrot.slane %v2341_v41, 4  ;;  %v2428_v46 = vsel %vm2166_vm12, %v5244_v40, 0.0 }
 0x526   :  { %v2429_v55 = vrot.slane %v2428_v46, 4 }
 0x527   :  { %v2343_v12 = vadd.f32 %v2342_v44, %v2341_v41 }
 0x528   :  { %v2430_v50 = vadd.f32 %v2429_v55, %v2428_v46 }
 0x529   :  { %v2344_v57 = vrot.slane %v2343_v12, 2 }
 0x52a   :  { %v2431_v56 = vrot.slane %v2430_v50, 2 }
 0x52b   :  { %v2345_v60 = vadd.f32 %v2344_v57, %v2343_v12 }
 0x52c   :  { %v2432_v48 = vadd.f32 %v2431_v56, %v2430_v50 }
 0x52d   :  { %v2346_v61 = vrot.slane %v2345_v60, 1 }
 0x52e   :  { %v2433_v63 = vrot.slane %v2432_v48, 1 }
 0x52f   :  { %v2347_v37 = vadd.f32 %v2346_v61, %v2345_v60 }
 0x530   :  { %v2434_v26 = vadd.f32 %v2433_v63, %v2432_v48 }
 0x531   :  { %v3756_v47 = vadd.f32 -1.0, %v2347_v37 }
 0x532   :  { %v3773_v15 = vadd.f32 -1.0, %v2434_v26 }
 0x533   :  { %v2439_v22 = vsel %vm2438_vm4, %v2437_v54, %v3756_v47 }
 0x534   :  { %v8628_v31 = vsel %vm2440_vm2, %v2439_v22, %v3773_v15 }
 0x535   :  { %5293 = dma.done.wait [#allocation3], 65536 }
 0x536   :  { %5294 = vsyncadd [#allocation3], 4294901760  ;;  %v4705_v30 = vpack.c.bf16 %v5510_v25, %v5470_v17  ;;  %v4833_v29 = vpack.c.bf16 %v5520_v27, %v5480_v19  ;;  %3206 = vmatprep.mubr.f32.mxu0 %v8341_v59  ;;  %4702 = vmatprep.subr.bf16.mxu1 %v4701_v45  ;;  %v9738_v0 = vld [vmem:[#allocation25_spill] sm:$0xff]  ;;  %v9739_v2 = vld [vmem:[#allocation20_spill] sm:$0xff] }
 0x537   :  { %4830 = vmatprep.subr.bf16.mxu0 %v4829_v7  ;;  %4704 = vmatpush1.bf16.msra.mxu1 %v4703_v13  ;;  %v4707_v1 = vpack.c.bf16 %v9738_v0, %v5465_v16  ;;  %v9740_v3 = vld [vmem:[#allocation26_spill] sm:$0xff]  ;;  %v9741_v9 = vld [vmem:[#allocation32_spill] sm:$0xff]  ;;  %v9745_v27 = vld [vmem:[#allocation31_spill] sm:$0xff] }
 0x538   :  { %4832 = vmatpush1.bf16.msra.mxu0 %v4831_v23  ;;  %v4835_v8 = vpack.c.bf16 %v9740_v3, %v9739_v2  ;;  %4706 = vmatprep.subr.bf16.mxu1 %v4705_v30  ;;  %v9742_v10 = vld [vmem:[#allocation40_spill] sm:$0xff]  ;;  %v9743_v17 = vld [vmem:[#allocation34_spill] sm:$0xff]  ;;  %v9746_v14 = vld [vmem:[#allocation39_spill] sm:$0xff] }
 0x539   :  { %4834 = vmatprep.subr.bf16.mxu0 %v4833_v29  ;;  %v4709_v11 = vpack.c.bf16 %v9742_v10, %v9741_v9  ;;  %v9744_v25 = vld [vmem:[#allocation42_spill] sm:$0xff]  ;;  %v4711_v6 = vpack.c.bf16 %v9746_v14, %v9745_v27  ;;  %v9747_v5 = vld [vmem:[#allocation33_spill] sm:$0xff]  ;;  %v9749_v16 = vld [vmem:[#allocation48_spill] sm:$0xff] }
 0x53a   :  { %v4837_v19 = vpack.c.bf16 %v9744_v25, %v9743_v17  ;;  %v9748_v36 = vld [vmem:[#allocation41_spill] sm:$0xff]  ;;  %v9750_v20 = vld [vmem:[#allocation56_spill] sm:$0xff]  ;;  %v9751_v62 = vld [vmem:[#allocation50_spill] sm:$0xff] }
 0x53b   :  { %4708 = vmatpush1.bf16.msra.mxu1 %v4707_v1  ;;  %v4839_v4 = vpack.c.bf16 %v9748_v36, %v9747_v5  ;;  %v4713_v39 = vpack.c.bf16 %v9750_v20, %v9749_v16  ;;  %v9752_v54 = vld [vmem:[#allocation58_spill] sm:$0xff]  ;;  %v9753_v51 = vld [vmem:[#allocation47_spill] sm:$0xff]  ;;  %v9755_v32 = vld [vmem:[#allocation49_spill] sm:$0xff] }
 0x53c   :  { %4836 = vmatpush1.bf16.msra.mxu0 %v4835_v8  ;;  %4710 = vmatprep.subr.bf16.mxu1 %v4709_v11  ;;  %v4841_v21 = vpack.c.bf16 %v9752_v54, %v9751_v62  ;;  %v9754_v42 = vld [vmem:[#allocation55_spill] sm:$0xff]  ;;  %v9756_v18 = vld [vmem:[#allocation57_spill] sm:$0xff]  ;;  %v9757_v33 = vld [vmem:[#allocation64_spill] sm:$0xff] }
 0x53d   :  { %4838 = vmatprep.subr.bf16.mxu0 %v4837_v19  ;;  %v4715_v49 = vpack.c.bf16 %v9754_v42, %v9753_v51  ;;  %v4843_v24 = vpack.c.bf16 %v9756_v18, %v9755_v32  ;;  %v9758_v35 = vld [vmem:[#allocation72_spill] sm:$0xff]  ;;  %v9759_v41 = vld [vmem:[#allocation66_spill] sm:$0xff]  ;;  %v9761_v55 = vld [vmem:[#allocation63_spill] sm:$0xff] }
 0x53e   :  { %v4717_v40 = vpack.c.bf16 %v9758_v35, %v9757_v33  ;;  %v9760_v44 = vld [vmem:[#allocation74_spill] sm:$0xff]  ;;  %v9762_v12 = vld [vmem:[#allocation71_spill] sm:$0xff]  ;;  %v9763_v57 = vld [vmem:[#allocation65_spill] sm:$0xff] }
 0x53f   :  { %4712 = vmatpush1.bf16.msra.mxu1 %v4711_v6  ;;  %v4845_v46 = vpack.c.bf16 %v9760_v44, %v9759_v41  ;;  %v4719_v50 = vpack.c.bf16 %v9762_v12, %v9761_v55  ;;  %v9764_v56 = vld [vmem:[#allocation73_spill] sm:$0xff]  ;;  %v9765_v48 = vld [vmem:[#allocation80_spill] sm:$0xff]  ;;  %v9767_v37 = vld [vmem:[#allocation82_spill] sm:$0xff] }
 0x540   :  { %4840 = vmatpush1.bf16.msra.mxu0 %v4839_v4  ;;  %4714 = vmatprep.subr.bf16.mxu1 %v4713_v39  ;;  %v4847_v60 = vpack.c.bf16 %v9764_v56, %v9763_v57  ;;  %v9766_v61 = vld [vmem:[#allocation88_spill] sm:$0xff]  ;;  %v9768_v26 = vld [vmem:[#allocation90_spill] sm:$0xff]  ;;  %v9769_v15 = vld [vmem:[#allocation79_spill] sm:$0xff] }
 0x541   :  { %4842 = vmatprep.subr.bf16.mxu0 %v4841_v21  ;;  %v4721_v63 = vpack.c.bf16 %v9766_v61, %v9765_v48  ;;  %v4849_v47 = vpack.c.bf16 %v9768_v26, %v9767_v37  ;;  %v9770_v22 = vld [vmem:[#allocation87_spill] sm:$0xff]  ;;  %v9771_v7 = vld [vmem:[#allocation81_spill] sm:$0xff]  ;;  %v9773_v30 = vld [vmem:[#allocation96_spill] sm:$0xff] }
 0x542   :  { %v4723_v45 = vpack.c.bf16 %v9770_v22, %v9769_v15  ;;  %v9772_v13 = vld [vmem:[#allocation89_spill] sm:$0xff]  ;;  %v9774_v29 = vld [vmem:[#allocation104_spill] sm:$0xff]  ;;  %v9775_v1 = vld [vmem:[#allocation98_spill] sm:$0xff] }
 0x543   :  { %4716 = vmatpush1.bf16.msra.mxu1 %v4715_v49  ;;  %v4851_v23 = vpack.c.bf16 %v9772_v13, %v9771_v7  ;;  %v4725_v0 = vpack.c.bf16 %v9774_v29, %v9773_v30  ;;  %v9776_v2 = vld [vmem:[#allocation106_spill] sm:$0xff]  ;;  %v9777_v8 = vld [vmem:[#allocation95_spill] sm:$0xff]  ;;  %v9779_v11 = vld [vmem:[#allocation97_spill] sm:$0xff] }
 0x544   :  { %4844 = vmatpush1.bf16.msra.mxu0 %v4843_v24  ;;  %4718 = vmatprep.subr.bf16.mxu1 %v4717_v40  ;;  %v4853_v3 = vpack.c.bf16 %v9776_v2, %v9775_v1  ;;  %v9778_v9 = vld [vmem:[#allocation103_spill] sm:$0xff]  ;;  %v9780_v17 = vld [vmem:[#allocation105_spill] sm:$0xff]  ;;  %v9781_v19 = vld [vmem:[#allocation112_spill] sm:$0xff] }
 0x545   :  { %4846 = vmatprep.subr.bf16.mxu0 %v4845_v46  ;;  %v4727_v10 = vpack.c.bf16 %v9778_v9, %v9777_v8  ;;  %v4855_v25 = vpack.c.bf16 %v9780_v17, %v9779_v11  ;;  %v9782_v27 = vld [vmem:[#allocation120_spill] sm:$0xff]  ;;  %v9783_v6 = vld [vmem:[#allocation114_spill] sm:$0xff]  ;;  %v9785_v4 = vld [vmem:[#allocation111_spill] sm:$0xff] }
 0x546   :  { %v4729_v14 = vpack.c.bf16 %v9782_v27, %v9781_v19  ;;  %v9784_v5 = vld [vmem:[#allocation122_spill] sm:$0xff]  ;;  %v9786_v16 = vld [vmem:[#allocation119_spill] sm:$0xff]  ;;  %v9787_v39 = vld [vmem:[#allocation113_spill] sm:$0xff] }
 0x547   :  { %4720 = vmatpush1.bf16.msra.mxu1 %v4719_v50  ;;  %v4857_v36 = vpack.c.bf16 %v9784_v5, %v9783_v6  ;;  %v4731_v20 = vpack.c.bf16 %v9786_v16, %v9785_v4  ;;  %v9788_v62 = vld [vmem:[#allocation121_spill] sm:$0xff]  ;;  %v9789_v21 = vld [vmem:[#allocation128_spill] sm:$0xff]  ;;  %v9791_v49 = vld [vmem:[#allocation130_spill] sm:$0xff] }
 0x548   :  { %4848 = vmatpush1.bf16.msra.mxu0 %v4847_v60  ;;  %4722 = vmatprep.subr.bf16.mxu1 %v4721_v63  ;;  %v4859_v54 = vpack.c.bf16 %v9788_v62, %v9787_v39  ;;  %v9790_v51 = vld [vmem:[#allocation136_spill] sm:$0xff]  ;;  %v9792_v32 = vld [vmem:[#allocation138_spill] sm:$0xff]  ;;  %v9793_v24 = vld [vmem:[#allocation127_spill] sm:$0xff] }
 0x549   :  { %4850 = vmatprep.subr.bf16.mxu0 %v4849_v47  ;;  %v4733_v42 = vpack.c.bf16 %v9790_v51, %v9789_v21  ;;  %v4861_v18 = vpack.c.bf16 %v9792_v32, %v9791_v49  ;;  %v9794_v33 = vld [vmem:[#allocation135_spill] sm:$0xff]  ;;  %v9795_v40 = vld [vmem:[#allocation129_spill] sm:$0xff]  ;;  %v9797_v46 = vld [vmem:[#allocation144_spill] sm:$0xff] }
 0x54a   :  { %v4735_v35 = vpack.c.bf16 %v9794_v33, %v9793_v24  ;;  %v9796_v41 = vld [vmem:[#allocation137_spill] sm:$0xff]  ;;  %v9798_v55 = vld [vmem:[#allocation152_spill] sm:$0xff]  ;;  %v9799_v50 = vld [vmem:[#allocation146_spill] sm:$0xff] }
 0x54b   :  { %4724 = vmatpush1.bf16.msra.mxu1 %v4723_v45  ;;  %v4863_v44 = vpack.c.bf16 %v9796_v41, %v9795_v40  ;;  %v4737_v12 = vpack.c.bf16 %v9798_v55, %v9797_v46  ;;  %v9800_v57 = vld [vmem:[#allocation154_spill] sm:$0xff]  ;;  %v9801_v60 = vld [vmem:[#allocation143_spill] sm:$0xff]  ;;  %v9803_v63 = vld [vmem:[#allocation145_spill] sm:$0xff] }
 0x54c   :  { %4852 = vmatpush1.bf16.msra.mxu0 %v4851_v23  ;;  %4726 = vmatprep.subr.bf16.mxu1 %v4725_v0  ;;  %v4865_v56 = vpack.c.bf16 %v9800_v57, %v9799_v50  ;;  %v9802_v48 = vld [vmem:[#allocation151_spill] sm:$0xff]  ;;  %v9804_v37 = vld [vmem:[#allocation153_spill] sm:$0xff]  ;;  %v9805_v47 = vld [vmem:[#allocation160_spill] sm:$0xff] }
 0x54d   :  { %4854 = vmatprep.subr.bf16.mxu0 %v4853_v3  ;;  %v4739_v61 = vpack.c.bf16 %v9802_v48, %v9801_v60  ;;  %v4867_v26 = vpack.c.bf16 %v9804_v37, %v9803_v63  ;;  %v9806_v15 = vld [vmem:[#allocation168_spill] sm:$0xff]  ;;  %v9807_v45 = vld [vmem:[#allocation162_spill] sm:$0xff]  ;;  %v9809_v23 = vld [vmem:[#allocation159_spill] sm:$0xff] }
 0x54e   :  { %v4741_v22 = vpack.c.bf16 %v9806_v15, %v9805_v47  ;;  %v9808_v7 = vld [vmem:[#allocation170_spill] sm:$0xff]  ;;  %v9810_v30 = vld [vmem:[#allocation167_spill] sm:$0xff]  ;;  %v9811_v0 = vld [vmem:[#allocation161_spill] sm:$0xff] }
 0x54f   :  { %4728 = vmatpush1.bf16.msra.mxu1 %v4727_v10  ;;  %v4869_v13 = vpack.c.bf16 %v9808_v7, %v9807_v45  ;;  %v4743_v29 = vpack.c.bf16 %v9810_v30, %v9809_v23  ;;  %v9812_v1 = vld [vmem:[#allocation169_spill] sm:$0xff]  ;;  %v9813_v3 = vld [vmem:[#allocation176_spill] sm:$0xff]  ;;  %v9815_v10 = vld [vmem:[#allocation178_spill] sm:$0xff] }
 0x550   :  { %4856 = vmatpush1.bf16.msra.mxu0 %v4855_v25  ;;  %4730 = vmatprep.subr.bf16.mxu1 %v4729_v14  ;;  %v4871_v2 = vpack.c.bf16 %v9812_v1, %v9811_v0  ;;  %v9814_v8 = vld [vmem:[#allocation184_spill] sm:$0xff]  ;;  %v9816_v11 = vld [vmem:[#allocation186_spill] sm:$0xff]  ;;  %v9817_v25 = vld [vmem:[#allocation175_spill] sm:$0xff] }
 0x551   :  { %4858 = vmatprep.subr.bf16.mxu0 %v4857_v36  ;;  %v4745_v9 = vpack.c.bf16 %v9814_v8, %v9813_v3  ;;  %v4873_v17 = vpack.c.bf16 %v9816_v11, %v9815_v10  ;;  %v9818_v19 = vld [vmem:[#allocation183_spill] sm:$0xff]  ;;  %v9819_v14 = vld [vmem:[#allocation177_spill] sm:$0xff]  ;;  %v9821_v36 = vld [vmem:[#allocation192_spill] sm:$0xff] }
 0x552   :  { %v4747_v27 = vpack.c.bf16 %v9818_v19, %v9817_v25  ;;  %v9820_v6 = vld [vmem:[#allocation185_spill] sm:$0xff]  ;;  %v9822_v4 = vld [vmem:[#allocation200_spill] sm:$0xff]  ;;  %v9824_v39 = vld [vmem:[#allocation202_spill] sm:$0xff] }
 0x553   :  { %4732 = vmatpush1.bf16.msra.mxu1 %v4731_v20  ;;  %v4875_v5 = vpack.c.bf16 %v9820_v6, %v9819_v14  ;;  %v4749_v16 = vpack.c.bf16 %v9822_v4, %v9821_v36  ;;  %v9823_v20 = vld [vmem:[#allocation194_spill] sm:$0xff]  ;;  %v9826_v21 = vld [vmem:[#allocation199_spill] sm:$0xff]  ;;  %v9828_v49 = vld [vmem:[#allocation201_spill] sm:$0xff] }
 0x554   :  { %4860 = vmatpush1.bf16.msra.mxu0 %v4859_v54  ;;  %4734 = vmatprep.subr.bf16.mxu1 %v4733_v42  ;;  %v4877_v62 = vpack.c.bf16 %v9824_v39, %v9823_v20  ;;  %v9825_v54 = vld [vmem:[#allocation191_spill] sm:$0xff]  ;;  %v9827_v42 = vld [vmem:[#allocation193_spill] sm:$0xff]  ;;  %v9830_v24 = vld [vmem:[#allocation216_spill] sm:$0xff] }
 0x555   :  { %4862 = vmatprep.subr.bf16.mxu0 %v4861_v18  ;;  %v4751_v51 = vpack.c.bf16 %v9826_v21, %v9825_v54  ;;  %v4879_v32 = vpack.c.bf16 %v9828_v49, %v9827_v42  ;;  %v9829_v18 = vld [vmem:[#allocation208_spill] sm:$0xff]  ;;  %v9832_v40 = vld [vmem:[#allocation218_spill] sm:$0xff]  ;;  %v9834_v46 = vld [vmem:[#allocation215_spill] sm:$0xff] }
 0x556   :  { %v4753_v33 = vpack.c.bf16 %v9830_v24, %v9829_v18  ;;  %v9836_v50 = vld [vmem:[#allocation217_spill] sm:$0xff]  ;;  %v9838_v60 = vld [vmem:[#allocation232_spill] sm:$0xff]  ;;  %v9840_v63 = vld [vmem:[#allocation234_spill] sm:$0xff] }
 0x557   :  { %4736 = vmatpush1.bf16.msra.mxu1 %v4735_v35  ;;  %v9831_v35 = vld [vmem:[#allocation210_spill] sm:$0xff]  ;;  %v9842_v47 = vld [vmem:[#allocation231_spill] sm:$0xff]  ;;  %v9844_v45 = vld [vmem:[#allocation233_spill] sm:$0xff] }
 0x558   :  { %4864 = vmatpush1.bf16.msra.mxu0 %v4863_v44  ;;  %4738 = vmatprep.subr.bf16.mxu1 %v4737_v12  ;;  %v4881_v41 = vpack.c.bf16 %v9832_v40, %v9831_v35  ;;  %v9833_v44 = vld [vmem:[#allocation207_spill] sm:$0xff]  ;;  %v9835_v12 = vld [vmem:[#allocation209_spill] sm:$0xff]  ;;  %v9846_v23 = vld [vmem:[#allocation248_spill] sm:$0xff] }
 0x559   :  { %4866 = vmatprep.subr.bf16.mxu0 %v4865_v56  ;;  %v4755_v55 = vpack.c.bf16 %v9834_v46, %v9833_v44  ;;  %v4883_v57 = vpack.c.bf16 %v9836_v50, %v9835_v12  ;;  %v9837_v56 = vld [vmem:[#allocation224_spill] sm:$0xff]  ;;  %v9848_v0 = vld [vmem:[#allocation250_spill] sm:$0xff]  ;;  %v9850_v3 = vld [vmem:[#allocation247_spill] sm:$0xff] }
 0x55a   :  { %v4757_v48 = vpack.c.bf16 %v9838_v60, %v9837_v56  ;;  %v9852_v10 = vld [vmem:[#allocation249_spill] sm:$0xff]  ;;  %v9854_v25 = vld [vmem:[#allocation264_spill] sm:$0xff]  ;;  %v9856_v14 = vld [vmem:[#allocation266_spill] sm:$0xff] }
 0x55b   :  { %4740 = vmatpush1.bf16.msra.mxu1 %v4739_v61  ;;  %v9839_v61 = vld [vmem:[#allocation226_spill] sm:$0xff]  ;;  %v9858_v36 = vld [vmem:[#allocation263_spill] sm:$0xff]  ;;  %v9860_v20 = vld [vmem:[#allocation265_spill] sm:$0xff] }
 0x55c   :  { %4868 = vmatpush1.bf16.msra.mxu0 %v4867_v26  ;;  %4742 = vmatprep.subr.bf16.mxu1 %v4741_v22  ;;  %v4885_v37 = vpack.c.bf16 %v9840_v63, %v9839_v61  ;;  %v9841_v26 = vld [vmem:[#allocation223_spill] sm:$0xff]  ;;  %v9843_v22 = vld [vmem:[#allocation225_spill] sm:$0xff]  ;;  %v9862_v54 = vld [vmem:[#allocation280_spill] sm:$0xff] }
 0x55d   :  { %4870 = vmatprep.subr.bf16.mxu0 %v4869_v13  ;;  %v4759_v15 = vpack.c.bf16 %v9842_v47, %v9841_v26  ;;  %v4887_v7 = vpack.c.bf16 %v9844_v45, %v9843_v22  ;;  %v9845_v13 = vld [vmem:[#allocation240_spill] sm:$0xff]  ;;  %v9864_v42 = vld [vmem:[#allocation282_spill] sm:$0xff]  ;;  %v9866_v18 = vld [vmem:[#allocation279_spill] sm:$0xff] }
 0x55e   :  { %v4761_v30 = vpack.c.bf16 %v9846_v23, %v9845_v13  ;;  %v9868_v35 = vld [vmem:[#allocation281_spill] sm:$0xff]  ;;  %v9870_v44 = vld [vmem:[#allocation296_spill] sm:$0xff]  ;;  %v9872_v12 = vld [vmem:[#allocation298_spill] sm:$0xff] }
 0x55f   :  { %4744 = vmatpush1.bf16.msra.mxu1 %v4743_v29  ;;  %v9847_v29 = vld [vmem:[#allocation242_spill] sm:$0xff]  ;;  %v9874_v56 = vld [vmem:[#allocation295_spill] sm:$0xff]  ;;  %v9876_v61 = vld [vmem:[#allocation297_spill] sm:$0xff] }
 0x560   :  { %4872 = vmatpush1.bf16.msra.mxu0 %v4871_v2  ;;  %4746 = vmatprep.subr.bf16.mxu1 %v4745_v9  ;;  %v4889_v1 = vpack.c.bf16 %v9848_v0, %v9847_v29  ;;  %v9849_v2 = vld [vmem:[#allocation239_spill] sm:$0xff]  ;;  %v9851_v9 = vld [vmem:[#allocation241_spill] sm:$0xff]  ;;  %v9878_v26 = vld [vmem:[#allocation312_spill] sm:$0xff] }
 0x561   :  { %4874 = vmatprep.subr.bf16.mxu0 %v4873_v17  ;;  %v4763_v8 = vpack.c.bf16 %v9850_v3, %v9849_v2  ;;  %v4891_v11 = vpack.c.bf16 %v9852_v10, %v9851_v9  ;;  %v9853_v17 = vld [vmem:[#allocation256_spill] sm:$0xff]  ;;  %v9880_v22 = vld [vmem:[#allocation314_spill] sm:$0xff]  ;;  %v9882_v13 = vld [vmem:[#allocation311_spill] sm:$0xff] }
 0x562   :  { %v4765_v19 = vpack.c.bf16 %v9854_v25, %v9853_v17  ;;  %v9884_v29 = vld [vmem:[#allocation313_spill] sm:$0xff]  ;;  %v9886_v2 = vld [vmem:[#allocation328_spill] sm:$0xff]  ;;  %v9888_v9 = vld [vmem:[#allocation330_spill] sm:$0xff] }
 0x563   :  { %4748 = vmatpush1.bf16.msra.mxu1 %v4747_v27  ;;  %v9855_v27 = vld [vmem:[#allocation258_spill] sm:$0xff]  ;;  %v9890_v17 = vld [vmem:[#allocation327_spill] sm:$0xff] }
 0x564   :  { %4876 = vmatpush1.bf16.msra.mxu0 %v4875_v5  ;;  %4750 = vmatprep.subr.bf16.mxu1 %v4749_v16  ;;  %v4893_v6 = vpack.c.bf16 %v9856_v14, %v9855_v27  ;;  %v9857_v5 = vld [vmem:[#allocation255_spill] sm:$0xff]  ;;  %v9859_v16 = vld [vmem:[#allocation257_spill] sm:$0xff] }
 0x565   :  { %4878 = vmatprep.subr.bf16.mxu0 %v4877_v62  ;;  %v4767_v4 = vpack.c.bf16 %v9858_v36, %v9857_v5  ;;  %v4895_v39 = vpack.c.bf16 %v9860_v20, %v9859_v16  ;;  %v9861_v62 = vld [vmem:[#allocation272_spill] sm:$0xff]  ;;  %v9892_v27 = vld [vmem:[#allocation329_spill] sm:$0xff]  ;;  %v9896_v16 = vld [vmem:[#allocation346_spill] sm:$0xff] }
 0x566   :  { %v4769_v21 = vpack.c.bf16 %v9862_v54, %v9861_v62  ;;  %v9894_v5 = vld [vmem:[#allocation344_spill] sm:$0xff]  ;;  %v9898_v62 = vld [vmem:[#allocation343_spill] sm:$0xff] }
 0x567   :  { %4752 = vmatpush1.bf16.msra.mxu1 %v4751_v51  ;;  %v9863_v51 = vld [vmem:[#allocation274_spill] sm:$0xff] }
 0x568   :  { %4880 = vmatpush1.bf16.msra.mxu0 %v4879_v32  ;;  %4754 = vmatprep.subr.bf16.mxu1 %v4753_v33  ;;  %v4897_v49 = vpack.c.bf16 %v9864_v42, %v9863_v51  ;;  %v9865_v32 = vld [vmem:[#allocation271_spill] sm:$0xff]  ;;  %v9867_v33 = vld [vmem:[#allocation273_spill] sm:$0xff] }
 0x569   :  { %4882 = vmatprep.subr.bf16.mxu0 %v4881_v41  ;;  %v4771_v24 = vpack.c.bf16 %v9866_v18, %v9865_v32  ;;  %v4899_v40 = vpack.c.bf16 %v9868_v35, %v9867_v33  ;;  %v9869_v41 = vld [vmem:[#allocation288_spill] sm:$0xff]  ;;  %v9900_v51 = vld [vmem:[#allocation345_spill] sm:$0xff]  ;;  %v9904_v33 = vld [vmem:[#allocation362_spill] sm:$0xff] }
 0x56a   :  { %v4773_v46 = vpack.c.bf16 %v9870_v44, %v9869_v41  ;;  %v9902_v32 = vld [vmem:[#allocation360_spill] sm:$0xff]  ;;  %v9906_v41 = vld [vmem:[#allocation359_spill] sm:$0xff] }
 0x56b   :  { %4756 = vmatpush1.bf16.msra.mxu1 %v4755_v55  ;;  %v9871_v55 = vld [vmem:[#allocation290_spill] sm:$0xff] }
 0x56c   :  { %4884 = vmatpush1.bf16.msra.mxu0 %v4883_v57  ;;  %4758 = vmatprep.subr.bf16.mxu1 %v4757_v48  ;;  %v4901_v50 = vpack.c.bf16 %v9872_v12, %v9871_v55  ;;  %v9873_v57 = vld [vmem:[#allocation287_spill] sm:$0xff]  ;;  %v9875_v48 = vld [vmem:[#allocation289_spill] sm:$0xff] }
 0x56d   :  { %4886 = vmatprep.subr.bf16.mxu0 %v4885_v37  ;;  %v4775_v60 = vpack.c.bf16 %v9874_v56, %v9873_v57  ;;  %v4903_v63 = vpack.c.bf16 %v9876_v61, %v9875_v48  ;;  %v9877_v37 = vld [vmem:[#allocation304_spill] sm:$0xff]  ;;  %v9908_v55 = vld [vmem:[#allocation361_spill] sm:$0xff]  ;;  %v9912_v48 = vld [vmem:[#allocation378_spill] sm:$0xff] }
 0x56e   :  { %v4777_v47 = vpack.c.bf16 %v9878_v26, %v9877_v37  ;;  %v9910_v57 = vld [vmem:[#allocation376_spill] sm:$0xff]  ;;  %v9914_v37 = vld [vmem:[#allocation375_spill] sm:$0xff] }
 0x56f   :  { %4760 = vmatpush1.bf16.msra.mxu1 %v4759_v15  ;;  %v9879_v15 = vld [vmem:[#allocation306_spill] sm:$0xff] }
 0x570   :  { %4888 = vmatpush1.bf16.msra.mxu0 %v4887_v7  ;;  %4762 = vmatprep.subr.bf16.mxu1 %v4761_v30  ;;  %v4905_v45 = vpack.c.bf16 %v9880_v22, %v9879_v15  ;;  %v9881_v7 = vld [vmem:[#allocation303_spill] sm:$0xff]  ;;  %v9883_v30 = vld [vmem:[#allocation305_spill] sm:$0xff] }
 0x571   :  { %4890 = vmatprep.subr.bf16.mxu0 %v4889_v1  ;;  %v4779_v23 = vpack.c.bf16 %v9882_v13, %v9881_v7  ;;  %v4907_v0 = vpack.c.bf16 %v9884_v29, %v9883_v30  ;;  %v9885_v1 = vld [vmem:[#allocation320_spill] sm:$0xff]  ;;  %v9916_v15 = vld [vmem:[#allocation377_spill] sm:$0xff]  ;;  %v9920_v30 = vld [vmem:[#allocation394_spill] sm:$0xff] }
 0x572   :  { %v4781_v3 = vpack.c.bf16 %v9886_v2, %v9885_v1  ;;  %v9918_v7 = vld [vmem:[#allocation392_spill] sm:$0xff]  ;;  %v9922_v1 = vld [vmem:[#allocation391_spill] sm:$0xff] }
 0x573   :  { %4764 = vmatpush1.bf16.msra.mxu1 %v4763_v8  ;;  %v9887_v8 = vld [vmem:[#allocation322_spill] sm:$0xff] }
 0x574   :  { %4892 = vmatpush1.bf16.msra.mxu0 %v4891_v11  ;;  %4766 = vmatprep.subr.bf16.mxu1 %v4765_v19  ;;  %v4909_v10 = vpack.c.bf16 %v9888_v9, %v9887_v8  ;;  %v9889_v11 = vld [vmem:[#allocation319_spill] sm:$0xff]  ;;  %v9891_v19 = vld [vmem:[#allocation321_spill] sm:$0xff] }
 0x575   :  { %4894 = vmatprep.subr.bf16.mxu0 %v4893_v6  ;;  %v4783_v25 = vpack.c.bf16 %v9890_v17, %v9889_v11  ;;  %v4911_v14 = vpack.c.bf16 %v9892_v27, %v9891_v19  ;;  %v9893_v6 = vld [vmem:[#allocation336_spill] sm:$0xff]  ;;  %v9924_v8 = vld [vmem:[#allocation393_spill] sm:$0xff]  ;;  %v9928_v19 = vld [vmem:[#allocation410_spill] sm:$0xff] }
 0x576   :  { %3065 = vmatmul.mubr.f32.vlgmr.msra.gmra.mrb[12].mxu1 %v8344_v34  ;;  %v4785_v36 = vpack.c.bf16 %v9894_v5, %v9893_v6  ;;  %v9926_v11 = vld [vmem:[#allocation408_spill] sm:$0xff]  ;;  %v9930_v6 = vld [vmem:[#allocation407_spill] sm:$0xff] }
 0x577   :  { %3207 = vmatmul.mubr.f32.vlgmr.msra.gmra.mrb[20].mxu0 %v8344_v34  ;;  %4768 = vmatpush1.bf16.msra.mxu1 %v4767_v4  ;;  %v9895_v4 = vld [vmem:[#allocation338_spill] sm:$0xff] }
 0x578   :  { %4896 = vmatpush1.bf16.msra.mxu0 %v4895_v39  ;;  %4770 = vmatprep.subr.bf16.mxu1 %v4769_v21  ;;  %v4913_v20 = vpack.c.bf16 %v9896_v16, %v9895_v4  ;;  %v9897_v39 = vld [vmem:[#allocation335_spill] sm:$0xff]  ;;  %v9899_v21 = vld [vmem:[#allocation337_spill] sm:$0xff] }
 0x579   :  { %4898 = vmatprep.subr.bf16.mxu0 %v4897_v49  ;;  %3135 = vmatprep.mubr.f32.mxu1 %v8628_v31  ;;  %v4787_v54 = vpack.c.bf16 %v9898_v62, %v9897_v39  ;;  %v4915_v42 = vpack.c.bf16 %v9900_v51, %v9899_v21  ;;  %v9901_v49 = vld [vmem:[#allocation352_spill] sm:$0xff]  ;;  %v9932_v4 = vld [vmem:[#allocation409_spill] sm:$0xff]  ;;  %v9936_v21 = vld [vmem:[#allocation426_spill] sm:$0xff] }
 0x57a   :  { %3277 = vmatprep.mubr.f32.mxu0 %v8628_v31  ;;  %v4789_v18 = vpack.c.bf16 %v9902_v32, %v9901_v49  ;;  %v9934_v39 = vld [vmem:[#allocation424_spill] sm:$0xff]  ;;  %v9938_v49 = vld [vmem:[#allocation423_spill] sm:$0xff] }
 0x57b   :  { %4772 = vmatpush1.bf16.msra.mxu1 %v4771_v24  ;;  %v9903_v24 = vld [vmem:[#allocation354_spill] sm:$0xff] }
 0x57c   :  { %4900 = vmatpush1.bf16.msra.mxu0 %v4899_v40  ;;  %4774 = vmatprep.subr.bf16.mxu1 %v4773_v46  ;;  %v4917_v35 = vpack.c.bf16 %v9904_v33, %v9903_v24  ;;  %v9905_v40 = vld [vmem:[#allocation351_spill] sm:$0xff]  ;;  %v9907_v46 = vld [vmem:[#allocation353_spill] sm:$0xff] }
 0x57d   :  { %4902 = vmatprep.subr.bf16.mxu0 %v4901_v50  ;;  %v4791_v44 = vpack.c.bf16 %v9906_v41, %v9905_v40  ;;  %v4919_v12 = vpack.c.bf16 %v9908_v55, %v9907_v46  ;;  %v9909_v50 = vld [vmem:[#allocation368_spill] sm:$0xff]  ;;  %v9940_v24 = vld [vmem:[#allocation425_spill] sm:$0xff]  ;;  %v9944_v46 = vld [vmem:[#allocation442_spill] sm:$0xff] }
 0x57e   :  { %v4793_v56 = vpack.c.bf16 %v9910_v57, %v9909_v50  ;;  %v9942_v40 = vld [vmem:[#allocation440_spill] sm:$0xff]  ;;  %v9946_v50 = vld [vmem:[#allocation439_spill] sm:$0xff] }
 0x57f   :  { %4776 = vmatpush1.bf16.msra.mxu1 %v4775_v60  ;;  %v9911_v60 = vld [vmem:[#allocation370_spill] sm:$0xff] }
 0x580   :  { %4904 = vmatpush1.bf16.msra.mxu0 %v4903_v63  ;;  %4778 = vmatprep.subr.bf16.mxu1 %v4777_v47  ;;  %v4921_v61 = vpack.c.bf16 %v9912_v48, %v9911_v60  ;;  %v9913_v63 = vld [vmem:[#allocation367_spill] sm:$0xff]  ;;  %v9915_v47 = vld [vmem:[#allocation369_spill] sm:$0xff] }
 0x581   :  { %4906 = vmatprep.subr.bf16.mxu0 %v4905_v45  ;;  %v4795_v26 = vpack.c.bf16 %v9914_v37, %v9913_v63  ;;  %v4923_v22 = vpack.c.bf16 %v9916_v15, %v9915_v47  ;;  %v9917_v45 = vld [vmem:[#allocation384_spill] sm:$0xff]  ;;  %v9948_v60 = vld [vmem:[#allocation441_spill] sm:$0xff]  ;;  %v9952_v47 = vld [vmem:[#allocation458_spill] sm:$0xff] }
 0x582   :  { %v4797_v13 = vpack.c.bf16 %v9918_v7, %v9917_v45  ;;  %v9950_v63 = vld [vmem:[#allocation456_spill] sm:$0xff]  ;;  %v9954_v45 = vld [vmem:[#allocation455_spill] sm:$0xff] }
 0x583   :  { %4780 = vmatpush1.bf16.msra.mxu1 %v4779_v23  ;;  %v9919_v23 = vld [vmem:[#allocation386_spill] sm:$0xff] }
 0x584   :  { %4908 = vmatpush1.bf16.msra.mxu0 %v4907_v0  ;;  %4782 = vmatprep.subr.bf16.mxu1 %v4781_v3  ;;  %v4925_v29 = vpack.c.bf16 %v9920_v30, %v9919_v23  ;;  %v9921_v0 = vld [vmem:[#allocation383_spill] sm:$0xff]  ;;  %v9923_v3 = vld [vmem:[#allocation385_spill] sm:$0xff] }
 0x585   :  { %4910 = vmatprep.subr.bf16.mxu0 %v4909_v10  ;;  %v4799_v2 = vpack.c.bf16 %v9922_v1, %v9921_v0  ;;  %v4927_v9 = vpack.c.bf16 %v9924_v8, %v9923_v3  ;;  %v9925_v10 = vld [vmem:[#allocation400_spill] sm:$0xff]  ;;  %v9956_v23 = vld [vmem:[#allocation457_spill] sm:$0xff]  ;;  %v9960_v3 = vld [vmem:[#allocation474_spill] sm:$0xff] }
 0x586   :  { %v4801_v17 = vpack.c.bf16 %v9926_v11, %v9925_v10  ;;  %v9958_v0 = vld [vmem:[#allocation472_spill] sm:$0xff]  ;;  %v9962_v10 = vld [vmem:[#allocation471_spill] sm:$0xff] }
 0x587   :  { %4784 = vmatpush1.bf16.msra.mxu1 %v4783_v25  ;;  %v9927_v25 = vld [vmem:[#allocation402_spill] sm:$0xff] }
 0x588   :  { %4912 = vmatpush1.bf16.msra.mxu0 %v4911_v14  ;;  %4786 = vmatprep.subr.bf16.mxu1 %v4785_v36  ;;  %v4929_v27 = vpack.c.bf16 %v9928_v19, %v9927_v25  ;;  %v9929_v14 = vld [vmem:[#allocation399_spill] sm:$0xff]  ;;  %v9931_v36 = vld [vmem:[#allocation401_spill] sm:$0xff] }
 0x589   :  { %4914 = vmatprep.subr.bf16.mxu0 %v4913_v20  ;;  %v4803_v5 = vpack.c.bf16 %v9930_v6, %v9929_v14  ;;  %v4931_v16 = vpack.c.bf16 %v9932_v4, %v9931_v36  ;;  %v9933_v20 = vld [vmem:[#allocation416_spill] sm:$0xff]  ;;  %v9964_v25 = vld [vmem:[#allocation473_spill] sm:$0xff]  ;;  %v9968_v36 = vld [vmem:[#allocation490_spill] sm:$0xff] }
 0x58a   :  { %v4805_v62 = vpack.c.bf16 %v9934_v39, %v9933_v20  ;;  %v9966_v14 = vld [vmem:[#allocation488_spill] sm:$0xff]  ;;  %v9970_v20 = vld [vmem:[#allocation487_spill] sm:$0xff] }
 0x58b   :  { %4788 = vmatpush1.bf16.msra.mxu1 %v4787_v54  ;;  %v9935_v54 = vld [vmem:[#allocation418_spill] sm:$0xff] }
 0x58c   :  { %4916 = vmatpush1.bf16.msra.mxu0 %v4915_v42  ;;  %4790 = vmatprep.subr.bf16.mxu1 %v4789_v18  ;;  %v4933_v51 = vpack.c.bf16 %v9936_v21, %v9935_v54  ;;  %v9937_v42 = vld [vmem:[#allocation415_spill] sm:$0xff]  ;;  %v9939_v18 = vld [vmem:[#allocation417_spill] sm:$0xff] }
 0x58d   :  { %4918 = vmatprep.subr.bf16.mxu0 %v4917_v35  ;;  %v4807_v32 = vpack.c.bf16 %v9938_v49, %v9937_v42  ;;  %v4935_v33 = vpack.c.bf16 %v9940_v24, %v9939_v18  ;;  %v9941_v35 = vld [vmem:[#allocation432_spill] sm:$0xff]  ;;  %v9972_v54 = vld [vmem:[#allocation489_spill] sm:$0xff]  ;;  %v9976_v18 = vld [vmem:[#allocation506_spill] sm:$0xff] }
 0x58e   :  { %v4809_v41 = vpack.c.bf16 %v9942_v40, %v9941_v35  ;;  %v9974_v42 = vld [vmem:[#allocation504_spill] sm:$0xff]  ;;  %v9978_v35 = vld [vmem:[#allocation503_spill] sm:$0xff] }
 0x58f   :  { %4792 = vmatpush1.bf16.msra.mxu1 %v4791_v44  ;;  %v9943_v44 = vld [vmem:[#allocation434_spill] sm:$0xff] }
 0x590   :  { %4920 = vmatpush1.bf16.msra.mxu0 %v4919_v12  ;;  %4794 = vmatprep.subr.bf16.mxu1 %v4793_v56  ;;  %v4937_v55 = vpack.c.bf16 %v9944_v46, %v9943_v44  ;;  %v9945_v12 = vld [vmem:[#allocation431_spill] sm:$0xff]  ;;  %v9947_v56 = vld [vmem:[#allocation433_spill] sm:$0xff] }
 0x591   :  { %4922 = vmatprep.subr.bf16.mxu0 %v4921_v61  ;;  %v4811_v57 = vpack.c.bf16 %v9946_v50, %v9945_v12  ;;  %v4939_v48 = vpack.c.bf16 %v9948_v60, %v9947_v56  ;;  %v9949_v61 = vld [vmem:[#allocation448_spill] sm:$0xff]  ;;  %v9980_v44 = vld [vmem:[#allocation505_spill] sm:$0xff]  ;;  %v9984_v56 = vld [vmem:[#allocation19_spill] sm:$0xff] }
 0x592   :  { %v4813_v37 = vpack.c.bf16 %v9950_v63, %v9949_v61  ;;  %v9982_v12 = vld [vmem:[#allocation17_spill] sm:$0xff]  ;;  %v9986_v61 = vld [vmem:[#allocation16_spill] sm:$0xff] }
 0x593   :  { %4796 = vmatpush1.bf16.msra.mxu1 %v4795_v26  ;;  %v9951_v26 = vld [vmem:[#allocation450_spill] sm:$0xff] }
 0x594   :  { %4924 = vmatpush1.bf16.msra.mxu0 %v4923_v22  ;;  %4798 = vmatprep.subr.bf16.mxu1 %v4797_v13  ;;  %v4941_v15 = vpack.c.bf16 %v9952_v47, %v9951_v26  ;;  %v9953_v22 = vld [vmem:[#allocation447_spill] sm:$0xff]  ;;  %v9955_v13 = vld [vmem:[#allocation449_spill] sm:$0xff]  ;;  %v9988_v26 = vld [vmem:[#allocation18_spill] sm:$0xff] }
 0x595   :  { %4926 = vmatprep.subr.bf16.mxu0 %v4925_v29  ;;  %v4815_v7 = vpack.c.bf16 %v9954_v45, %v9953_v22  ;;  %v4943_v30 = vpack.c.bf16 %v9956_v23, %v9955_v13  ;;  %v9957_v29 = vld [vmem:[#allocation464_spill] sm:$0xff]  ;;  %v9992_v13 = vld [vmem:[#allocation30_spill] sm:$0xff] }
 0x596   :  { %v4817_v1 = vpack.c.bf16 %v9958_v0, %v9957_v29  ;;  %v9990_v22 = vld [vmem:[#allocation28_spill] sm:$0xff]  ;;  %v9994_v29 = vld [vmem:[#allocation27_spill] sm:$0xff] }
 0x597   :  { %4800 = vmatpush1.bf16.msra.mxu1 %v4799_v2  ;;  %v9959_v2 = vld [vmem:[#allocation466_spill] sm:$0xff] }
 0x598   :  { %4928 = vmatpush1.bf16.msra.mxu0 %v4927_v9  ;;  %4802 = vmatprep.subr.bf16.mxu1 %v4801_v17  ;;  %v4945_v8 = vpack.c.bf16 %v9960_v3, %v9959_v2  ;;  %v9961_v9 = vld [vmem:[#allocation463_spill] sm:$0xff]  ;;  %v9963_v17 = vld [vmem:[#allocation465_spill] sm:$0xff] }
 0x599   :  { %4930 = vmatprep.subr.bf16.mxu0 %v4929_v27  ;;  %v4819_v11 = vpack.c.bf16 %v9962_v10, %v9961_v9  ;;  %v4947_v19 = vpack.c.bf16 %v9964_v25, %v9963_v17  ;;  %v9965_v27 = vld [vmem:[#allocation480_spill] sm:$0xff]  ;;  %v9996_v2 = vld [vmem:[#allocation29_spill] sm:$0xff]  ;;  %v10000_v17 = vld [vmem:[#allocation46_spill] sm:$0xff] }
 0x59a   :  { %v4821_v6 = vpack.c.bf16 %v9966_v14, %v9965_v27  ;;  %v9998_v9 = vld [vmem:[#allocation44_spill] sm:$0xff]  ;;  %v10002_v27 = vld [vmem:[#allocation43_spill] sm:$0xff] }
 0x59b   :  { %4804 = vmatpush1.bf16.msra.mxu1 %v4803_v5  ;;  %v9967_v5 = vld [vmem:[#allocation482_spill] sm:$0xff] }
 0x59c   :  { %4932 = vmatpush1.bf16.msra.mxu0 %v4931_v16  ;;  %4806 = vmatprep.subr.bf16.mxu1 %v4805_v62  ;;  %v4949_v4 = vpack.c.bf16 %v9968_v36, %v9967_v5  ;;  %v9969_v16 = vld [vmem:[#allocation479_spill] sm:$0xff]  ;;  %v9971_v62 = vld [vmem:[#allocation481_spill] sm:$0xff] }
 0x59d   :  { %4934 = vmatprep.subr.bf16.mxu0 %v4933_v51  ;;  %v4823_v39 = vpack.c.bf16 %v9970_v20, %v9969_v16  ;;  %v4951_v21 = vpack.c.bf16 %v9972_v54, %v9971_v62  ;;  %v9973_v51 = vld [vmem:[#allocation496_spill] sm:$0xff]  ;;  %v10004_v5 = vld [vmem:[#allocation45_spill] sm:$0xff]  ;;  %v10008_v62 = vld [vmem:[#allocation62_spill] sm:$0xff] }
 0x59e   :  { %v4825_v49 = vpack.c.bf16 %v9974_v42, %v9973_v51  ;;  %v10006_v16 = vld [vmem:[#allocation60_spill] sm:$0xff]  ;;  %v10011_v42 = vld [vmem:[#allocation53_spill] sm:$0xff] }
 0x59f   :  { %4808 = vmatpush1.bf16.msra.mxu1 %v4807_v32  ;;  %v9975_v32 = vld [vmem:[#allocation498_spill] sm:$0xff] }
 0x5a0   :  { %4936 = vmatpush1.bf16.msra.mxu0 %v4935_v33  ;;  %4810 = vmatprep.subr.bf16.mxu1 %v4809_v41  ;;  %v4953_v24 = vpack.c.bf16 %v9976_v18, %v9975_v32  ;;  %v9977_v33 = vld [vmem:[#allocation495_spill] sm:$0xff]  ;;  %v9979_v41 = vld [vmem:[#allocation497_spill] sm:$0xff]  ;;  %v10013_v18 = vld [vmem:[#allocation68_spill] sm:$0xff] }
 0x5a1   :  { %4938 = vmatprep.subr.bf16.mxu0 %v4937_v55  ;;  %v4827_v40 = vpack.c.bf16 %v9978_v35, %v9977_v33  ;;  %v4955_v46 = vpack.c.bf16 %v9980_v44, %v9979_v41  ;;  %v9981_v55 = vld [vmem:[#allocation13_spill] sm:$0xff]  ;;  %v10015_v35 = vld [vmem:[#allocation70_spill] sm:$0xff]  ;;  %v10017_v44 = vld [vmem:[#allocation67_spill] sm:$0xff] }
 0x5a2   :  { %v4957_v50 = vpack.c.bf16 %v9982_v12, %v9981_v55  ;;  %v10019_v12 = vld [vmem:[#allocation69_spill] sm:$0xff] }
 0x5a3   :  { %4812 = vmatpush1.bf16.msra.mxu1 %v4811_v57  ;;  %v9983_v57 = vld [vmem:[#allocation15_spill] sm:$0xff] }
 0x5a4   :  { %4940 = vmatpush1.bf16.msra.mxu0 %v4939_v48  ;;  %4814 = vmatprep.subr.bf16.mxu1 %v4813_v37  ;;  %v5085_v60 = vpack.c.bf16 %v9984_v56, %v9983_v57  ;;  %v9985_v48 = vld [vmem:[#allocation12_spill] sm:$0xff]  ;;  %v9987_v37 = vld [vmem:[#allocation14_spill] sm:$0xff] }
 0x5a5   :  { %4942 = vmatprep.subr.bf16.mxu0 %v4941_v15  ;;  %v4959_v63 = vpack.c.bf16 %v9986_v61, %v9985_v48  ;;  %v5087_v47 = vpack.c.bf16 %v9988_v26, %v9987_v37  ;;  %v9989_v15 = vld [vmem:[#allocation22_spill] sm:$0xff]  ;;  %v10021_v56 = vld [vmem:[#allocation84_spill] sm:$0xff]  ;;  %v10025_v26 = vld [vmem:[#allocation83_spill] sm:$0xff] }
 0x5a6   :  { %v4961_v45 = vpack.c.bf16 %v9990_v22, %v9989_v15  ;;  %v10023_v61 = vld [vmem:[#allocation86_spill] sm:$0xff]  ;;  %v10027_v22 = vld [vmem:[#allocation85_spill] sm:$0xff] }
 0x5a7   :  { %4816 = vmatpush1.bf16.msra.mxu1 %v4815_v7  ;;  %v9991_v7 = vld [vmem:[#allocation24_spill] sm:$0xff] }
 0x5a8   :  { %4944 = vmatpush1.bf16.msra.mxu0 %v4943_v30  ;;  %4818 = vmatprep.subr.bf16.mxu1 %v4817_v1  ;;  %v5089_v23 = vpack.c.bf16 %v9992_v13, %v9991_v7  ;;  %v9993_v30 = vld [vmem:[#allocation21_spill] sm:$0xff]  ;;  %v9995_v1 = vld [vmem:[#allocation23_spill] sm:$0xff]  ;;  %v10029_v13 = vld [vmem:[#allocation100_spill] sm:$0xff] }
 0x5a9   :  { %4946 = vmatprep.subr.bf16.mxu0 %v4945_v8  ;;  %v4963_v0 = vpack.c.bf16 %v9994_v29, %v9993_v30  ;;  %v5091_v3 = vpack.c.bf16 %v9996_v2, %v9995_v1  ;;  %v9997_v8 = vld [vmem:[#allocation36_spill] sm:$0xff]  ;;  %v10031_v29 = vld [vmem:[#allocation102_spill] sm:$0xff]  ;;  %v10033_v2 = vld [vmem:[#allocation99_spill] sm:$0xff] }
 0x5aa   :  { %v4965_v10 = vpack.c.bf16 %v9998_v9, %v9997_v8  ;;  %v10035_v9 = vld [vmem:[#allocation101_spill] sm:$0xff] }
 0x5ab   :  { %4820 = vmatpush1.bf16.msra.mxu1 %v4819_v11  ;;  %v9999_v11 = vld [vmem:[#allocation38_spill] sm:$0xff] }
 0x5ac   :  { %4948 = vmatpush1.bf16.msra.mxu0 %v4947_v19  ;;  %4822 = vmatprep.subr.bf16.mxu1 %v4821_v6  ;;  %v5093_v25 = vpack.c.bf16 %v10000_v17, %v9999_v11  ;;  %v10001_v19 = vld [vmem:[#allocation35_spill] sm:$0xff]  ;;  %v10003_v6 = vld [vmem:[#allocation37_spill] sm:$0xff]  ;;  %v10037_v17 = vld [vmem:[#allocation116_spill] sm:$0xff] }
 0x5ad   :  { %4950 = vmatprep.subr.bf16.mxu0 %v4949_v4  ;;  %v4967_v14 = vpack.c.bf16 %v10002_v27, %v10001_v19  ;;  %v5095_v36 = vpack.c.bf16 %v10004_v5, %v10003_v6  ;;  %v10005_v4 = vld [vmem:[#allocation52_spill] sm:$0xff]  ;;  %v10039_v27 = vld [vmem:[#allocation118_spill] sm:$0xff]  ;;  %v10041_v5 = vld [vmem:[#allocation115_spill] sm:$0xff] }
 0x5ae   :  { %v4969_v20 = vpack.c.bf16 %v10006_v16, %v10005_v4  ;;  %v10043_v16 = vld [vmem:[#allocation117_spill] sm:$0xff] }
 0x5af   :  { %4824 = vmatpush1.bf16.msra.mxu1 %v4823_v39  ;;  %v10007_v39 = vld [vmem:[#allocation54_spill] sm:$0xff] }
 0x5b0   :  { %4952 = vmatpush1.bf16.msra.mxu0 %v4951_v21  ;;  %4826 = vmatprep.subr.bf16.mxu1 %v4825_v49  ;;  %v5097_v54 = vpack.c.bf16 %v10008_v62, %v10007_v39  ;;  %v10009_v21 = vld [vmem:[#allocation51_spill] sm:$0xff]  ;;  %v10012_v49 = vld [vmem:[#allocation61_spill] sm:$0xff]  ;;  %v10045_v62 = vld [vmem:[#allocation132_spill] sm:$0xff] }
 0x5b1   :  { %4954 = vmatprep.subr.bf16.mxu0 %v4953_v24  ;;  %v5099_v32 = vpack.c.bf16 %v10012_v49, %v10011_v42  ;;  %v10014_v24 = vld [vmem:[#allocation76_spill] sm:$0xff]  ;;  %v10049_v49 = vld [vmem:[#allocation131_spill] sm:$0xff] }
 0x5b2   :  { %v4973_v33 = vpack.c.bf16 %v10014_v24, %v10013_v18  ;;  %v10051_v24 = vld [vmem:[#allocation133_spill] sm:$0xff] }
 0x5b3   :  { %4828 = vmatpush1.bf16.msra.mxu1 %v4827_v40  ;;  %v10016_v40 = vld [vmem:[#allocation78_spill] sm:$0xff] }
 0x5b4   :  { %4956 = vmatpush1.bf16.msra.mxu0 %v4955_v46  ;;  %4958 = vmatprep.subr.bf16.mxu1 %v4957_v50  ;;  %v5101_v41 = vpack.c.bf16 %v10016_v40, %v10015_v35  ;;  %v10018_v46 = vld [vmem:[#allocation75_spill] sm:$0xff]  ;;  %v10020_v50 = vld [vmem:[#allocation77_spill] sm:$0xff]  ;;  %v10053_v40 = vld [vmem:[#allocation148_spill] sm:$0xff] }
 0x5b5   :  { %5086 = vmatprep.subr.bf16.mxu0 %v5085_v60  ;;  %v4975_v55 = vpack.c.bf16 %v10018_v46, %v10017_v44  ;;  %v5103_v57 = vpack.c.bf16 %v10020_v50, %v10019_v12  ;;  %v10022_v60 = vld [vmem:[#allocation92_spill] sm:$0xff]  ;;  %v10055_v46 = vld [vmem:[#allocation150_spill] sm:$0xff]  ;;  %v10057_v50 = vld [vmem:[#allocation147_spill] sm:$0xff] }
 0x5b6   :  { %3136 = vmatmul.mubr.f32.vlgmr.msra.gmra.mrb[12].mxu1 %v8349_v43  ;;  %v4977_v48 = vpack.c.bf16 %v10022_v60, %v10021_v56  ;;  %v10059_v60 = vld [vmem:[#allocation149_spill] sm:$0xff] }
 0x5b7   :  { %3278 = vmatmul.mubr.f32.vlgmr.msra.gmra.mrb[20].mxu0 %v8349_v43  ;;  %4960 = vmatpush1.bf16.msra.mxu1 %v4959_v63  ;;  %v10024_v63 = vld [vmem:[#allocation94_spill] sm:$0xff] }
 0x5b8   :  { %5088 = vmatpush1.bf16.msra.mxu0 %v5087_v47  ;;  %4962 = vmatprep.subr.bf16.mxu1 %v4961_v45  ;;  %v5105_v37 = vpack.c.bf16 %v10024_v63, %v10023_v61  ;;  %v10026_v47 = vld [vmem:[#allocation91_spill] sm:$0xff]  ;;  %v10028_v45 = vld [vmem:[#allocation93_spill] sm:$0xff]  ;;  %v10061_v63 = vld [vmem:[#allocation164_spill] sm:$0xff] }
 0x5b9   :  { %5090 = vmatprep.subr.bf16.mxu0 %v5089_v23  ;;  %3348 = vmatprep.mubr.f32.mxu1 %v8341_v59  ;;  %v4979_v15 = vpack.c.bf16 %v10026_v47, %v10025_v26  ;;  %v5107_v7 = vpack.c.bf16 %v10028_v45, %v10027_v22  ;;  %v10030_v23 = vld [vmem:[#allocation108_spill] sm:$0xff]  ;;  %v10063_v47 = vld [vmem:[#allocation166_spill] sm:$0xff]  ;;  %v10065_v45 = vld [vmem:[#allocation163_spill] sm:$0xff] }
 0x5ba   :  { %3490 = vmatprep.mubr.f32.mxu0 %v8341_v59  ;;  %v10010_v59 = vld [vmem:[#allocation59_spill] sm:$0xff]  ;;  %v4981_v30 = vpack.c.bf16 %v10030_v23, %v10029_v13  ;;  %v10067_v23 = vld [vmem:[#allocation165_spill] sm:$0xff] }
 0x5bb   :  { %4964 = vmatpush1.bf16.msra.mxu1 %v4963_v0  ;;  %v4971_v51 = vpack.c.bf16 %v10010_v59, %v10009_v21  ;;  %v10032_v0 = vld [vmem:[#allocation110_spill] sm:$0xff] }
 0x5bc   :  { %5092 = vmatpush1.bf16.msra.mxu0 %v5091_v3  ;;  %4966 = vmatprep.subr.bf16.mxu1 %v4965_v10  ;;  %v5109_v1 = vpack.c.bf16 %v10032_v0, %v10031_v29  ;;  %v10034_v3 = vld [vmem:[#allocation107_spill] sm:$0xff]  ;;  %v10036_v10 = vld [vmem:[#allocation109_spill] sm:$0xff]  ;;  %v10047_v59 = vld [vmem:[#allocation134_spill] sm:$0xff] }
 0x5bd   :  { %5094 = vmatprep.subr.bf16.mxu0 %v5093_v25  ;;  %v4983_v8 = vpack.c.bf16 %v10034_v3, %v10033_v2  ;;  %v5111_v11 = vpack.c.bf16 %v10036_v10, %v10035_v9  ;;  %v10038_v25 = vld [vmem:[#allocation124_spill] sm:$0xff]  ;;  %v10071_v3 = vld [vmem:[#allocation182_spill] sm:$0xff]  ;;  %v10073_v10 = vld [vmem:[#allocation179_spill] sm:$0xff] }
 0x5be   :  { %v4985_v19 = vpack.c.bf16 %v10038_v25, %v10037_v17  ;;  %v10069_v0 = vld [vmem:[#allocation180_spill] sm:$0xff]  ;;  %v10075_v25 = vld [vmem:[#allocation181_spill] sm:$0xff] }
 0x5bf   :  { %4968 = vmatpush1.bf16.msra.mxu1 %v4967_v14  ;;  %v10040_v14 = vld [vmem:[#allocation126_spill] sm:$0xff] }
 0x5c0   :  { %5096 = vmatpush1.bf16.msra.mxu0 %v5095_v36  ;;  %4970 = vmatprep.subr.bf16.mxu1 %v4969_v20  ;;  %v5113_v6 = vpack.c.bf16 %v10040_v14, %v10039_v27  ;;  %v10042_v36 = vld [vmem:[#allocation123_spill] sm:$0xff]  ;;  %v10044_v20 = vld [vmem:[#allocation125_spill] sm:$0xff]  ;;  %v10077_v14 = vld [vmem:[#allocation196_spill] sm:$0xff] }
 0x5c1   :  { %5098 = vmatprep.subr.bf16.mxu0 %v5097_v54  ;;  %v4987_v4 = vpack.c.bf16 %v10042_v36, %v10041_v5  ;;  %v5115_v39 = vpack.c.bf16 %v10044_v20, %v10043_v16  ;;  %v10046_v54 = vld [vmem:[#allocation140_spill] sm:$0xff]  ;;  %v10079_v36 = vld [vmem:[#allocation198_spill] sm:$0xff]  ;;  %v10081_v20 = vld [vmem:[#allocation195_spill] sm:$0xff] }
 0x5c2   :  { %v4989_v21 = vpack.c.bf16 %v10046_v54, %v10045_v62  ;;  %v10083_v54 = vld [vmem:[#allocation197_spill] sm:$0xff] }
 0x5c3   :  { %4972 = vmatpush1.bf16.msra.mxu1 %v4971_v51  ;;  %v10048_v51 = vld [vmem:[#allocation142_spill] sm:$0xff] }
 0x5c4   :  { %5100 = vmatpush1.bf16.msra.mxu0 %v5099_v32  ;;  %4974 = vmatprep.subr.bf16.mxu1 %v4973_v33  ;;  %v5117_v42 = vpack.c.bf16 %v10048_v51, %v10047_v59  ;;  %v10050_v32 = vld [vmem:[#allocation139_spill] sm:$0xff]  ;;  %v10052_v33 = vld [vmem:[#allocation141_spill] sm:$0xff]  ;;  %v10085_v51 = vld [vmem:[#allocation212_spill] sm:$0xff] }
 0x5c5   :  { %5102 = vmatprep.subr.bf16.mxu0 %v5101_v41  ;;  %v4991_v18 = vpack.c.bf16 %v10050_v32, %v10049_v49  ;;  %v5119_v35 = vpack.c.bf16 %v10052_v33, %v10051_v24  ;;  %v10054_v41 = vld [vmem:[#allocation156_spill] sm:$0xff]  ;;  %v10087_v32 = vld [vmem:[#allocation214_spill] sm:$0xff]  ;;  %v10089_v33 = vld [vmem:[#allocation211_spill] sm:$0xff] }
 0x5c6   :  { %v4993_v44 = vpack.c.bf16 %v10054_v41, %v10053_v40  ;;  %v10091_v41 = vld [vmem:[#allocation213_spill] sm:$0xff] }
 0x5c7   :  { %4976 = vmatpush1.bf16.msra.mxu1 %v4975_v55  ;;  %v10056_v55 = vld [vmem:[#allocation158_spill] sm:$0xff] }
 0x5c8   :  { %5104 = vmatpush1.bf16.msra.mxu0 %v5103_v57  ;;  %4978 = vmatprep.subr.bf16.mxu1 %v4977_v48  ;;  %v5121_v12 = vpack.c.bf16 %v10056_v55, %v10055_v46  ;;  %v10058_v57 = vld [vmem:[#allocation155_spill] sm:$0xff]  ;;  %v10060_v48 = vld [vmem:[#allocation157_spill] sm:$0xff]  ;;  %v10093_v55 = vld [vmem:[#allocation228_spill] sm:$0xff] }
 0x5c9   :  { %5106 = vmatprep.subr.bf16.mxu0 %v5105_v37  ;;  %v4995_v56 = vpack.c.bf16 %v10058_v57, %v10057_v50  ;;  %v5123_v61 = vpack.c.bf16 %v10060_v48, %v10059_v60  ;;  %v10062_v37 = vld [vmem:[#allocation172_spill] sm:$0xff]  ;;  %v10095_v57 = vld [vmem:[#allocation230_spill] sm:$0xff]  ;;  %v10097_v48 = vld [vmem:[#allocation227_spill] sm:$0xff] }
 0x5ca   :  { %v4997_v26 = vpack.c.bf16 %v10062_v37, %v10061_v63  ;;  %v10099_v37 = vld [vmem:[#allocation229_spill] sm:$0xff] }
 0x5cb   :  { %4980 = vmatpush1.bf16.msra.mxu1 %v4979_v15  ;;  %v10064_v15 = vld [vmem:[#allocation174_spill] sm:$0xff] }
 0x5cc   :  { %5108 = vmatpush1.bf16.msra.mxu0 %v5107_v7  ;;  %4982 = vmatprep.subr.bf16.mxu1 %v4981_v30  ;;  %v5125_v22 = vpack.c.bf16 %v10064_v15, %v10063_v47  ;;  %v10066_v7 = vld [vmem:[#allocation171_spill] sm:$0xff]  ;;  %v10068_v30 = vld [vmem:[#allocation173_spill] sm:$0xff]  ;;  %v10101_v15 = vld [vmem:[#allocation244_spill] sm:$0xff] }
 0x5cd   :  { %5110 = vmatprep.subr.bf16.mxu0 %v5109_v1  ;;  %v4999_v13 = vpack.c.bf16 %v10066_v7, %v10065_v45  ;;  %v5127_v29 = vpack.c.bf16 %v10068_v30, %v10067_v23  ;;  %v10070_v1 = vld [vmem:[#allocation188_spill] sm:$0xff]  ;;  %v10103_v7 = vld [vmem:[#allocation246_spill] sm:$0xff]  ;;  %v10105_v30 = vld [vmem:[#allocation243_spill] sm:$0xff] }
 0x5ce   :  { %v5001_v2 = vpack.c.bf16 %v10070_v1, %v10069_v0  ;;  %v10107_v1 = vld [vmem:[#allocation245_spill] sm:$0xff] }
 0x5cf   :  { %4984 = vmatpush1.bf16.msra.mxu1 %v4983_v8  ;;  %v10072_v8 = vld [vmem:[#allocation190_spill] sm:$0xff] }
 0x5d0   :  { %5112 = vmatpush1.bf16.msra.mxu0 %v5111_v11  ;;  %4986 = vmatprep.subr.bf16.mxu1 %v4985_v19  ;;  %v5129_v9 = vpack.c.bf16 %v10072_v8, %v10071_v3  ;;  %v10074_v11 = vld [vmem:[#allocation187_spill] sm:$0xff]  ;;  %v10076_v19 = vld [vmem:[#allocation189_spill] sm:$0xff]  ;;  %v10109_v8 = vld [vmem:[#allocation260_spill] sm:$0xff] }
 0x5d1   :  { %5114 = vmatprep.subr.bf16.mxu0 %v5113_v6  ;;  %v5003_v17 = vpack.c.bf16 %v10074_v11, %v10073_v10  ;;  %v5131_v27 = vpack.c.bf16 %v10076_v19, %v10075_v25  ;;  %v10078_v6 = vld [vmem:[#allocation204_spill] sm:$0xff]  ;;  %v10111_v11 = vld [vmem:[#allocation262_spill] sm:$0xff]  ;;  %v10113_v19 = vld [vmem:[#allocation259_spill] sm:$0xff] }
 0x5d2   :  { %v5005_v5 = vpack.c.bf16 %v10078_v6, %v10077_v14  ;;  %v10115_v6 = vld [vmem:[#allocation261_spill] sm:$0xff] }
 0x5d3   :  { %4988 = vmatpush1.bf16.msra.mxu1 %v4987_v4  ;;  %v10080_v4 = vld [vmem:[#allocation206_spill] sm:$0xff] }
 0x5d4   :  { %5116 = vmatpush1.bf16.msra.mxu0 %v5115_v39  ;;  %4990 = vmatprep.subr.bf16.mxu1 %v4989_v21  ;;  %v5133_v16 = vpack.c.bf16 %v10080_v4, %v10079_v36  ;;  %v10082_v39 = vld [vmem:[#allocation203_spill] sm:$0xff]  ;;  %v10084_v21 = vld [vmem:[#allocation205_spill] sm:$0xff]  ;;  %v10117_v4 = vld [vmem:[#allocation276_spill] sm:$0xff] }
 0x5d5   :  { %5118 = vmatprep.subr.bf16.mxu0 %v5117_v42  ;;  %v5007_v62 = vpack.c.bf16 %v10082_v39, %v10081_v20  ;;  %v5135_v59 = vpack.c.bf16 %v10084_v21, %v10083_v54  ;;  %v10086_v42 = vld [vmem:[#allocation220_spill] sm:$0xff]  ;;  %v10119_v39 = vld [vmem:[#allocation278_spill] sm:$0xff]  ;;  %v10121_v21 = vld [vmem:[#allocation275_spill] sm:$0xff] }
 0x5d6   :  { %v5009_v49 = vpack.c.bf16 %v10086_v42, %v10085_v51  ;;  %v10123_v42 = vld [vmem:[#allocation277_spill] sm:$0xff] }
 0x5d7   :  { %4992 = vmatpush1.bf16.msra.mxu1 %v4991_v18  ;;  %v10088_v18 = vld [vmem:[#allocation222_spill] sm:$0xff] }
 0x5d8   :  { %5120 = vmatpush1.bf16.msra.mxu0 %v5119_v35  ;;  %4994 = vmatprep.subr.bf16.mxu1 %v4993_v44  ;;  %v5137_v24 = vpack.c.bf16 %v10088_v18, %v10087_v32  ;;  %v10090_v35 = vld [vmem:[#allocation219_spill] sm:$0xff]  ;;  %v10092_v44 = vld [vmem:[#allocation221_spill] sm:$0xff]  ;;  %v10125_v18 = vld [vmem:[#allocation292_spill] sm:$0xff] }
 0x5d9   :  { %5122 = vmatprep.subr.bf16.mxu0 %v5121_v12  ;;  %v5011_v40 = vpack.c.bf16 %v10090_v35, %v10089_v33  ;;  %v5139_v46 = vpack.c.bf16 %v10092_v44, %v10091_v41  ;;  %v10094_v12 = vld [vmem:[#allocation236_spill] sm:$0xff]  ;;  %v10127_v35 = vld [vmem:[#allocation294_spill] sm:$0xff]  ;;  %v10130_v44 = vld [vmem:[#allocation299_spill] sm:$0xff] }
 0x5da   :  { %v5013_v50 = vpack.c.bf16 %v10094_v12, %v10093_v55  ;;  %v10131_v55 = vld [vmem:[#allocation293_spill] sm:$0xff] }
 0x5db   :  { %4996 = vmatpush1.bf16.msra.mxu1 %v4995_v56  ;;  %v10096_v56 = vld [vmem:[#allocation238_spill] sm:$0xff]  ;;  %v10132_v12 = vld [vmem:[#allocation301_spill] sm:$0xff] }
 0x5dc   :  { %5124 = vmatpush1.bf16.msra.mxu0 %v5123_v61  ;;  %4998 = vmatprep.subr.bf16.mxu1 %v4997_v26  ;;  %v5141_v60 = vpack.c.bf16 %v10096_v56, %v10095_v57  ;;  %v10098_v61 = vld [vmem:[#allocation235_spill] sm:$0xff]  ;;  %v10100_v26 = vld [vmem:[#allocation237_spill] sm:$0xff]  ;;  %v10133_v57 = vld [vmem:[#allocation308_spill] sm:$0xff] }
 0x5dd   :  { %5126 = vmatprep.subr.bf16.mxu0 %v5125_v22  ;;  %v5015_v63 = vpack.c.bf16 %v10098_v61, %v10097_v48  ;;  %v5143_v47 = vpack.c.bf16 %v10100_v26, %v10099_v37  ;;  %v10102_v22 = vld [vmem:[#allocation252_spill] sm:$0xff]  ;;  %v10135_v48 = vld [vmem:[#allocation310_spill] sm:$0xff]  ;;  %v10137_v37 = vld [vmem:[#allocation307_spill] sm:$0xff] }
 0x5de   :  { %v5017_v45 = vpack.c.bf16 %v10102_v22, %v10101_v15  ;;  %v10134_v56 = vld [vmem:[#allocation316_spill] sm:$0xff]  ;;  %v10136_v61 = vld [vmem:[#allocation318_spill] sm:$0xff]  ;;  %v10140_v15 = vld [vmem:[#allocation317_spill] sm:$0xff] }
 0x5df   :  { %5000 = vmatpush1.bf16.msra.mxu1 %v4999_v13  ;;  %v10104_v13 = vld [vmem:[#allocation254_spill] sm:$0xff] }
 0x5e0   :  { %5128 = vmatpush1.bf16.msra.mxu0 %v5127_v29  ;;  %5002 = vmatprep.subr.bf16.mxu1 %v5001_v2  ;;  %v5145_v23 = vpack.c.bf16 %v10104_v13, %v10103_v7  ;;  %v10106_v29 = vld [vmem:[#allocation251_spill] sm:$0xff]  ;;  %v10108_v2 = vld [vmem:[#allocation253_spill] sm:$0xff]  ;;  %v10142_v7 = vld [vmem:[#allocation332_spill] sm:$0xff] }
 0x5e1   :  { %5130 = vmatprep.subr.bf16.mxu0 %v5129_v9  ;;  %v5019_v0 = vpack.c.bf16 %v10106_v29, %v10105_v30  ;;  %v5147_v3 = vpack.c.bf16 %v10108_v2, %v10107_v1  ;;  %v10110_v9 = vld [vmem:[#allocation268_spill] sm:$0xff]  ;;  %v10144_v30 = vld [vmem:[#allocation334_spill] sm:$0xff]  ;;  %v10146_v1 = vld [vmem:[#allocation331_spill] sm:$0xff] }
 0x5e2   :  { %v5021_v10 = vpack.c.bf16 %v10110_v9, %v10109_v8  ;;  %v10148_v8 = vld [vmem:[#allocation333_spill] sm:$0xff] }
 0x5e3   :  { %5004 = vmatpush1.bf16.msra.mxu1 %v5003_v17  ;;  %v10112_v17 = vld [vmem:[#allocation270_spill] sm:$0xff] }
 0x5e4   :  { %5132 = vmatpush1.bf16.msra.mxu0 %v5131_v27  ;;  %5006 = vmatprep.subr.bf16.mxu1 %v5005_v5  ;;  %v5149_v25 = vpack.c.bf16 %v10112_v17, %v10111_v11  ;;  %v10114_v27 = vld [vmem:[#allocation267_spill] sm:$0xff]  ;;  %v10116_v5 = vld [vmem:[#allocation269_spill] sm:$0xff]  ;;  %v10150_v11 = vld [vmem:[#allocation348_spill] sm:$0xff] }
 0x5e5   :  { %5134 = vmatprep.subr.bf16.mxu0 %v5133_v16  ;;  %v5023_v14 = vpack.c.bf16 %v10114_v27, %v10113_v19  ;;  %v5151_v36 = vpack.c.bf16 %v10116_v5, %v10115_v6  ;;  %v10118_v16 = vld [vmem:[#allocation284_spill] sm:$0xff]  ;;  %v10152_v19 = vld [vmem:[#allocation350_spill] sm:$0xff]  ;;  %v10154_v6 = vld [vmem:[#allocation347_spill] sm:$0xff] }
 0x5e6   :  { %v5025_v20 = vpack.c.bf16 %v10118_v16, %v10117_v4  ;;  %v10156_v4 = vld [vmem:[#allocation349_spill] sm:$0xff] }
 0x5e7   :  { %5008 = vmatpush1.bf16.msra.mxu1 %v5007_v62  ;;  %v10120_v62 = vld [vmem:[#allocation286_spill] sm:$0xff] }
 0x5e8   :  { %5136 = vmatpush1.bf16.msra.mxu0 %v5135_v59  ;;  %5010 = vmatprep.subr.bf16.mxu1 %v5009_v49  ;;  %v5153_v54 = vpack.c.bf16 %v10120_v62, %v10119_v39  ;;  %v10122_v59 = vld [vmem:[#allocation283_spill] sm:$0xff]  ;;  %v10124_v49 = vld [vmem:[#allocation285_spill] sm:$0xff]  ;;  %v10158_v39 = vld [vmem:[#allocation364_spill] sm:$0xff] }
 0x5e9   :  { %5138 = vmatprep.subr.bf16.mxu0 %v5137_v24  ;;  %v5027_v51 = vpack.c.bf16 %v10122_v59, %v10121_v21  ;;  %v5155_v32 = vpack.c.bf16 %v10124_v49, %v10123_v42  ;;  %v10126_v24 = vld [vmem:[#allocation300_spill] sm:$0xff]  ;;  %v10160_v21 = vld [vmem:[#allocation366_spill] sm:$0xff]  ;;  %v10162_v42 = vld [vmem:[#allocation363_spill] sm:$0xff] }
 0x5ea   :  { %v5029_v33 = vpack.c.bf16 %v10126_v24, %v10125_v18  ;;  %v10164_v18 = vld [vmem:[#allocation365_spill] sm:$0xff] }
 0x5eb   :  { %5012 = vmatpush1.bf16.msra.mxu1 %v5011_v40  ;;  %v10128_v40 = vld [vmem:[#allocation302_spill] sm:$0xff] }
 0x5ec   :  { %5140 = vmatpush1.bf16.msra.mxu0 %v5139_v46  ;;  %5014 = vmatprep.subr.bf16.mxu1 %v5013_v50  ;;  %v5157_v41 = vpack.c.bf16 %v10128_v40, %v10127_v35  ;;  %v5159_v50 = vpack.c.bf16 %v10132_v12, %v10131_v55  ;;  %v10166_v35 = vld [vmem:[#allocation380_spill] sm:$0xff]  ;;  %v10170_v55 = vld [vmem:[#allocation379_spill] sm:$0xff] }
 0x5ed   :  { %5142 = vmatprep.subr.bf16.mxu0 %v5141_v60  ;;  %v5033_v60 = vpack.c.bf16 %v10134_v56, %v10133_v57  ;;  %v10172_v57 = vld [vmem:[#allocation381_spill] sm:$0xff] }
 0x5ef   :  { %5016 = vmatpush1.bf16.msra.mxu1 %v5015_v63  ;;  %v5161_v63 = vpack.c.bf16 %v10136_v61, %v10135_v48  ;;  %v10174_v48 = vld [vmem:[#allocation396_spill] sm:$0xff] }
 0x5f0   :  { %5144 = vmatpush1.bf16.msra.mxu0 %v5143_v47  ;;  %5018 = vmatprep.subr.bf16.mxu1 %v5017_v45  ;;  %v10139_v47 = vld [vmem:[#allocation309_spill] sm:$0xff]  ;;  %v10141_v45 = vld [vmem:[#allocation324_spill] sm:$0xff] }
 0x5f1   :  { %5146 = vmatprep.subr.bf16.mxu0 %v5145_v23  ;;  %v5163_v22 = vpack.c.bf16 %v10140_v15, %v10139_v47  ;;  %v5037_v13 = vpack.c.bf16 %v10142_v7, %v10141_v45  ;;  %v10143_v23 = vld [vmem:[#allocation326_spill] sm:$0xff]  ;;  %v10178_v47 = vld [vmem:[#allocation395_spill] sm:$0xff]  ;;  %v10180_v45 = vld [vmem:[#allocation397_spill] sm:$0xff] }
 0x5f2   :  { %v5165_v29 = vpack.c.bf16 %v10144_v30, %v10143_v23  ;;  %v10182_v23 = vld [vmem:[#allocation412_spill] sm:$0xff] }
 0x5f3   :  { %5020 = vmatpush1.bf16.msra.mxu1 %v5019_v0  ;;  %v10145_v0 = vld [vmem:[#allocation323_spill] sm:$0xff] }
 0x5f4   :  { %5148 = vmatpush1.bf16.msra.mxu0 %v5147_v3  ;;  %5022 = vmatprep.subr.bf16.mxu1 %v5021_v10  ;;  %v5039_v2 = vpack.c.bf16 %v10146_v1, %v10145_v0  ;;  %v10147_v3 = vld [vmem:[#allocation325_spill] sm:$0xff]  ;;  %v10149_v10 = vld [vmem:[#allocation340_spill] sm:$0xff]  ;;  %v10184_v0 = vld [vmem:[#allocation414_spill] sm:$0xff] }
 0x5f5   :  { %5150 = vmatprep.subr.bf16.mxu0 %v5149_v25  ;;  %v5167_v9 = vpack.c.bf16 %v10148_v8, %v10147_v3  ;;  %v5041_v17 = vpack.c.bf16 %v10150_v11, %v10149_v10  ;;  %v10151_v25 = vld [vmem:[#allocation342_spill] sm:$0xff]  ;;  %v10186_v3 = vld [vmem:[#allocation411_spill] sm:$0xff]  ;;  %v10188_v10 = vld [vmem:[#allocation413_spill] sm:$0xff] }
 0x5f6   :  { %3349 = vmatmul.mubr.f32.vlgmr.msra.gmra.mrb[14].mxu1 %v8344_v34  ;;  %v5169_v27 = vpack.c.bf16 %v10152_v19, %v10151_v25  ;;  %v10190_v25 = vld [vmem:[#allocation428_spill] sm:$0xff] }
 0x5f7   :  { %3491 = vmatmul.mubr.f32.vlgmr.msra.gmra.mrb[22].mxu0 %v8344_v34  ;;  %5024 = vmatpush1.bf16.msra.mxu1 %v5023_v14  ;;  %v10129_v34 = vld [vmem:[#allocation291_spill] sm:$0xff] }
 0x5f8   :  { %5152 = vmatpush1.bf16.msra.mxu0 %v5151_v36  ;;  %5026 = vmatprep.subr.bf16.mxu1 %v5025_v20  ;;  %v5031_v46 = vpack.c.bf16 %v10130_v44, %v10129_v34  ;;  %v10153_v14 = vld [vmem:[#allocation339_spill] sm:$0xff]  ;;  %v10155_v36 = vld [vmem:[#allocation341_spill] sm:$0xff]  ;;  %v10157_v20 = vld [vmem:[#allocation356_spill] sm:$0xff] }
 0x5f9   :  { %5154 = vmatprep.subr.bf16.mxu0 %v5153_v54  ;;  %3419 = vmatprep.mubr.f32.mxu1 %v8628_v31  ;;  %v5043_v5 = vpack.c.bf16 %v10154_v6, %v10153_v14  ;;  %v5171_v16 = vpack.c.bf16 %v10156_v4, %v10155_v36  ;;  %v5045_v62 = vpack.c.bf16 %v10158_v39, %v10157_v20  ;;  %v10159_v54 = vld [vmem:[#allocation358_spill] sm:$0xff]  ;;  %v10194_v36 = vld [vmem:[#allocation427_spill] sm:$0xff]  ;;  %v10196_v20 = vld [vmem:[#allocation429_spill] sm:$0xff] }
 0x5fa   :  { %3561 = vmatprep.mubr.f32.mxu0 %v8628_v31  ;;  %v10138_v31 = vld [vmem:[#allocation315_spill] sm:$0xff]  ;;  %v5173_v59 = vpack.c.bf16 %v10160_v21, %v10159_v54  ;;  %v10168_v34 = vld [vmem:[#allocation382_spill] sm:$0xff]  ;;  %v10198_v54 = vld [vmem:[#allocation444_spill] sm:$0xff] }
 0x5fb   :  { %5028 = vmatpush1.bf16.msra.mxu1 %v5027_v51  ;;  %v5035_v26 = vpack.c.bf16 %v10138_v31, %v10137_v37  ;;  %v10161_v51 = vld [vmem:[#allocation355_spill] sm:$0xff]  ;;  %v10176_v37 = vld [vmem:[#allocation398_spill] sm:$0xff] }
 0x5fc   :  { %5156 = vmatpush1.bf16.msra.mxu0 %v5155_v32  ;;  %5030 = vmatprep.subr.bf16.mxu1 %v5029_v33  ;;  %v5047_v49 = vpack.c.bf16 %v10162_v42, %v10161_v51  ;;  %v10163_v32 = vld [vmem:[#allocation357_spill] sm:$0xff]  ;;  %v10165_v33 = vld [vmem:[#allocation372_spill] sm:$0xff]  ;;  %v10192_v14 = vld [vmem:[#allocation430_spill] sm:$0xff] }
 0x5fd   :  { %5158 = vmatprep.subr.bf16.mxu0 %v5157_v41  ;;  %v5175_v24 = vpack.c.bf16 %v10164_v18, %v10163_v32  ;;  %v5049_v40 = vpack.c.bf16 %v10166_v35, %v10165_v33  ;;  %v10167_v41 = vld [vmem:[#allocation374_spill] sm:$0xff]  ;;  %v10202_v32 = vld [vmem:[#allocation443_spill] sm:$0xff]  ;;  %v10204_v33 = vld [vmem:[#allocation445_spill] sm:$0xff] }
 0x5fe   :  { %v5177_v44 = vpack.c.bf16 %v10168_v34, %v10167_v41  ;;  %v10200_v51 = vld [vmem:[#allocation446_spill] sm:$0xff]  ;;  %v10206_v41 = vld [vmem:[#allocation460_spill] sm:$0xff] }
 0x5ff   :  { %5032 = vmatpush1.bf16.msra.mxu1 %v5031_v46  ;;  %v10169_v46 = vld [vmem:[#allocation371_spill] sm:$0xff] }
 0x600   :  { %5160 = vmatpush1.bf16.msra.mxu0 %v5159_v50  ;;  %5034 = vmatprep.subr.bf16.mxu1 %v5033_v60  ;;  %v5051_v12 = vpack.c.bf16 %v10170_v55, %v10169_v46  ;;  %v10171_v50 = vld [vmem:[#allocation373_spill] sm:$0xff]  ;;  %v10173_v60 = vld [vmem:[#allocation388_spill] sm:$0xff]  ;;  %v10208_v46 = vld [vmem:[#allocation462_spill] sm:$0xff] }
 0x601   :  { %5162 = vmatprep.subr.bf16.mxu0 %v5161_v63  ;;  %v5179_v56 = vpack.c.bf16 %v10172_v57, %v10171_v50  ;;  %v5053_v61 = vpack.c.bf16 %v10174_v48, %v10173_v60  ;;  %v10175_v63 = vld [vmem:[#allocation390_spill] sm:$0xff]  ;;  %v10210_v50 = vld [vmem:[#allocation459_spill] sm:$0xff]  ;;  %v10212_v60 = vld [vmem:[#allocation461_spill] sm:$0xff] }
 0x602   :  { %v5181_v31 = vpack.c.bf16 %v10176_v37, %v10175_v63  ;;  %v10214_v63 = vld [vmem:[#allocation476_spill] sm:$0xff] }
 0x603   :  { %5036 = vmatpush1.bf16.msra.mxu1 %v5035_v26  ;;  %v10177_v26 = vld [vmem:[#allocation387_spill] sm:$0xff] }
 0x604   :  { %5164 = vmatpush1.bf16.msra.mxu0 %v5163_v22  ;;  %5038 = vmatprep.subr.bf16.mxu1 %v5037_v13  ;;  %v5055_v15 = vpack.c.bf16 %v10178_v47, %v10177_v26  ;;  %v10179_v22 = vld [vmem:[#allocation389_spill] sm:$0xff]  ;;  %v10181_v13 = vld [vmem:[#allocation404_spill] sm:$0xff]  ;;  %v10216_v26 = vld [vmem:[#allocation478_spill] sm:$0xff] }
 0x605   :  { %5166 = vmatprep.subr.bf16.mxu0 %v5165_v29  ;;  %v5183_v7 = vpack.c.bf16 %v10180_v45, %v10179_v22  ;;  %v5057_v30 = vpack.c.bf16 %v10182_v23, %v10181_v13  ;;  %v10183_v29 = vld [vmem:[#allocation406_spill] sm:$0xff]  ;;  %v10218_v22 = vld [vmem:[#allocation475_spill] sm:$0xff]  ;;  %v10220_v13 = vld [vmem:[#allocation477_spill] sm:$0xff] }
 0x606   :  { %v5185_v1 = vpack.c.bf16 %v10184_v0, %v10183_v29  ;;  %v10222_v29 = vld [vmem:[#allocation492_spill] sm:$0xff] }
 0x607   :  { %5040 = vmatpush1.bf16.msra.mxu1 %v5039_v2  ;;  %v10185_v2 = vld [vmem:[#allocation403_spill] sm:$0xff] }
 0x608   :  { %5168 = vmatpush1.bf16.msra.mxu0 %v5167_v9  ;;  %5042 = vmatprep.subr.bf16.mxu1 %v5041_v17  ;;  %v5059_v8 = vpack.c.bf16 %v10186_v3, %v10185_v2  ;;  %v10187_v9 = vld [vmem:[#allocation405_spill] sm:$0xff]  ;;  %v10189_v17 = vld [vmem:[#allocation420_spill] sm:$0xff]  ;;  %v10224_v2 = vld [vmem:[#allocation494_spill] sm:$0xff] }
 0x609   :  { %5170 = vmatprep.subr.bf16.mxu0 %v5169_v27  ;;  %v5187_v11 = vpack.c.bf16 %v10188_v10, %v10187_v9  ;;  %v5061_v19 = vpack.c.bf16 %v10190_v25, %v10189_v17  ;;  %v10191_v27 = vld [vmem:[#allocation422_spill] sm:$0xff]  ;;  %v10226_v9 = vld [vmem:[#allocation491_spill] sm:$0xff]  ;;  %v10228_v17 = vld [vmem:[#allocation493_spill] sm:$0xff] }
 0x60a   :  { %v5189_v6 = vpack.c.bf16 %v10192_v14, %v10191_v27  ;;  %v10230_v27 = vld [vmem:[#allocation508_spill] sm:$0xff] }
 0x60b   :  { %5044 = vmatpush1.bf16.msra.mxu1 %v5043_v5  ;;  %v10193_v5 = vld [vmem:[#allocation419_spill] sm:$0xff] }
 0x60c   :  { %5172 = vmatpush1.bf16.msra.mxu0 %v5171_v16  ;;  %5046 = vmatprep.subr.bf16.mxu1 %v5045_v62  ;;  %v5063_v4 = vpack.c.bf16 %v10194_v36, %v10193_v5  ;;  %v10195_v16 = vld [vmem:[#allocation421_spill] sm:$0xff]  ;;  %v10197_v62 = vld [vmem:[#allocation436_spill] sm:$0xff]  ;;  %v10232_v5 = vld [vmem:[#allocation510_spill] sm:$0xff] }
 0x60d   :  { %5174 = vmatprep.subr.bf16.mxu0 %v5173_v59  ;;  %v5191_v39 = vpack.c.bf16 %v10196_v20, %v10195_v16  ;;  %v5065_v21 = vpack.c.bf16 %v10198_v54, %v10197_v62  ;;  %v10199_v59 = vld [vmem:[#allocation438_spill] sm:$0xff]  ;;  %v10234_v16 = vld [vmem:[#allocation507_spill] sm:$0xff]  ;;  %v10236_v62 = vld [vmem:[#allocation509_spill] sm:$0xff] }
 0x60e   :  { %v5193_v42 = vpack.c.bf16 %v10200_v51, %v10199_v59 }
 0x60f   :  { %5048 = vmatpush1.bf16.msra.mxu1 %v5047_v49  ;;  %v10201_v49 = vld [vmem:[#allocation435_spill] sm:$0xff] }
 0x610   :  { %5176 = vmatpush1.bf16.msra.mxu0 %v5175_v24  ;;  %5050 = vmatprep.subr.bf16.mxu1 %v5049_v40  ;;  %v5067_v18 = vpack.c.bf16 %v10202_v32, %v10201_v49  ;;  %v10203_v24 = vld [vmem:[#allocation437_spill] sm:$0xff]  ;;  %v10205_v40 = vld [vmem:[#allocation452_spill] sm:$0xff] }
 0x611   :  { %5178 = vmatprep.subr.bf16.mxu0 %v5177_v44  ;;  %v5195_v35 = vpack.c.bf16 %v10204_v33, %v10203_v24  ;;  %v5069_v34 = vpack.c.bf16 %v10206_v41, %v10205_v40  ;;  %v10207_v44 = vld [vmem:[#allocation454_spill] sm:$0xff] }
 0x612   :  { %v5197_v55 = vpack.c.bf16 %v10208_v46, %v10207_v44 }
 0x613   :  { %5052 = vmatpush1.bf16.msra.mxu1 %v5051_v12  ;;  %v10209_v12 = vld [vmem:[#allocation451_spill] sm:$0xff] }
 0x614   :  { %5180 = vmatpush1.bf16.msra.mxu0 %v5179_v56  ;;  %5054 = vmatprep.subr.bf16.mxu1 %v5053_v61  ;;  %v5071_v57 = vpack.c.bf16 %v10210_v50, %v10209_v12  ;;  %v10211_v56 = vld [vmem:[#allocation453_spill] sm:$0xff]  ;;  %v10213_v61 = vld [vmem:[#allocation468_spill] sm:$0xff] }
 0x615   :  { %5182 = vmatprep.subr.bf16.mxu0 %v5181_v31  ;;  %v5199_v48 = vpack.c.bf16 %v10212_v60, %v10211_v56  ;;  %v5073_v37 = vpack.c.bf16 %v10214_v63, %v10213_v61  ;;  %v10215_v31 = vld [vmem:[#allocation470_spill] sm:$0xff] }
 0x616   :  { %v5201_v47 = vpack.c.bf16 %v10216_v26, %v10215_v31 }
 0x617   :  { %5056 = vmatpush1.bf16.msra.mxu1 %v5055_v15  ;;  %v10217_v15 = vld [vmem:[#allocation467_spill] sm:$0xff] }
 0x618   :  { %5184 = vmatpush1.bf16.msra.mxu0 %v5183_v7  ;;  %5058 = vmatprep.subr.bf16.mxu1 %v5057_v30  ;;  %v5075_v45 = vpack.c.bf16 %v10218_v22, %v10217_v15  ;;  %v10219_v7 = vld [vmem:[#allocation469_spill] sm:$0xff]  ;;  %v10221_v30 = vld [vmem:[#allocation484_spill] sm:$0xff] }
 0x619   :  { %5186 = vmatprep.subr.bf16.mxu0 %v5185_v1  ;;  %v5203_v23 = vpack.c.bf16 %v10220_v13, %v10219_v7  ;;  %v5077_v0 = vpack.c.bf16 %v10222_v29, %v10221_v30  ;;  %v10223_v1 = vld [vmem:[#allocation486_spill] sm:$0xff]  ;;  %v2982_v30 = vsub.s32 5, %v8356_v52  ;;  %v2990_v29 = vsub.s32 7, %v8356_v52 }
 0x61a   :  { %v5205_v3 = vpack.c.bf16 %v10224_v2, %v10223_v1 }
 0x61b   :  { %5060 = vmatpush1.bf16.msra.mxu1 %v5059_v8  ;;  %v10225_v8 = vld [vmem:[#allocation483_spill] sm:$0xff] }
 0x61c   :  { %5188 = vmatpush1.bf16.msra.mxu0 %v5187_v11  ;;  %5062 = vmatprep.subr.bf16.mxu1 %v5061_v19  ;;  %v5079_v10 = vpack.c.bf16 %v10226_v9, %v10225_v8  ;;  %v10227_v11 = vld [vmem:[#allocation485_spill] sm:$0xff]  ;;  %v10229_v19 = vld [vmem:[#allocation500_spill] sm:$0xff] }
 0x61d   :  { %5190 = vmatprep.subr.bf16.mxu0 %v5189_v6  ;;  %v5207_v25 = vpack.c.bf16 %v10228_v17, %v10227_v11  ;;  %v5081_v14 = vpack.c.bf16 %v10230_v27, %v10229_v19  ;;  %v10231_v6 = vld [vmem:[#allocation502_spill] sm:$0xff] }
 0x61e   :  { %v5209_v36 = vpack.c.bf16 %v10232_v5, %v10231_v6 }
 0x61f   :  { %5064 = vmatpush1.bf16.msra.mxu1 %v5063_v4  ;;  %v10233_v4 = vld [vmem:[#allocation499_spill] sm:$0xff] }
 0x620   :  { %5192 = vmatpush1.bf16.msra.mxu0 %v5191_v39  ;;  %5066 = vmatprep.subr.bf16.mxu1 %v5065_v21  ;;  %v5083_v20 = vpack.c.bf16 %v10234_v16, %v10233_v4  ;;  %v10235_v39 = vld [vmem:[#allocation501_spill] sm:$0xff]  ;;  %v2958_v21 = vld [vmem:[%s9207_s7] sm:$0xff] }
 0x621   :  { %5194 = vmatprep.subr.bf16.mxu0 %v5193_v42  ;;  %v5211_v54 = vpack.c.bf16 %v10236_v62, %v10235_v39  ;;  %v2963_v59 = vrot.slane %v2958_v21, %v8543_v58  ;;  %v2971_v51 = vrot.slane %v2958_v21, %v8549_v38  ;;  %v9166_v42 = vld [vmem:[%s9208_s8] sm:$0xff]  ;;  %v2967_v49 = vrot.slane %v2958_v21, %v8546_v53 }
 0x622   :  { %v2975_v32 = vrot.slane %v2958_v21, %v8552_v28  ;;  %v3597_v33 = vrot.slane %v9166_v42, %v8543_v58  ;;  %v3601_v46 = vrot.slane %v9166_v42, %v8546_v53  ;;  %v2983_v2 = vrot.slane %v2958_v21, %v2982_v30 }
 0x623   :  { %5068 = vmatpush1.bf16.msra.mxu1 %v5067_v18 }
 0x624   :  { %5196 = vmatpush1.bf16.msra.mxu0 %v5195_v35  ;;  %5070 = vmatprep.subr.bf16.mxu1 %v5069_v34  ;;  %v3605_v34 = vrot.slane %v9166_v42, %v8549_v38 }
 0x625   :  { %5198 = vmatprep.subr.bf16.mxu0 %v5197_v55 }
 0x627   :  { %5072 = vmatpush1.bf16.msra.mxu1 %v5071_v57 }
 0x628   :  { %5200 = vmatpush1.bf16.msra.mxu0 %v5199_v48  ;;  %5074 = vmatprep.subr.bf16.mxu1 %v5073_v37  ;;  %v3609_v48 = vrot.slane %v9166_v42, %v8552_v28  ;;  %v2986_v28 = vsub.s32 6, %v8356_v52 }
 0x629   :  { %5202 = vmatprep.subr.bf16.mxu0 %v5201_v47 }
 0x62a   :  { %v2987_v1 = vrot.slane %v2958_v21, %v2986_v28  ;;  %v3621_v5 = vrot.slane %v9166_v42, %v2986_v28 }
 0x62b   :  { %5076 = vmatpush1.bf16.msra.mxu1 %v5075_v45 }
 0x62c   :  { %5204 = vmatpush1.bf16.msra.mxu0 %v5203_v23  ;;  %5078 = vmatprep.subr.bf16.mxu1 %v5077_v0  ;;  %v2978_v23 = vsub.s32 4, %v8356_v52 }
 0x62d   :  { %5206 = vmatprep.subr.bf16.mxu0 %v5205_v3  ;;  %v2991_v3 = vrot.slane %v2958_v21, %v2990_v29 }
 0x62e   :  { %v2979_v0 = vrot.slane %v2958_v21, %v2978_v23  ;;  %v3613_v11 = vrot.slane %v9166_v42, %v2978_v23  ;;  %v3625_v21 = vrot.slane %v9166_v42, %v2990_v29 }
 0x62f   :  { %5080 = vmatpush1.bf16.msra.mxu1 %v5079_v10 }
 0x630   :  { %5208 = vmatpush1.bf16.msra.mxu0 %v5207_v25  ;;  %5082 = vmatprep.subr.bf16.mxu1 %v5081_v14  ;;  %v3617_v14 = vrot.slane %v9166_v42, %v2982_v30  ;;  %v3774_v42 = vld [vmem:[%s9209_s9] ss:$0 sm:$0xff] }
 0x631   :  { %5210 = vmatprep.subr.bf16.mxu0 %v5209_v36 }
 0x633   :  { %5084 = vmatpush1.bf16.msra.mxu1 %v5083_v20 }
 0x634   :  { %5212 = vmatpush1.bf16.msra.mxu0 %v5211_v54 }
 0x636   :  { %3420 = vmatmul.mubr.f32.vlgmr.msra.gmra.mrb[14].mxu1 %v8349_v43 }
 0x637   :  { %3562 = vmatmul.mubr.f32.vlgmr.msra.gmra.mrb[22].mxu0 %v8349_v43 }
 0x689   :  { %v3137_v18 = vpop.f32.mrb[12].mxu1 }
 0x68a   :  { %v3279_v24 = vpop.f32.mrb[20].mxu0  ;;  %v5213_v43 = vadd.f32 %v3137_v18, %v2963_v59  ;;  %v3139_v40 = vpop.f32.mrb[13].mxu1 }
 0x68b   :  { %v5215_v35 = vadd.f32 %v3279_v24, %v2971_v51  ;;  %v3281_v41 = vpop.f32.mrb[21].mxu0  ;;  %v5214_v44 = vadd.f32 %v3139_v40, %v2967_v49 }
 0x68c   :  { %v5216_v55 = vadd.f32 %v3281_v41, %v2975_v32  ;;  %vm3568_vm8 = vcmp.gt.f32.partialorder %v5213_v43, 0.0  ;;  %v3576_v12 = vmul.f32 0.01, %v5213_v43 }
 0x68d   :  { %vm3570_vm13 = vcmp.gt.f32.partialorder %v5215_v35, 0.0  ;;  %v3578_v50 = vmul.f32 0.01, %v5215_v35  ;;  %vm3569_vm7 = vcmp.gt.f32.partialorder %v5214_v44, 0.0  ;;  %v3577_v57 = vmul.f32 0.01, %v5214_v44 }
 0x68e   :  { %vm3571_vm1 = vcmp.gt.f32.partialorder %v5216_v55, 0.0  ;;  %v3579_v56 = vmul.f32 0.01, %v5216_v55  ;;  %v3584_v58 = vsel %vm3568_vm8, %v5213_v43, %v3576_v12 }
 0x68f   :  { %v3586_v60 = vsel %vm3570_vm13, %v5215_v35, %v3578_v50  ;;  %v3634_v61 = vmul.f32 %v3597_v33, %v3584_v58  ;;  %v3585_v38 = vsel %vm3569_vm7, %v5214_v44, %v3577_v57 }
 0x690   :  { %v3587_v63 = vsel %vm3571_vm1, %v5216_v55, %v3579_v56  ;;  %v3636_v37 = vmul.f32 %v3605_v34, %v3586_v60  ;;  %v3635_v31 = vmul.f32 %v3601_v46, %v3585_v38 }
 0x691   :  { %v3642_v53 = vsel %vm2166_vm12, %v3634_v61, 0.0  ;;  %v3637_v47 = vmul.f32 %v3609_v48, %v3587_v63 }
 0x692   :  { %v3643_v26 = vsel %vm2166_vm12, %v3635_v31, 0.0  ;;  %v3645_v22 = vsel %vm2166_vm12, %v3636_v37, 0.0 }
 0x693   :  { %v3644_v15 = vadd.f32 %v3643_v26, %v3642_v53  ;;  %v3647_v7 = vsel %vm2166_vm12, %v3637_v47, 0.0 }
 0x695   :  { %v3646_v45 = vadd.f32 %v3645_v22, %v3644_v15 }
 0x697   :  { %v3648_v13 = vadd.f32 %v3647_v7, %v3646_v45 }
 0x709   :  { %v3421_v8 = vpop.f32.mrb[14].mxu1 }
 0x70a   :  { %v3563_v9 = vpop.f32.mrb[22].mxu0  ;;  %v5217_v10 = vadd.f32 %v3421_v8, %v2979_v0  ;;  %v3423_v25 = vpop.f32.mrb[15].mxu1 }
 0x70b   :  { %v5219_v17 = vadd.f32 %v3563_v9, %v2987_v1  ;;  %v3565_v19 = vpop.f32.mrb[23].mxu0  ;;  %v5218_v27 = vadd.f32 %v3423_v25, %v2983_v2 }
 0x70c   :  { %v5220_v6 = vadd.f32 %v3565_v19, %v2991_v3  ;;  %vm3572_vm10 = vcmp.gt.f32.partialorder %v5217_v10, 0.0  ;;  %v3580_v52 = vmul.f32 0.01, %v5217_v10 }
 0x70d   :  { %vm3574_vm15 = vcmp.gt.f32.partialorder %v5219_v17, 0.0  ;;  %v3582_v36 = vmul.f32 0.01, %v5219_v17  ;;  %vm3573_vm5 = vcmp.gt.f32.partialorder %v5218_v27, 0.0  ;;  %v3581_v4 = vmul.f32 0.01, %v5218_v27 }
 0x70e   :  { %v3583_v16 = vmul.f32 0.01, %v5220_v6  ;;  %vm3575_vm14 = vcmp.gt.f32.partialorder %v5220_v6, 0.0  ;;  %v3588_v20 = vsel %vm3572_vm10, %v5217_v10, %v3580_v52 }
 0x70f   :  { %v3590_v39 = vsel %vm3574_vm15, %v5219_v17, %v3582_v36  ;;  %v3638_v62 = vmul.f32 %v3613_v11, %v3588_v20  ;;  %v3589_v54 = vsel %vm3573_vm5, %v5218_v27, %v3581_v4 }
 0x710   :  { %v3591_v59 = vsel %vm3575_vm14, %v5220_v6, %v3583_v16  ;;  %v3639_v51 = vmul.f32 %v3617_v14, %v3589_v54  ;;  %v3640_v32 = vmul.f32 %v3621_v5, %v3590_v39 }
 0x711   :  { %v3649_v49 = vsel %vm2166_vm12, %v3638_v62, 0.0  ;;  %v3641_v43 = vmul.f32 %v3625_v21, %v3591_v59 }
 0x712   :  { %v3650_v18 = vadd.f32 %v3649_v49, %v3648_v13  ;;  %v3651_v24 = vsel %vm2166_vm12, %v3639_v51, 0.0  ;;  %v3653_v35 = vsel %vm2166_vm12, %v3640_v32, 0.0 }
 0x713   :  { %v3655_v41 = vsel %vm2166_vm12, %v3641_v43, 0.0 }
 0x714   :  { %v3652_v33 = vadd.f32 %v3651_v24, %v3650_v18 }
 0x716   :  { %v3654_v40 = vadd.f32 %v3653_v35, %v3652_v33 }
 0x718   :  { %v3656_v34 = vadd.f32 %v3655_v41, %v3654_v40 }
 0x71a   :  { %3657 = vadd.xlane.f32.xlu0 %v3656_v34 }
 0x7a7   :  { %v3658_v44 = vpop.xlane.xlu0 %3657 }
 0x7a8   :  { %v3666_v46 = vadd.f32 %v3774_v42, %v3658_v44 }
 0x7aa   :  { %3667 = vst [vmem:[%s9210_s10] sm:$0xf] %v3666_v46 }
 0x7ab   :  { %3672 = vsyncpa [#allocation5], 1 }
 0x7ac   :  { %3673 = vsyncpa [#allocation7], 1 }
 0x7ad   :  { %3674 = vsyncmov [#allocation3] }
 0x7b0   :  { %s3675_s14 = vpop.sfrf %3674 }
 0x7b1   :  { %p3775_p2 = scmp.ne.s32.totalorder %s3675_s14, 0 }
 0x7b3   :  { %3679 = shalt.err (%p3775_p2)  }

</bundles_post_ra>
